<compile_context>
chip_gen: v5e
topology: v5e:2x2
jax: 0.10.0
libtpu: 0.0.40
codegen_flags: <defaults>
</compile_context>

<pallas_src>
import functools

import jax
import jax.numpy as jnp
from jax.experimental import pallas as pl
from jax.experimental.pallas import tpu as pltpu


# ------------------------- fused autoencoder kernel --------------------------
def _run_lstm_unrolled(T, B, H, gx_fn, whh, store_fn=None):
    """Unrolled LSTM recurrence (PyTorch gate order i, f, g, o).

    gx_fn(t) -> (B, 4H): precomputed x_t @ W_ih + (b_ih + b_hh) for step t.
    Only h_prev @ W_hh remains on the sequential critical path.
    Returns the final hidden state; optionally stores every h_t via store_fn.
    """
    h = jnp.zeros((B, H), jnp.float32)
    c = jnp.zeros((B, H), jnp.float32)
    for t in range(T):  # T is a small static trip count -> fully unrolled
        gates = gx_fn(t) + jnp.dot(h, whh, preferred_element_type=jnp.float32)
        i_g = jax.nn.sigmoid(gates[:, 0 * H:1 * H])
        f_g = jax.nn.sigmoid(gates[:, 1 * H:2 * H])
        g_g = jnp.tanh(gates[:, 2 * H:3 * H])
        o_g = jax.nn.sigmoid(gates[:, 3 * H:4 * H])
        c = f_g * c + i_g * g_g
        h = o_g * jnp.tanh(c)
        if store_fn is not None:
            store_fn(t, h)
    return h


def _autoencoder_kernel(T, B, F, E,
                        x_ref,
                        wih1_ref, whh1_ref, b1_ref,   # enc1: F  -> 2E
                        wih2_ref, whh2_ref, b2_ref,   # enc2: 2E -> E
                        wih3_ref, whh3_ref, b3_ref,   # dec1: E  -> E
                        wih4_ref, whh4_ref, b4_ref,   # dec2: E  -> 2E
                        wout_ref, bout_ref,           # out : 2E -> F
                        out_ref,
                        seq_wide_ref, seq_narrow_ref):
    """Whole autoencoder forward in one kernel invocation (no grid).

    x_ref        : (T*B, F)  time-major flattened input (row = t*B + b)
    w*_ref       : pre-transposed torch weights (I, 4H) / (H, 4H); b* = (1, 4H)
    out_ref      : (T*B, F)  time-major flattened reconstruction
    seq_wide_ref : (T*B, 2E) scratch: enc1 hidden sequence, reused for dec2
    seq_narrow_ref:(T*B, E)  scratch: dec1 hidden sequence
    """
    f32 = jnp.float32
    H1 = 2 * E

    def store_wide(t, h):
        seq_wide_ref[t * B:(t + 1) * B, :] = h

    def store_narrow(t, h):
        seq_narrow_ref[t * B:(t + 1) * B, :] = h

    # ---- Encoder LSTM1 (F -> 2E): hoisted input projection over all T*B ----
    gx1 = (jnp.dot(x_ref[...], wih1_ref[...], preferred_element_type=f32)
           + b1_ref[...])
    _run_lstm_unrolled(T, B, H1, lambda t: gx1[t * B:(t + 1) * B, :],
                       whh1_ref[...], store_wide)

    # ---- Encoder LSTM2 (2E -> E): only the final hidden (latent) is used ----
    gx2 = (jnp.dot(seq_wide_ref[...], wih2_ref[...], preferred_element_type=f32)
           + b2_ref[...])
    latent = _run_lstm_unrolled(T, B, E, lambda t: gx2[t * B:(t + 1) * B, :],
                                whh2_ref[...])

    # ---- Decoder LSTM1 (E -> E): input = latent repeated -> projection is
    #      loop invariant, computed exactly once and reused every timestep ----
    gx3 = (jnp.dot(latent, wih3_ref[...], preferred_element_type=f32)
           + b3_ref[...])
    _run_lstm_unrolled(T, B, E, lambda t: gx3, whh3_ref[...], store_narrow)

    # ---- Decoder LSTM2 (E -> 2E), reusing the wide scratch buffer ----------
    gx4 = (jnp.dot(seq_narrow_ref[...], wih4_ref[...], preferred_element_type=f32)
           + b4_ref[...])
    _run_lstm_unrolled(T, B, H1, lambda t: gx4[t * B:(t + 1) * B, :],
                       whh4_ref[...], store_wide)

    # ---- Time-distributed Linear(2E -> F): one matmul over all T*B rows ----
    y = (jnp.dot(seq_wide_ref[...], wout_ref[...], preferred_element_type=f32)
         + bout_ref[...])
    out_ref[...] = y.astype(out_ref.dtype)


# ------------------------------- parameters ----------------------------------
def init_params(key, seq_len, n_features, embedding_dim):
    """Deterministic synthetic parameters in PyTorch LSTM/Linear shapes."""
    E, H2 = embedding_dim, 2 * embedding_dim

    def lstm_params(k, in_dim, hid):
        k1, k2, k3, k4 = jax.random.split(k, 4)
        s = 0.1
        return (
            jax.random.normal(k1, (4 * hid, in_dim), jnp.float32) * s,  # w_ih
            jax.random.normal(k2, (4 * hid, hid), jnp.float32) * s,     # w_hh
            jax.random.normal(k3, (4 * hid,), jnp.float32) * s,         # b_ih
            jax.random.normal(k4, (4 * hid,), jnp.float32) * s,         # b_hh
        )

    ks = jax.random.split(key, 6)
    return {
        "enc1": lstm_params(ks[0], n_features, H2),   # Encoder.rnn1: F  -> 2E
        "enc2": lstm_params(ks[1], H2, E),            # Encoder.rnn2: 2E -> E
        "dec1": lstm_params(ks[2], E, E),             # Decoder.rnn1: E  -> E
        "dec2": lstm_params(ks[3], E, H2),            # Decoder.rnn2: E  -> 2E
        "out_w": jax.random.normal(ks[4], (n_features, H2), jnp.float32) * 0.1,
        "out_b": jax.random.normal(ks[5], (n_features,), jnp.float32) * 0.1,
    }


def prepare_kernel_params(tp):
    """One-time conversion: torch layout -> kernel layout.

    (4H, I)/(4H, H) weights are transposed to (I, 4H)/(H, 4H); the two biases
    are combined and reshaped to (1, 4H).  Done once, outside the forward.
    """
    def prep_lstm(w_ih, w_hh, b_ih, b_hh):
        return (jnp.transpose(w_ih).astype(jnp.float32),
                jnp.transpose(w_hh).astype(jnp.float32),
                (b_ih + b_hh).astype(jnp.float32)[None, :])

    return {
        "enc1": prep_lstm(*tp["enc1"]),
        "enc2": prep_lstm(*tp["enc2"]),
        "dec1": prep_lstm(*tp["dec1"]),
        "dec2": prep_lstm(*tp["dec2"]),
        "out_w": jnp.transpose(tp["out_w"]).astype(jnp.float32),   # (2E, F)
        "out_b": tp["out_b"].astype(jnp.float32)[None, :],         # (1, F)
    }


# --------------------------------- forward -----------------------------------
@functools.partial(jax.jit, static_argnums=(2, 3, 4))
def lstm_autoencoder_forward(x, kparams, seq_len, n_features, embedding_dim):
    B = x.shape[0]
    E, H2 = embedding_dim, 2 * embedding_dim

    # torch: x = reshape(x, (B, seq_len, n_features)); kernel wants time-major.
    x = jnp.reshape(x, (B, seq_len, n_features)).astype(jnp.float32)
    x_tm = jnp.transpose(x, (1, 0, 2)).reshape(seq_len * B, n_features)

    kernel = functools.partial(_autoencoder_kernel,
                               seq_len, B, n_features, embedding_dim)
    y_flat = pl.pallas_call(
        kernel,
        out_shape=jax.ShapeDtypeStruct((seq_len * B, n_features), jnp.float32),
        scratch_shapes=[
            pltpu.VMEM((seq_len * B, H2), jnp.float32),  # enc1 / dec2 hiddens
            pltpu.VMEM((seq_len * B, E), jnp.float32),   # dec1 hiddens
        ],
    )(x_tm,
      *kparams["enc1"], *kparams["enc2"],
      *kparams["dec1"], *kparams["dec2"],
      kparams["out_w"], kparams["out_b"])

    # time-major (T*B, F) -> (B, T, F) to match PyTorch batch-first output.
    return jnp.transpose(y_flat.reshape(seq_len, B, n_features), (1, 0, 2))


# ----------------------------- pure-JAX reference ----------------------------
def _reference_forward(x, tp, seq_len, n_features, embedding_dim):
    """Straight transcription of the PyTorch module (batch-first, lax.scan)."""
    def lstm(seq_btI, w_ih, w_hh, b_ih, b_hh):
        B = seq_btI.shape[0]
        H = w_hh.shape[1]

        def step(carry, x_t):
            h, c = carry
            gates = x_t @ w_ih.T + b_ih + h @ w_hh.T + b_hh
            i = jax.nn.sigmoid(gates[:, 0 * H:1 * H])
            f = jax.nn.sigmoid(gates[:, 1 * H:2 * H])
            g = jnp.tanh(gates[:, 2 * H:3 * H])
            o = jax.nn.sigmoid(gates[:, 3 * H:4 * H])
            c = f * c + i * g
            h = o * jnp.tanh(c)
            return (h, c), h

        init = (jnp.zeros((B, H), jnp.float32), jnp.zeros((B, H), jnp.float32))
        _, hs = jax.lax.scan(step, init, jnp.transpose(seq_btI, (1, 0, 2)))
        return jnp.transpose(hs, (1, 0, 2))

    B = x.shape[0]
    x = jnp.reshape(x, (B, seq_len, n_features)).astype(jnp.float32)
    h1 = lstm(x, *tp["enc1"])
    h2 = lstm(h1, *tp["enc2"])
    latent = h2[:, -1, :]
    dec_in = jnp.broadcast_to(latent[:, None, :], (B, seq_len, embedding_dim))
    d1 = lstm(dec_in, *tp["dec1"])
    d2 = lstm(d1, *tp["dec2"])
    return d2 @ tp["out_w"].T + tp["out_b"]


# ----------------------------------- main -------------------------------------
if __name__ == "__main__":
    seq_len = 8
    n_features = 4
    embedding_dim = 32
    batch = 8

    key = jax.random.PRNGKey(0)
    k_x, k_p = jax.random.split(key)
    x = jax.random.normal(k_x, (batch, seq_len, n_features), jnp.float32)
    torch_params = init_params(k_p, seq_len, n_features, embedding_dim)
    kparams = prepare_kernel_params(torch_params)   # one-time weight prep

    out = lstm_autoencoder_forward(x, kparams, seq_len, n_features,
                                   embedding_dim)
    out = jax.block_until_ready(out)

    assert out.shape == (batch, seq_len, n_features), out.shape
    assert out.dtype == jnp.float32
    assert bool(jnp.all(jnp.isfinite(out)))

    ref = _reference_forward(x, torch_params, seq_len, n_features,
                             embedding_dim)
    max_err = float(jnp.max(jnp.abs(out - ref)))
    assert max_err < 1e-2, f"mismatch vs reference: {max_err}"

    print("KERNEL_OK")
</pallas_src>

<mosaic_0001>
module attributes {stable_mosaic.version = 11 : i64} {
  func.func @_autoencoder_kernel(%arg0: memref<64x4xf32, #tpu.memory_space<vmem>>, %arg1: memref<4x256xf32, #tpu.memory_space<vmem>>, %arg2: memref<64x256xf32, #tpu.memory_space<vmem>>, %arg3: memref<1x256xf32, #tpu.memory_space<vmem>>, %arg4: memref<64x128xf32, #tpu.memory_space<vmem>>, %arg5: memref<32x128xf32, #tpu.memory_space<vmem>>, %arg6: memref<1x128xf32, #tpu.memory_space<vmem>>, %arg7: memref<32x128xf32, #tpu.memory_space<vmem>>, %arg8: memref<32x128xf32, #tpu.memory_space<vmem>>, %arg9: memref<1x128xf32, #tpu.memory_space<vmem>>, %arg10: memref<32x256xf32, #tpu.memory_space<vmem>>, %arg11: memref<64x256xf32, #tpu.memory_space<vmem>>, %arg12: memref<1x256xf32, #tpu.memory_space<vmem>>, %arg13: memref<64x4xf32, #tpu.memory_space<vmem>>, %arg14: memref<1x4xf32, #tpu.memory_space<vmem>>, %arg15: memref<64x4xf32, #tpu.memory_space<vmem>>, %arg16: memref<64x64xf32, #tpu.memory_space<vmem>>, %arg17: memref<64x32xf32, #tpu.memory_space<vmem>>) attributes {dimension_semantics = [], scalar_prefetch = 0 : i64, scratch_operands = 2 : i64, tpu.core_type = #tpu.core_type<tc>} {
    %c0 = arith.constant 0 : index
    %c0_0 = arith.constant 0 : index
    %0 = vector.load %arg0[%c0, %c0_0] : memref<64x4xf32, #tpu.memory_space<vmem>>, vector<64x4xf32>
    %c0_1 = arith.constant 0 : index
    %c0_2 = arith.constant 0 : index
    %1 = vector.load %arg1[%c0_1, %c0_2] : memref<4x256xf32, #tpu.memory_space<vmem>>, vector<4x256xf32>
    %cst = arith.constant dense<0.000000e+00> : vector<64x256xf32>
    %2 = tpu.matmul %0, %1, %cst {dimension_numbers = #tpu.dot_dimension_numbers<[1], [0], [0], [1], [0, 0, 1, 1], [], []>} : vector<64x4xf32>, vector<4x256xf32>, vector<64x256xf32> -> vector<64x256xf32>
    %c0_3 = arith.constant 0 : index
    %c0_4 = arith.constant 0 : index
    %3 = vector.load %arg3[%c0_3, %c0_4] : memref<1x256xf32, #tpu.memory_space<vmem>>, vector<1x256xf32>
    %4 = vector.broadcast %3 : vector<1x256xf32> to vector<64x256xf32>
    %5 = arith.addf %2, %4 : vector<64x256xf32>
    %c0_5 = arith.constant 0 : index
    %c0_6 = arith.constant 0 : index
    %6 = vector.load %arg2[%c0_5, %c0_6] : memref<64x256xf32, #tpu.memory_space<vmem>>, vector<64x256xf32>
    %cst_7 = arith.constant 0.000000e+00 : f32
    %7 = vector.broadcast %cst_7 : f32 to vector<8x64xf32>
    %cst_8 = arith.constant 0.000000e+00 : f32
    %8 = vector.broadcast %cst_8 : f32 to vector<8x64xf32>
    %9 = vector.extract_strided_slice %5 {offsets = [0, 0], sizes = [8, 256], strides = [1, 1]} : vector<64x256xf32> to vector<8x256xf32>
    %cst_9 = arith.constant dense<0.000000e+00> : vector<8x256xf32>
    %10 = tpu.matmul %7, %6, %cst_9 {dimension_numbers = #tpu.dot_dimension_numbers<[1], [0], [0], [1], [0, 0, 1, 1], [], []>} : vector<8x64xf32>, vector<64x256xf32>, vector<8x256xf32> -> vector<8x256xf32>
    %11 = arith.addf %9, %10 : vector<8x256xf32>
    %12 = vector.extract_strided_slice %11 {offsets = [0, 0], sizes = [8, 64], strides = [1, 1]} : vector<8x256xf32> to vector<8x64xf32>
    %13 = arith.negf %12 : vector<8x64xf32>
    %14 = math.exp %13 : vector<8x64xf32>
    %cst_10 = arith.constant 1.000000e+00 : f32
    %15 = vector.broadcast %cst_10 : f32 to vector<8x64xf32>
    %16 = arith.addf %15, %14 : vector<8x64xf32>
    %17 = arith.divf %15, %16 : vector<8x64xf32>
    %18 = vector.extract_strided_slice %11 {offsets = [0, 64], sizes = [8, 64], strides = [1, 1]} : vector<8x256xf32> to vector<8x64xf32>
    %19 = arith.negf %18 : vector<8x64xf32>
    %20 = math.exp %19 : vector<8x64xf32>
    %cst_11 = arith.constant 1.000000e+00 : f32
    %21 = vector.broadcast %cst_11 : f32 to vector<8x64xf32>
    %22 = arith.addf %21, %20 : vector<8x64xf32>
    %23 = arith.divf %21, %22 : vector<8x64xf32>
    %24 = vector.extract_strided_slice %11 {offsets = [0, 128], sizes = [8, 64], strides = [1, 1]} : vector<8x256xf32> to vector<8x64xf32>
    %25 = math.tanh %24 : vector<8x64xf32>
    %26 = vector.extract_strided_slice %11 {offsets = [0, 192], sizes = [8, 64], strides = [1, 1]} : vector<8x256xf32> to vector<8x64xf32>
    %27 = arith.negf %26 : vector<8x64xf32>
    %28 = math.exp %27 : vector<8x64xf32>
    %cst_12 = arith.constant 1.000000e+00 : f32
    %29 = vector.broadcast %cst_12 : f32 to vector<8x64xf32>
    %30 = arith.addf %29, %28 : vector<8x64xf32>
    %31 = arith.divf %29, %30 : vector<8x64xf32>
    %32 = arith.mulf %23, %8 : vector<8x64xf32>
    %33 = arith.mulf %17, %25 : vector<8x64xf32>
    %34 = arith.addf %32, %33 : vector<8x64xf32>
    %35 = math.tanh %34 : vector<8x64xf32>
    %36 = arith.mulf %31, %35 : vector<8x64xf32>
    %c0_13 = arith.constant 0 : index
    %c0_14 = arith.constant 0 : index
    %37 = vector.load %arg16[%c0_13, %c0_14] : memref<64x64xf32, #tpu.memory_space<vmem>>, vector<8x64xf32>
    tpu.vector_store %arg16[%c0_13, %c0_14], %36 {strides = array<i32>} : memref<64x64xf32, #tpu.memory_space<vmem>>, vector<8x64xf32>,
    %38 = vector.extract_strided_slice %5 {offsets = [8, 0], sizes = [8, 256], strides = [1, 1]} : vector<64x256xf32> to vector<8x256xf32>
    %cst_15 = arith.constant dense<0.000000e+00> : vector<8x256xf32>
    %39 = tpu.matmul %36, %6, %cst_15 {dimension_numbers = #tpu.dot_dimension_numbers<[1], [0], [0], [1], [0, 0, 1, 1], [], []>} : vector<8x64xf32>, vector<64x256xf32>, vector<8x256xf32> -> vector<8x256xf32>
    %40 = arith.addf %38, %39 : vector<8x256xf32>
    %41 = vector.extract_strided_slice %40 {offsets = [0, 0], sizes = [8, 64], strides = [1, 1]} : vector<8x256xf32> to vector<8x64xf32>
    %42 = arith.negf %41 : vector<8x64xf32>
    %43 = math.exp %42 : vector<8x64xf32>
    %cst_16 = arith.constant 1.000000e+00 : f32
    %44 = vector.broadcast %cst_16 : f32 to vector<8x64xf32>
    %45 = arith.addf %44, %43 : vector<8x64xf32>
    %46 = arith.divf %44, %45 : vector<8x64xf32>
    %47 = vector.extract_strided_slice %40 {offsets = [0, 64], sizes = [8, 64], strides = [1, 1]} : vector<8x256xf32> to vector<8x64xf32>
    %48 = arith.negf %47 : vector<8x64xf32>
    %49 = math.exp %48 : vector<8x64xf32>
    %cst_17 = arith.constant 1.000000e+00 : f32
    %50 = vector.broadcast %cst_17 : f32 to vector<8x64xf32>
    %51 = arith.addf %50, %49 : vector<8x64xf32>
    %52 = arith.divf %50, %51 : vector<8x64xf32>
    %53 = vector.extract_strided_slice %40 {offsets = [0, 128], sizes = [8, 64], strides = [1, 1]} : vector<8x256xf32> to vector<8x64xf32>
    %54 = math.tanh %53 : vector<8x64xf32>
    %55 = vector.extract_strided_slice %40 {offsets = [0, 192], sizes = [8, 64], strides = [1, 1]} : vector<8x256xf32> to vector<8x64xf32>
    %56 = arith.negf %55 : vector<8x64xf32>
    %57 = math.exp %56 : vector<8x64xf32>
    %cst_18 = arith.constant 1.000000e+00 : f32
    %58 = vector.broadcast %cst_18 : f32 to vector<8x64xf32>
    %59 = arith.addf %58, %57 : vector<8x64xf32>
    %60 = arith.divf %58, %59 : vector<8x64xf32>
    %61 = arith.mulf %52, %34 : vector<8x64xf32>
    %62 = arith.mulf %46, %54 : vector<8x64xf32>
    %63 = arith.addf %61, %62 : vector<8x64xf32>
    %64 = math.tanh %63 : vector<8x64xf32>
    %65 = arith.mulf %60, %64 : vector<8x64xf32>
    %c8 = arith.constant 8 : index
    %c0_19 = arith.constant 0 : index
    %66 = vector.load %arg16[%c8, %c0_19] : memref<64x64xf32, #tpu.memory_space<vmem>>, vector<8x64xf32>
    tpu.vector_store %arg16[%c8, %c0_19], %65 {strides = array<i32>} : memref<64x64xf32, #tpu.memory_space<vmem>>, vector<8x64xf32>,
    %67 = vector.extract_strided_slice %5 {offsets = [16, 0], sizes = [8, 256], strides = [1, 1]} : vector<64x256xf32> to vector<8x256xf32>
    %cst_20 = arith.constant dense<0.000000e+00> : vector<8x256xf32>
    %68 = tpu.matmul %65, %6, %cst_20 {dimension_numbers = #tpu.dot_dimension_numbers<[1], [0], [0], [1], [0, 0, 1, 1], [], []>} : vector<8x64xf32>, vector<64x256xf32>, vector<8x256xf32> -> vector<8x256xf32>
    %69 = arith.addf %67, %68 : vector<8x256xf32>
    %70 = vector.extract_strided_slice %69 {offsets = [0, 0], sizes = [8, 64], strides = [1, 1]} : vector<8x256xf32> to vector<8x64xf32>
    %71 = arith.negf %70 : vector<8x64xf32>
    %72 = math.exp %71 : vector<8x64xf32>
    %cst_21 = arith.constant 1.000000e+00 : f32
    %73 = vector.broadcast %cst_21 : f32 to vector<8x64xf32>
    %74 = arith.addf %73, %72 : vector<8x64xf32>
    %75 = arith.divf %73, %74 : vector<8x64xf32>
    %76 = vector.extract_strided_slice %69 {offsets = [0, 64], sizes = [8, 64], strides = [1, 1]} : vector<8x256xf32> to vector<8x64xf32>
    %77 = arith.negf %76 : vector<8x64xf32>
    %78 = math.exp %77 : vector<8x64xf32>
    %cst_22 = arith.constant 1.000000e+00 : f32
    %79 = vector.broadcast %cst_22 : f32 to vector<8x64xf32>
    %80 = arith.addf %79, %78 : vector<8x64xf32>
    %81 = arith.divf %79, %80 : vector<8x64xf32>
    %82 = vector.extract_strided_slice %69 {offsets = [0, 128], sizes = [8, 64], strides = [1, 1]} : vector<8x256xf32> to vector<8x64xf32>
    %83 = math.tanh %82 : vector<8x64xf32>
    %84 = vector.extract_strided_slice %69 {offsets = [0, 192], sizes = [8, 64], strides = [1, 1]} : vector<8x256xf32> to vector<8x64xf32>
    %85 = arith.negf %84 : vector<8x64xf32>
    %86 = math.exp %85 : vector<8x64xf32>
    %cst_23 = arith.constant 1.000000e+00 : f32
    %87 = vector.broadcast %cst_23 : f32 to vector<8x64xf32>
    %88 = arith.addf %87, %86 : vector<8x64xf32>
    %89 = arith.divf %87, %88 : vector<8x64xf32>
    %90 = arith.mulf %81, %63 : vector<8x64xf32>
    %91 = arith.mulf %75, %83 : vector<8x64xf32>
    %92 = arith.addf %90, %91 : vector<8x64xf32>
    %93 = math.tanh %92 : vector<8x64xf32>
    %94 = arith.mulf %89, %93 : vector<8x64xf32>
    %c16 = arith.constant 16 : index
    %c0_24 = arith.constant 0 : index
    %95 = vector.load %arg16[%c16, %c0_24] : memref<64x64xf32, #tpu.memory_space<vmem>>, vector<8x64xf32>
    tpu.vector_store %arg16[%c16, %c0_24], %94 {strides = array<i32>} : memref<64x64xf32, #tpu.memory_space<vmem>>, vector<8x64xf32>,
    %96 = vector.extract_strided_slice %5 {offsets = [24, 0], sizes = [8, 256], strides = [1, 1]} : vector<64x256xf32> to vector<8x256xf32>
    %cst_25 = arith.constant dense<0.000000e+00> : vector<8x256xf32>
    %97 = tpu.matmul %94, %6, %cst_25 {dimension_numbers = #tpu.dot_dimension_numbers<[1], [0], [0], [1], [0, 0, 1, 1], [], []>} : vector<8x64xf32>, vector<64x256xf32>, vector<8x256xf32> -> vector<8x256xf32>
    %98 = arith.addf %96, %97 : vector<8x256xf32>
    %99 = vector.extract_strided_slice %98 {offsets = [0, 0], sizes = [8, 64], strides = [1, 1]} : vector<8x256xf32> to vector<8x64xf32>
    %100 = arith.negf %99 : vector<8x64xf32>
    %101 = math.exp %100 : vector<8x64xf32>
    %cst_26 = arith.constant 1.000000e+00 : f32
    %102 = vector.broadcast %cst_26 : f32 to vector<8x64xf32>
    %103 = arith.addf %102, %101 : vector<8x64xf32>
    %104 = arith.divf %102, %103 : vector<8x64xf32>
    %105 = vector.extract_strided_slice %98 {offsets = [0, 64], sizes = [8, 64], strides = [1, 1]} : vector<8x256xf32> to vector<8x64xf32>
    %106 = arith.negf %105 : vector<8x64xf32>
    %107 = math.exp %106 : vector<8x64xf32>
    %cst_27 = arith.constant 1.000000e+00 : f32
    %108 = vector.broadcast %cst_27 : f32 to vector<8x64xf32>
    %109 = arith.addf %108, %107 : vector<8x64xf32>
    %110 = arith.divf %108, %109 : vector<8x64xf32>
    %111 = vector.extract_strided_slice %98 {offsets = [0, 128], sizes = [8, 64], strides = [1, 1]} : vector<8x256xf32> to vector<8x64xf32>
    %112 = math.tanh %111 : vector<8x64xf32>
    %113 = vector.extract_strided_slice %98 {offsets = [0, 192], sizes = [8, 64], strides = [1, 1]} : vector<8x256xf32> to vector<8x64xf32>
    %114 = arith.negf %113 : vector<8x64xf32>
    %115 = math.exp %114 : vector<8x64xf32>
    %cst_28 = arith.constant 1.000000e+00 : f32
    %116 = vector.broadcast %cst_28 : f32 to vector<8x64xf32>
    %117 = arith.addf %116, %115 : vector<8x64xf32>
    %118 = arith.divf %116, %117 : vector<8x64xf32>
    %119 = arith.mulf %110, %92 : vector<8x64xf32>
    %120 = arith.mulf %104, %112 : vector<8x64xf32>
    %121 = arith.addf %119, %120 : vector<8x64xf32>
    %122 = math.tanh %121 : vector<8x64xf32>
    %123 = arith.mulf %118, %122 : vector<8x64xf32>
    %c24 = arith.constant 24 : index
    %c0_29 = arith.constant 0 : index
    %124 = vector.load %arg16[%c24, %c0_29] : memref<64x64xf32, #tpu.memory_space<vmem>>, vector<8x64xf32>
    tpu.vector_store %arg16[%c24, %c0_29], %123 {strides = array<i32>} : memref<64x64xf32, #tpu.memory_space<vmem>>, vector<8x64xf32>,
    %125 = vector.extract_strided_slice %5 {offsets = [32, 0], sizes = [8, 256], strides = [1, 1]} : vector<64x256xf32> to vector<8x256xf32>
    %cst_30 = arith.constant dense<0.000000e+00> : vector<8x256xf32>
    %126 = tpu.matmul %123, %6, %cst_30 {dimension_numbers = #tpu.dot_dimension_numbers<[1], [0], [0], [1], [0, 0, 1, 1], [], []>} : vector<8x64xf32>, vector<64x256xf32>, vector<8x256xf32> -> vector<8x256xf32>
    %127 = arith.addf %125, %126 : vector<8x256xf32>
    %128 = vector.extract_strided_slice %127 {offsets = [0, 0], sizes = [8, 64], strides = [1, 1]} : vector<8x256xf32> to vector<8x64xf32>
    %129 = arith.negf %128 : vector<8x64xf32>
    %130 = math.exp %129 : vector<8x64xf32>
    %cst_31 = arith.constant 1.000000e+00 : f32
    %131 = vector.broadcast %cst_31 : f32 to vector<8x64xf32>
    %132 = arith.addf %131, %130 : vector<8x64xf32>
    %133 = arith.divf %131, %132 : vector<8x64xf32>
    %134 = vector.extract_strided_slice %127 {offsets = [0, 64], sizes = [8, 64], strides = [1, 1]} : vector<8x256xf32> to vector<8x64xf32>
    %135 = arith.negf %134 : vector<8x64xf32>
    %136 = math.exp %135 : vector<8x64xf32>
    %cst_32 = arith.constant 1.000000e+00 : f32
    %137 = vector.broadcast %cst_32 : f32 to vector<8x64xf32>
    %138 = arith.addf %137, %136 : vector<8x64xf32>
    %139 = arith.divf %137, %138 : vector<8x64xf32>
    %140 = vector.extract_strided_slice %127 {offsets = [0, 128], sizes = [8, 64], strides = [1, 1]} : vector<8x256xf32> to vector<8x64xf32>
    %141 = math.tanh %140 : vector<8x64xf32>
    %142 = vector.extract_strided_slice %127 {offsets = [0, 192], sizes = [8, 64], strides = [1, 1]} : vector<8x256xf32> to vector<8x64xf32>
    %143 = arith.negf %142 : vector<8x64xf32>
    %144 = math.exp %143 : vector<8x64xf32>
    %cst_33 = arith.constant 1.000000e+00 : f32
    %145 = vector.broadcast %cst_33 : f32 to vector<8x64xf32>
    %146 = arith.addf %145, %144 : vector<8x64xf32>
    %147 = arith.divf %145, %146 : vector<8x64xf32>
    %148 = arith.mulf %139, %121 : vector<8x64xf32>
    %149 = arith.mulf %133, %141 : vector<8x64xf32>
    %150 = arith.addf %148, %149 : vector<8x64xf32>
    %151 = math.tanh %150 : vector<8x64xf32>
    %152 = arith.mulf %147, %151 : vector<8x64xf32>
    %c32 = arith.constant 32 : index
    %c0_34 = arith.constant 0 : index
    %153 = vector.load %arg16[%c32, %c0_34] : memref<64x64xf32, #tpu.memory_space<vmem>>, vector<8x64xf32>
    tpu.vector_store %arg16[%c32, %c0_34], %152 {strides = array<i32>} : memref<64x64xf32, #tpu.memory_space<vmem>>, vector<8x64xf32>,
    %154 = vector.extract_strided_slice %5 {offsets = [40, 0], sizes = [8, 256], strides = [1, 1]} : vector<64x256xf32> to vector<8x256xf32>
    %cst_35 = arith.constant dense<0.000000e+00> : vector<8x256xf32>
    %155 = tpu.matmul %152, %6, %cst_35 {dimension_numbers = #tpu.dot_dimension_numbers<[1], [0], [0], [1], [0, 0, 1, 1], [], []>} : vector<8x64xf32>, vector<64x256xf32>, vector<8x256xf32> -> vector<8x256xf32>
    %156 = arith.addf %154, %155 : vector<8x256xf32>
    %157 = vector.extract_strided_slice %156 {offsets = [0, 0], sizes = [8, 64], strides = [1, 1]} : vector<8x256xf32> to vector<8x64xf32>
    %158 = arith.negf %157 : vector<8x64xf32>
    %159 = math.exp %158 : vector<8x64xf32>
    %cst_36 = arith.constant 1.000000e+00 : f32
    %160 = vector.broadcast %cst_36 : f32 to vector<8x64xf32>
    %161 = arith.addf %160, %159 : vector<8x64xf32>
    %162 = arith.divf %160, %161 : vector<8x64xf32>
    %163 = vector.extract_strided_slice %156 {offsets = [0, 64], sizes = [8, 64], strides = [1, 1]} : vector<8x256xf32> to vector<8x64xf32>
    %164 = arith.negf %163 : vector<8x64xf32>
    %165 = math.exp %164 : vector<8x64xf32>
    %cst_37 = arith.constant 1.000000e+00 : f32
    %166 = vector.broadcast %cst_37 : f32 to vector<8x64xf32>
    %167 = arith.addf %166, %165 : vector<8x64xf32>
    %168 = arith.divf %166, %167 : vector<8x64xf32>
    %169 = vector.extract_strided_slice %156 {offsets = [0, 128], sizes = [8, 64], strides = [1, 1]} : vector<8x256xf32> to vector<8x64xf32>
    %170 = math.tanh %169 : vector<8x64xf32>
    %171 = vector.extract_strided_slice %156 {offsets = [0, 192], sizes = [8, 64], strides = [1, 1]} : vector<8x256xf32> to vector<8x64xf32>
    %172 = arith.negf %171 : vector<8x64xf32>
    %173 = math.exp %172 : vector<8x64xf32>
    %cst_38 = arith.constant 1.000000e+00 : f32
    %174 = vector.broadcast %cst_38 : f32 to vector<8x64xf32>
    %175 = arith.addf %174, %173 : vector<8x64xf32>
    %176 = arith.divf %174, %175 : vector<8x64xf32>
    %177 = arith.mulf %168, %150 : vector<8x64xf32>
    %178 = arith.mulf %162, %170 : vector<8x64xf32>
    %179 = arith.addf %177, %178 : vector<8x64xf32>
    %180 = math.tanh %179 : vector<8x64xf32>
    %181 = arith.mulf %176, %180 : vector<8x64xf32>
    %c40 = arith.constant 40 : index
    %c0_39 = arith.constant 0 : index
    %182 = vector.load %arg16[%c40, %c0_39] : memref<64x64xf32, #tpu.memory_space<vmem>>, vector<8x64xf32>
    tpu.vector_store %arg16[%c40, %c0_39], %181 {strides = array<i32>} : memref<64x64xf32, #tpu.memory_space<vmem>>, vector<8x64xf32>,
    %183 = vector.extract_strided_slice %5 {offsets = [48, 0], sizes = [8, 256], strides = [1, 1]} : vector<64x256xf32> to vector<8x256xf32>
    %cst_40 = arith.constant dense<0.000000e+00> : vector<8x256xf32>
    %184 = tpu.matmul %181, %6, %cst_40 {dimension_numbers = #tpu.dot_dimension_numbers<[1], [0], [0], [1], [0, 0, 1, 1], [], []>} : vector<8x64xf32>, vector<64x256xf32>, vector<8x256xf32> -> vector<8x256xf32>
    %185 = arith.addf %183, %184 : vector<8x256xf32>
    %186 = vector.extract_strided_slice %185 {offsets = [0, 0], sizes = [8, 64], strides = [1, 1]} : vector<8x256xf32> to vector<8x64xf32>
    %187 = arith.negf %186 : vector<8x64xf32>
    %188 = math.exp %187 : vector<8x64xf32>
    %cst_41 = arith.constant 1.000000e+00 : f32
    %189 = vector.broadcast %cst_41 : f32 to vector<8x64xf32>
    %190 = arith.addf %189, %188 : vector<8x64xf32>
    %191 = arith.divf %189, %190 : vector<8x64xf32>
    %192 = vector.extract_strided_slice %185 {offsets = [0, 64], sizes = [8, 64], strides = [1, 1]} : vector<8x256xf32> to vector<8x64xf32>
    %193 = arith.negf %192 : vector<8x64xf32>
    %194 = math.exp %193 : vector<8x64xf32>
    %cst_42 = arith.constant 1.000000e+00 : f32
    %195 = vector.broadcast %cst_42 : f32 to vector<8x64xf32>
    %196 = arith.addf %195, %194 : vector<8x64xf32>
    %197 = arith.divf %195, %196 : vector<8x64xf32>
    %198 = vector.extract_strided_slice %185 {offsets = [0, 128], sizes = [8, 64], strides = [1, 1]} : vector<8x256xf32> to vector<8x64xf32>
    %199 = math.tanh %198 : vector<8x64xf32>
    %200 = vector.extract_strided_slice %185 {offsets = [0, 192], sizes = [8, 64], strides = [1, 1]} : vector<8x256xf32> to vector<8x64xf32>
    %201 = arith.negf %200 : vector<8x64xf32>
    %202 = math.exp %201 : vector<8x64xf32>
    %cst_43 = arith.constant 1.000000e+00 : f32
    %203 = vector.broadcast %cst_43 : f32 to vector<8x64xf32>
    %204 = arith.addf %203, %202 : vector<8x64xf32>
    %205 = arith.divf %203, %204 : vector<8x64xf32>
    %206 = arith.mulf %197, %179 : vector<8x64xf32>
    %207 = arith.mulf %191, %199 : vector<8x64xf32>
    %208 = arith.addf %206, %207 : vector<8x64xf32>
    %209 = math.tanh %208 : vector<8x64xf32>
    %210 = arith.mulf %205, %209 : vector<8x64xf32>
    %c48 = arith.constant 48 : index
    %c0_44 = arith.constant 0 : index
    %211 = vector.load %arg16[%c48, %c0_44] : memref<64x64xf32, #tpu.memory_space<vmem>>, vector<8x64xf32>
    tpu.vector_store %arg16[%c48, %c0_44], %210 {strides = array<i32>} : memref<64x64xf32, #tpu.memory_space<vmem>>, vector<8x64xf32>,
    %212 = vector.extract_strided_slice %5 {offsets = [56, 0], sizes = [8, 256], strides = [1, 1]} : vector<64x256xf32> to vector<8x256xf32>
    %cst_45 = arith.constant dense<0.000000e+00> : vector<8x256xf32>
    %213 = tpu.matmul %210, %6, %cst_45 {dimension_numbers = #tpu.dot_dimension_numbers<[1], [0], [0], [1], [0, 0, 1, 1], [], []>} : vector<8x64xf32>, vector<64x256xf32>, vector<8x256xf32> -> vector<8x256xf32>
    %214 = arith.addf %212, %213 : vector<8x256xf32>
    %215 = vector.extract_strided_slice %214 {offsets = [0, 0], sizes = [8, 64], strides = [1, 1]} : vector<8x256xf32> to vector<8x64xf32>
    %216 = arith.negf %215 : vector<8x64xf32>
    %217 = math.exp %216 : vector<8x64xf32>
    %cst_46 = arith.constant 1.000000e+00 : f32
    %218 = vector.broadcast %cst_46 : f32 to vector<8x64xf32>
    %219 = arith.addf %218, %217 : vector<8x64xf32>
    %220 = arith.divf %218, %219 : vector<8x64xf32>
    %221 = vector.extract_strided_slice %214 {offsets = [0, 64], sizes = [8, 64], strides = [1, 1]} : vector<8x256xf32> to vector<8x64xf32>
    %222 = arith.negf %221 : vector<8x64xf32>
    %223 = math.exp %222 : vector<8x64xf32>
    %cst_47 = arith.constant 1.000000e+00 : f32
    %224 = vector.broadcast %cst_47 : f32 to vector<8x64xf32>
    %225 = arith.addf %224, %223 : vector<8x64xf32>
    %226 = arith.divf %224, %225 : vector<8x64xf32>
    %227 = vector.extract_strided_slice %214 {offsets = [0, 128], sizes = [8, 64], strides = [1, 1]} : vector<8x256xf32> to vector<8x64xf32>
    %228 = math.tanh %227 : vector<8x64xf32>
    %229 = vector.extract_strided_slice %214 {offsets = [0, 192], sizes = [8, 64], strides = [1, 1]} : vector<8x256xf32> to vector<8x64xf32>
    %230 = arith.negf %229 : vector<8x64xf32>
    %231 = math.exp %230 : vector<8x64xf32>
    %cst_48 = arith.constant 1.000000e+00 : f32
    %232 = vector.broadcast %cst_48 : f32 to vector<8x64xf32>
    %233 = arith.addf %232, %231 : vector<8x64xf32>
    %234 = arith.divf %232, %233 : vector<8x64xf32>
    %235 = arith.mulf %226, %208 : vector<8x64xf32>
    %236 = arith.mulf %220, %228 : vector<8x64xf32>
    %237 = arith.addf %235, %236 : vector<8x64xf32>
    %238 = math.tanh %237 : vector<8x64xf32>
    %239 = arith.mulf %234, %238 : vector<8x64xf32>
    %c56 = arith.constant 56 : index
    %c0_49 = arith.constant 0 : index
    %240 = vector.load %arg16[%c56, %c0_49] : memref<64x64xf32, #tpu.memory_space<vmem>>, vector<8x64xf32>
    tpu.vector_store %arg16[%c56, %c0_49], %239 {strides = array<i32>} : memref<64x64xf32, #tpu.memory_space<vmem>>, vector<8x64xf32>,
    %c0_50 = arith.constant 0 : index
    %c0_51 = arith.constant 0 : index
    %241 = vector.load %arg16[%c0_50, %c0_51] : memref<64x64xf32, #tpu.memory_space<vmem>>, vector<64x64xf32>
    %c0_52 = arith.constant 0 : index
    %c0_53 = arith.constant 0 : index
    %242 = vector.load %arg4[%c0_52, %c0_53] : memref<64x128xf32, #tpu.memory_space<vmem>>, vector<64x128xf32>
    %cst_54 = arith.constant dense<0.000000e+00> : vector<64x128xf32>
    %243 = tpu.matmul %241, %242, %cst_54 {dimension_numbers = #tpu.dot_dimension_numbers<[1], [0], [0], [1], [0, 0, 1, 1], [], []>} : vector<64x64xf32>, vector<64x128xf32>, vector<64x128xf32> -> vector<64x128xf32>
    %c0_55 = arith.constant 0 : index
    %c0_56 = arith.constant 0 : index
    %244 = vector.load %arg6[%c0_55, %c0_56] : memref<1x128xf32, #tpu.memory_space<vmem>>, vector<1x128xf32>
    %245 = vector.broadcast %244 : vector<1x128xf32> to vector<64x128xf32>
    %246 = arith.addf %243, %245 : vector<64x128xf32>
    %c0_57 = arith.constant 0 : index
    %c0_58 = arith.constant 0 : index
    %247 = vector.load %arg5[%c0_57, %c0_58] : memref<32x128xf32, #tpu.memory_space<vmem>>, vector<32x128xf32>
    %cst_59 = arith.constant 0.000000e+00 : f32
    %248 = vector.broadcast %cst_59 : f32 to vector<8x32xf32>
    %cst_60 = arith.constant 0.000000e+00 : f32
    %249 = vector.broadcast %cst_60 : f32 to vector<8x32xf32>
    %250 = vector.extract_strided_slice %246 {offsets = [0, 0], sizes = [8, 128], strides = [1, 1]} : vector<64x128xf32> to vector<8x128xf32>
    %cst_61 = arith.constant dense<0.000000e+00> : vector<8x128xf32>
    %251 = tpu.matmul %248, %247, %cst_61 {dimension_numbers = #tpu.dot_dimension_numbers<[1], [0], [0], [1], [0, 0, 1, 1], [], []>} : vector<8x32xf32>, vector<32x128xf32>, vector<8x128xf32> -> vector<8x128xf32>
    %252 = arith.addf %250, %251 : vector<8x128xf32>
    %253 = vector.extract_strided_slice %252 {offsets = [0, 0], sizes = [8, 32], strides = [1, 1]} : vector<8x128xf32> to vector<8x32xf32>
    %254 = arith.negf %253 : vector<8x32xf32>
    %255 = math.exp %254 : vector<8x32xf32>
    %cst_62 = arith.constant 1.000000e+00 : f32
    %256 = vector.broadcast %cst_62 : f32 to vector<8x32xf32>
    %257 = arith.addf %256, %255 : vector<8x32xf32>
    %258 = arith.divf %256, %257 : vector<8x32xf32>
    %259 = vector.extract_strided_slice %252 {offsets = [0, 32], sizes = [8, 32], strides = [1, 1]} : vector<8x128xf32> to vector<8x32xf32>
    %260 = arith.negf %259 : vector<8x32xf32>
    %261 = math.exp %260 : vector<8x32xf32>
    %cst_63 = arith.constant 1.000000e+00 : f32
    %262 = vector.broadcast %cst_63 : f32 to vector<8x32xf32>
    %263 = arith.addf %262, %261 : vector<8x32xf32>
    %264 = arith.divf %262, %263 : vector<8x32xf32>
    %265 = vector.extract_strided_slice %252 {offsets = [0, 64], sizes = [8, 32], strides = [1, 1]} : vector<8x128xf32> to vector<8x32xf32>
    %266 = math.tanh %265 : vector<8x32xf32>
    %267 = vector.extract_strided_slice %252 {offsets = [0, 96], sizes = [8, 32], strides = [1, 1]} : vector<8x128xf32> to vector<8x32xf32>
    %268 = arith.negf %267 : vector<8x32xf32>
    %269 = math.exp %268 : vector<8x32xf32>
    %cst_64 = arith.constant 1.000000e+00 : f32
    %270 = vector.broadcast %cst_64 : f32 to vector<8x32xf32>
    %271 = arith.addf %270, %269 : vector<8x32xf32>
    %272 = arith.divf %270, %271 : vector<8x32xf32>
    %273 = arith.mulf %264, %249 : vector<8x32xf32>
    %274 = arith.mulf %258, %266 : vector<8x32xf32>
    %275 = arith.addf %273, %274 : vector<8x32xf32>
    %276 = math.tanh %275 : vector<8x32xf32>
    %277 = arith.mulf %272, %276 : vector<8x32xf32>
    %278 = vector.extract_strided_slice %246 {offsets = [8, 0], sizes = [8, 128], strides = [1, 1]} : vector<64x128xf32> to vector<8x128xf32>
    %cst_65 = arith.constant dense<0.000000e+00> : vector<8x128xf32>
    %279 = tpu.matmul %277, %247, %cst_65 {dimension_numbers = #tpu.dot_dimension_numbers<[1], [0], [0], [1], [0, 0, 1, 1], [], []>} : vector<8x32xf32>, vector<32x128xf32>, vector<8x128xf32> -> vector<8x128xf32>
    %280 = arith.addf %278, %279 : vector<8x128xf32>
    %281 = vector.extract_strided_slice %280 {offsets = [0, 0], sizes = [8, 32], strides = [1, 1]} : vector<8x128xf32> to vector<8x32xf32>
    %282 = arith.negf %281 : vector<8x32xf32>
    %283 = math.exp %282 : vector<8x32xf32>
    %cst_66 = arith.constant 1.000000e+00 : f32
    %284 = vector.broadcast %cst_66 : f32 to vector<8x32xf32>
    %285 = arith.addf %284, %283 : vector<8x32xf32>
    %286 = arith.divf %284, %285 : vector<8x32xf32>
    %287 = vector.extract_strided_slice %280 {offsets = [0, 32], sizes = [8, 32], strides = [1, 1]} : vector<8x128xf32> to vector<8x32xf32>
    %288 = arith.negf %287 : vector<8x32xf32>
    %289 = math.exp %288 : vector<8x32xf32>
    %cst_67 = arith.constant 1.000000e+00 : f32
    %290 = vector.broadcast %cst_67 : f32 to vector<8x32xf32>
    %291 = arith.addf %290, %289 : vector<8x32xf32>
    %292 = arith.divf %290, %291 : vector<8x32xf32>
    %293 = vector.extract_strided_slice %280 {offsets = [0, 64], sizes = [8, 32], strides = [1, 1]} : vector<8x128xf32> to vector<8x32xf32>
    %294 = math.tanh %293 : vector<8x32xf32>
    %295 = vector.extract_strided_slice %280 {offsets = [0, 96], sizes = [8, 32], strides = [1, 1]} : vector<8x128xf32> to vector<8x32xf32>
    %296 = arith.negf %295 : vector<8x32xf32>
    %297 = math.exp %296 : vector<8x32xf32>
    %cst_68 = arith.constant 1.000000e+00 : f32
    %298 = vector.broadcast %cst_68 : f32 to vector<8x32xf32>
    %299 = arith.addf %298, %297 : vector<8x32xf32>
    %300 = arith.divf %298, %299 : vector<8x32xf32>
    %301 = arith.mulf %292, %275 : vector<8x32xf32>
    %302 = arith.mulf %286, %294 : vector<8x32xf32>
    %303 = arith.addf %301, %302 : vector<8x32xf32>
    %304 = math.tanh %303 : vector<8x32xf32>
    %305 = arith.mulf %300, %304 : vector<8x32xf32>
    %306 = vector.extract_strided_slice %246 {offsets = [16, 0], sizes = [8, 128], strides = [1, 1]} : vector<64x128xf32> to vector<8x128xf32>
    %cst_69 = arith.constant dense<0.000000e+00> : vector<8x128xf32>
    %307 = tpu.matmul %305, %247, %cst_69 {dimension_numbers = #tpu.dot_dimension_numbers<[1], [0], [0], [1], [0, 0, 1, 1], [], []>} : vector<8x32xf32>, vector<32x128xf32>, vector<8x128xf32> -> vector<8x128xf32>
    %308 = arith.addf %306, %307 : vector<8x128xf32>
    %309 = vector.extract_strided_slice %308 {offsets = [0, 0], sizes = [8, 32], strides = [1, 1]} : vector<8x128xf32> to vector<8x32xf32>
    %310 = arith.negf %309 : vector<8x32xf32>
    %311 = math.exp %310 : vector<8x32xf32>
    %cst_70 = arith.constant 1.000000e+00 : f32
    %312 = vector.broadcast %cst_70 : f32 to vector<8x32xf32>
    %313 = arith.addf %312, %311 : vector<8x32xf32>
    %314 = arith.divf %312, %313 : vector<8x32xf32>
    %315 = vector.extract_strided_slice %308 {offsets = [0, 32], sizes = [8, 32], strides = [1, 1]} : vector<8x128xf32> to vector<8x32xf32>
    %316 = arith.negf %315 : vector<8x32xf32>
    %317 = math.exp %316 : vector<8x32xf32>
    %cst_71 = arith.constant 1.000000e+00 : f32
    %318 = vector.broadcast %cst_71 : f32 to vector<8x32xf32>
    %319 = arith.addf %318, %317 : vector<8x32xf32>
    %320 = arith.divf %318, %319 : vector<8x32xf32>
    %321 = vector.extract_strided_slice %308 {offsets = [0, 64], sizes = [8, 32], strides = [1, 1]} : vector<8x128xf32> to vector<8x32xf32>
    %322 = math.tanh %321 : vector<8x32xf32>
    %323 = vector.extract_strided_slice %308 {offsets = [0, 96], sizes = [8, 32], strides = [1, 1]} : vector<8x128xf32> to vector<8x32xf32>
    %324 = arith.negf %323 : vector<8x32xf32>
    %325 = math.exp %324 : vector<8x32xf32>
    %cst_72 = arith.constant 1.000000e+00 : f32
    %326 = vector.broadcast %cst_72 : f32 to vector<8x32xf32>
    %327 = arith.addf %326, %325 : vector<8x32xf32>
    %328 = arith.divf %326, %327 : vector<8x32xf32>
    %329 = arith.mulf %320, %303 : vector<8x32xf32>
    %330 = arith.mulf %314, %322 : vector<8x32xf32>
    %331 = arith.addf %329, %330 : vector<8x32xf32>
    %332 = math.tanh %331 : vector<8x32xf32>
    %333 = arith.mulf %328, %332 : vector<8x32xf32>
    %334 = vector.extract_strided_slice %246 {offsets = [24, 0], sizes = [8, 128], strides = [1, 1]} : vector<64x128xf32> to vector<8x128xf32>
    %cst_73 = arith.constant dense<0.000000e+00> : vector<8x128xf32>
    %335 = tpu.matmul %333, %247, %cst_73 {dimension_numbers = #tpu.dot_dimension_numbers<[1], [0], [0], [1], [0, 0, 1, 1], [], []>} : vector<8x32xf32>, vector<32x128xf32>, vector<8x128xf32> -> vector<8x128xf32>
    %336 = arith.addf %334, %335 : vector<8x128xf32>
    %337 = vector.extract_strided_slice %336 {offsets = [0, 0], sizes = [8, 32], strides = [1, 1]} : vector<8x128xf32> to vector<8x32xf32>
    %338 = arith.negf %337 : vector<8x32xf32>
    %339 = math.exp %338 : vector<8x32xf32>
    %cst_74 = arith.constant 1.000000e+00 : f32
    %340 = vector.broadcast %cst_74 : f32 to vector<8x32xf32>
    %341 = arith.addf %340, %339 : vector<8x32xf32>
    %342 = arith.divf %340, %341 : vector<8x32xf32>
    %343 = vector.extract_strided_slice %336 {offsets = [0, 32], sizes = [8, 32], strides = [1, 1]} : vector<8x128xf32> to vector<8x32xf32>
    %344 = arith.negf %343 : vector<8x32xf32>
    %345 = math.exp %344 : vector<8x32xf32>
    %cst_75 = arith.constant 1.000000e+00 : f32
    %346 = vector.broadcast %cst_75 : f32 to vector<8x32xf32>
    %347 = arith.addf %346, %345 : vector<8x32xf32>
    %348 = arith.divf %346, %347 : vector<8x32xf32>
    %349 = vector.extract_strided_slice %336 {offsets = [0, 64], sizes = [8, 32], strides = [1, 1]} : vector<8x128xf32> to vector<8x32xf32>
    %350 = math.tanh %349 : vector<8x32xf32>
    %351 = vector.extract_strided_slice %336 {offsets = [0, 96], sizes = [8, 32], strides = [1, 1]} : vector<8x128xf32> to vector<8x32xf32>
    %352 = arith.negf %351 : vector<8x32xf32>
    %353 = math.exp %352 : vector<8x32xf32>
    %cst_76 = arith.constant 1.000000e+00 : f32
    %354 = vector.broadcast %cst_76 : f32 to vector<8x32xf32>
    %355 = arith.addf %354, %353 : vector<8x32xf32>
    %356 = arith.divf %354, %355 : vector<8x32xf32>
    %357 = arith.mulf %348, %331 : vector<8x32xf32>
    %358 = arith.mulf %342, %350 : vector<8x32xf32>
    %359 = arith.addf %357, %358 : vector<8x32xf32>
    %360 = math.tanh %359 : vector<8x32xf32>
    %361 = arith.mulf %356, %360 : vector<8x32xf32>
    %362 = vector.extract_strided_slice %246 {offsets = [32, 0], sizes = [8, 128], strides = [1, 1]} : vector<64x128xf32> to vector<8x128xf32>
    %cst_77 = arith.constant dense<0.000000e+00> : vector<8x128xf32>
    %363 = tpu.matmul %361, %247, %cst_77 {dimension_numbers = #tpu.dot_dimension_numbers<[1], [0], [0], [1], [0, 0, 1, 1], [], []>} : vector<8x32xf32>, vector<32x128xf32>, vector<8x128xf32> -> vector<8x128xf32>
    %364 = arith.addf %362, %363 : vector<8x128xf32>
    %365 = vector.extract_strided_slice %364 {offsets = [0, 0], sizes = [8, 32], strides = [1, 1]} : vector<8x128xf32> to vector<8x32xf32>
    %366 = arith.negf %365 : vector<8x32xf32>
    %367 = math.exp %366 : vector<8x32xf32>
    %cst_78 = arith.constant 1.000000e+00 : f32
    %368 = vector.broadcast %cst_78 : f32 to vector<8x32xf32>
    %369 = arith.addf %368, %367 : vector<8x32xf32>
    %370 = arith.divf %368, %369 : vector<8x32xf32>
    %371 = vector.extract_strided_slice %364 {offsets = [0, 32], sizes = [8, 32], strides = [1, 1]} : vector<8x128xf32> to vector<8x32xf32>
    %372 = arith.negf %371 : vector<8x32xf32>
    %373 = math.exp %372 : vector<8x32xf32>
    %cst_79 = arith.constant 1.000000e+00 : f32
    %374 = vector.broadcast %cst_79 : f32 to vector<8x32xf32>
    %375 = arith.addf %374, %373 : vector<8x32xf32>
    %376 = arith.divf %374, %375 : vector<8x32xf32>
    %377 = vector.extract_strided_slice %364 {offsets = [0, 64], sizes = [8, 32], strides = [1, 1]} : vector<8x128xf32> to vector<8x32xf32>
    %378 = math.tanh %377 : vector<8x32xf32>
    %379 = vector.extract_strided_slice %364 {offsets = [0, 96], sizes = [8, 32], strides = [1, 1]} : vector<8x128xf32> to vector<8x32xf32>
    %380 = arith.negf %379 : vector<8x32xf32>
    %381 = math.exp %380 : vector<8x32xf32>
    %cst_80 = arith.constant 1.000000e+00 : f32
    %382 = vector.broadcast %cst_80 : f32 to vector<8x32xf32>
    %383 = arith.addf %382, %381 : vector<8x32xf32>
    %384 = arith.divf %382, %383 : vector<8x32xf32>
    %385 = arith.mulf %376, %359 : vector<8x32xf32>
    %386 = arith.mulf %370, %378 : vector<8x32xf32>
    %387 = arith.addf %385, %386 : vector<8x32xf32>
    %388 = math.tanh %387 : vector<8x32xf32>
    %389 = arith.mulf %384, %388 : vector<8x32xf32>
    %390 = vector.extract_strided_slice %246 {offsets = [40, 0], sizes = [8, 128], strides = [1, 1]} : vector<64x128xf32> to vector<8x128xf32>
    %cst_81 = arith.constant dense<0.000000e+00> : vector<8x128xf32>
    %391 = tpu.matmul %389, %247, %cst_81 {dimension_numbers = #tpu.dot_dimension_numbers<[1], [0], [0], [1], [0, 0, 1, 1], [], []>} : vector<8x32xf32>, vector<32x128xf32>, vector<8x128xf32> -> vector<8x128xf32>
    %392 = arith.addf %390, %391 : vector<8x128xf32>
    %393 = vector.extract_strided_slice %392 {offsets = [0, 0], sizes = [8, 32], strides = [1, 1]} : vector<8x128xf32> to vector<8x32xf32>
    %394 = arith.negf %393 : vector<8x32xf32>
    %395 = math.exp %394 : vector<8x32xf32>
    %cst_82 = arith.constant 1.000000e+00 : f32
    %396 = vector.broadcast %cst_82 : f32 to vector<8x32xf32>
    %397 = arith.addf %396, %395 : vector<8x32xf32>
    %398 = arith.divf %396, %397 : vector<8x32xf32>
    %399 = vector.extract_strided_slice %392 {offsets = [0, 32], sizes = [8, 32], strides = [1, 1]} : vector<8x128xf32> to vector<8x32xf32>
    %400 = arith.negf %399 : vector<8x32xf32>
    %401 = math.exp %400 : vector<8x32xf32>
    %cst_83 = arith.constant 1.000000e+00 : f32
    %402 = vector.broadcast %cst_83 : f32 to vector<8x32xf32>
    %403 = arith.addf %402, %401 : vector<8x32xf32>
    %404 = arith.divf %402, %403 : vector<8x32xf32>
    %405 = vector.extract_strided_slice %392 {offsets = [0, 64], sizes = [8, 32], strides = [1, 1]} : vector<8x128xf32> to vector<8x32xf32>
    %406 = math.tanh %405 : vector<8x32xf32>
    %407 = vector.extract_strided_slice %392 {offsets = [0, 96], sizes = [8, 32], strides = [1, 1]} : vector<8x128xf32> to vector<8x32xf32>
    %408 = arith.negf %407 : vector<8x32xf32>
    %409 = math.exp %408 : vector<8x32xf32>
    %cst_84 = arith.constant 1.000000e+00 : f32
    %410 = vector.broadcast %cst_84 : f32 to vector<8x32xf32>
    %411 = arith.addf %410, %409 : vector<8x32xf32>
    %412 = arith.divf %410, %411 : vector<8x32xf32>
    %413 = arith.mulf %404, %387 : vector<8x32xf32>
    %414 = arith.mulf %398, %406 : vector<8x32xf32>
    %415 = arith.addf %413, %414 : vector<8x32xf32>
    %416 = math.tanh %415 : vector<8x32xf32>
    %417 = arith.mulf %412, %416 : vector<8x32xf32>
    %418 = vector.extract_strided_slice %246 {offsets = [48, 0], sizes = [8, 128], strides = [1, 1]} : vector<64x128xf32> to vector<8x128xf32>
    %cst_85 = arith.constant dense<0.000000e+00> : vector<8x128xf32>
    %419 = tpu.matmul %417, %247, %cst_85 {dimension_numbers = #tpu.dot_dimension_numbers<[1], [0], [0], [1], [0, 0, 1, 1], [], []>} : vector<8x32xf32>, vector<32x128xf32>, vector<8x128xf32> -> vector<8x128xf32>
    %420 = arith.addf %418, %419 : vector<8x128xf32>
    %421 = vector.extract_strided_slice %420 {offsets = [0, 0], sizes = [8, 32], strides = [1, 1]} : vector<8x128xf32> to vector<8x32xf32>
    %422 = arith.negf %421 : vector<8x32xf32>
    %423 = math.exp %422 : vector<8x32xf32>
    %cst_86 = arith.constant 1.000000e+00 : f32
    %424 = vector.broadcast %cst_86 : f32 to vector<8x32xf32>
    %425 = arith.addf %424, %423 : vector<8x32xf32>
    %426 = arith.divf %424, %425 : vector<8x32xf32>
    %427 = vector.extract_strided_slice %420 {offsets = [0, 32], sizes = [8, 32], strides = [1, 1]} : vector<8x128xf32> to vector<8x32xf32>
    %428 = arith.negf %427 : vector<8x32xf32>
    %429 = math.exp %428 : vector<8x32xf32>
    %cst_87 = arith.constant 1.000000e+00 : f32
    %430 = vector.broadcast %cst_87 : f32 to vector<8x32xf32>
    %431 = arith.addf %430, %429 : vector<8x32xf32>
    %432 = arith.divf %430, %431 : vector<8x32xf32>
    %433 = vector.extract_strided_slice %420 {offsets = [0, 64], sizes = [8, 32], strides = [1, 1]} : vector<8x128xf32> to vector<8x32xf32>
    %434 = math.tanh %433 : vector<8x32xf32>
    %435 = vector.extract_strided_slice %420 {offsets = [0, 96], sizes = [8, 32], strides = [1, 1]} : vector<8x128xf32> to vector<8x32xf32>
    %436 = arith.negf %435 : vector<8x32xf32>
    %437 = math.exp %436 : vector<8x32xf32>
    %cst_88 = arith.constant 1.000000e+00 : f32
    %438 = vector.broadcast %cst_88 : f32 to vector<8x32xf32>
    %439 = arith.addf %438, %437 : vector<8x32xf32>
    %440 = arith.divf %438, %439 : vector<8x32xf32>
    %441 = arith.mulf %432, %415 : vector<8x32xf32>
    %442 = arith.mulf %426, %434 : vector<8x32xf32>
    %443 = arith.addf %441, %442 : vector<8x32xf32>
    %444 = math.tanh %443 : vector<8x32xf32>
    %445 = arith.mulf %440, %444 : vector<8x32xf32>
    %446 = vector.extract_strided_slice %246 {offsets = [56, 0], sizes = [8, 128], strides = [1, 1]} : vector<64x128xf32> to vector<8x128xf32>
    %cst_89 = arith.constant dense<0.000000e+00> : vector<8x128xf32>
    %447 = tpu.matmul %445, %247, %cst_89 {dimension_numbers = #tpu.dot_dimension_numbers<[1], [0], [0], [1], [0, 0, 1, 1], [], []>} : vector<8x32xf32>, vector<32x128xf32>, vector<8x128xf32> -> vector<8x128xf32>
    %448 = arith.addf %446, %447 : vector<8x128xf32>
    %449 = vector.extract_strided_slice %448 {offsets = [0, 0], sizes = [8, 32], strides = [1, 1]} : vector<8x128xf32> to vector<8x32xf32>
    %450 = arith.negf %449 : vector<8x32xf32>
    %451 = math.exp %450 : vector<8x32xf32>
    %cst_90 = arith.constant 1.000000e+00 : f32
    %452 = vector.broadcast %cst_90 : f32 to vector<8x32xf32>
    %453 = arith.addf %452, %451 : vector<8x32xf32>
    %454 = arith.divf %452, %453 : vector<8x32xf32>
    %455 = vector.extract_strided_slice %448 {offsets = [0, 32], sizes = [8, 32], strides = [1, 1]} : vector<8x128xf32> to vector<8x32xf32>
    %456 = arith.negf %455 : vector<8x32xf32>
    %457 = math.exp %456 : vector<8x32xf32>
    %cst_91 = arith.constant 1.000000e+00 : f32
    %458 = vector.broadcast %cst_91 : f32 to vector<8x32xf32>
    %459 = arith.addf %458, %457 : vector<8x32xf32>
    %460 = arith.divf %458, %459 : vector<8x32xf32>
    %461 = vector.extract_strided_slice %448 {offsets = [0, 64], sizes = [8, 32], strides = [1, 1]} : vector<8x128xf32> to vector<8x32xf32>
    %462 = math.tanh %461 : vector<8x32xf32>
    %463 = vector.extract_strided_slice %448 {offsets = [0, 96], sizes = [8, 32], strides = [1, 1]} : vector<8x128xf32> to vector<8x32xf32>
    %464 = arith.negf %463 : vector<8x32xf32>
    %465 = math.exp %464 : vector<8x32xf32>
    %cst_92 = arith.constant 1.000000e+00 : f32
    %466 = vector.broadcast %cst_92 : f32 to vector<8x32xf32>
    %467 = arith.addf %466, %465 : vector<8x32xf32>
    %468 = arith.divf %466, %467 : vector<8x32xf32>
    %469 = arith.mulf %460, %443 : vector<8x32xf32>
    %470 = arith.mulf %454, %462 : vector<8x32xf32>
    %471 = arith.addf %469, %470 : vector<8x32xf32>
    %472 = math.tanh %471 : vector<8x32xf32>
    %473 = arith.mulf %468, %472 : vector<8x32xf32>
    %c0_93 = arith.constant 0 : index
    %c0_94 = arith.constant 0 : index
    %474 = vector.load %arg7[%c0_93, %c0_94] : memref<32x128xf32, #tpu.memory_space<vmem>>, vector<32x128xf32>
    %cst_95 = arith.constant dense<0.000000e+00> : vector<8x128xf32>
    %475 = tpu.matmul %473, %474, %cst_95 {dimension_numbers = #tpu.dot_dimension_numbers<[1], [0], [0], [1], [0, 0, 1, 1], [], []>} : vector<8x32xf32>, vector<32x128xf32>, vector<8x128xf32> -> vector<8x128xf32>
    %c0_96 = arith.constant 0 : index
    %c0_97 = arith.constant 0 : index
    %476 = vector.load %arg9[%c0_96, %c0_97] : memref<1x128xf32, #tpu.memory_space<vmem>>, vector<1x128xf32>
    %477 = vector.broadcast %476 : vector<1x128xf32> to vector<8x128xf32>
    %478 = arith.addf %475, %477 : vector<8x128xf32>
    %c0_98 = arith.constant 0 : index
    %c0_99 = arith.constant 0 : index
    %479 = vector.load %arg8[%c0_98, %c0_99] : memref<32x128xf32, #tpu.memory_space<vmem>>, vector<32x128xf32>
    %cst_100 = arith.constant 0.000000e+00 : f32
    %480 = vector.broadcast %cst_100 : f32 to vector<8x32xf32>
    %cst_101 = arith.constant 0.000000e+00 : f32
    %481 = vector.broadcast %cst_101 : f32 to vector<8x32xf32>
    %cst_102 = arith.constant dense<0.000000e+00> : vector<8x128xf32>
    %482 = tpu.matmul %480, %479, %cst_102 {dimension_numbers = #tpu.dot_dimension_numbers<[1], [0], [0], [1], [0, 0, 1, 1], [], []>} : vector<8x32xf32>, vector<32x128xf32>, vector<8x128xf32> -> vector<8x128xf32>
    %483 = arith.addf %478, %482 : vector<8x128xf32>
    %484 = vector.extract_strided_slice %483 {offsets = [0, 0], sizes = [8, 32], strides = [1, 1]} : vector<8x128xf32> to vector<8x32xf32>
    %485 = arith.negf %484 : vector<8x32xf32>
    %486 = math.exp %485 : vector<8x32xf32>
    %cst_103 = arith.constant 1.000000e+00 : f32
    %487 = vector.broadcast %cst_103 : f32 to vector<8x32xf32>
    %488 = arith.addf %487, %486 : vector<8x32xf32>
    %489 = arith.divf %487, %488 : vector<8x32xf32>
    %490 = vector.extract_strided_slice %483 {offsets = [0, 32], sizes = [8, 32], strides = [1, 1]} : vector<8x128xf32> to vector<8x32xf32>
    %491 = arith.negf %490 : vector<8x32xf32>
    %492 = math.exp %491 : vector<8x32xf32>
    %cst_104 = arith.constant 1.000000e+00 : f32
    %493 = vector.broadcast %cst_104 : f32 to vector<8x32xf32>
    %494 = arith.addf %493, %492 : vector<8x32xf32>
    %495 = arith.divf %493, %494 : vector<8x32xf32>
    %496 = vector.extract_strided_slice %483 {offsets = [0, 64], sizes = [8, 32], strides = [1, 1]} : vector<8x128xf32> to vector<8x32xf32>
    %497 = math.tanh %496 : vector<8x32xf32>
    %498 = vector.extract_strided_slice %483 {offsets = [0, 96], sizes = [8, 32], strides = [1, 1]} : vector<8x128xf32> to vector<8x32xf32>
    %499 = arith.negf %498 : vector<8x32xf32>
    %500 = math.exp %499 : vector<8x32xf32>
    %cst_105 = arith.constant 1.000000e+00 : f32
    %501 = vector.broadcast %cst_105 : f32 to vector<8x32xf32>
    %502 = arith.addf %501, %500 : vector<8x32xf32>
    %503 = arith.divf %501, %502 : vector<8x32xf32>
    %504 = arith.mulf %495, %481 : vector<8x32xf32>
    %505 = arith.mulf %489, %497 : vector<8x32xf32>
    %506 = arith.addf %504, %505 : vector<8x32xf32>
    %507 = math.tanh %506 : vector<8x32xf32>
    %508 = arith.mulf %503, %507 : vector<8x32xf32>
    %c0_106 = arith.constant 0 : index
    %c0_107 = arith.constant 0 : index
    %509 = vector.load %arg17[%c0_106, %c0_107] : memref<64x32xf32, #tpu.memory_space<vmem>>, vector<8x32xf32>
    tpu.vector_store %arg17[%c0_106, %c0_107], %508 {strides = array<i32>} : memref<64x32xf32, #tpu.memory_space<vmem>>, vector<8x32xf32>,
    %cst_108 = arith.constant dense<0.000000e+00> : vector<8x128xf32>
    %510 = tpu.matmul %508, %479, %cst_108 {dimension_numbers = #tpu.dot_dimension_numbers<[1], [0], [0], [1], [0, 0, 1, 1], [], []>} : vector<8x32xf32>, vector<32x128xf32>, vector<8x128xf32> -> vector<8x128xf32>
    %511 = arith.addf %478, %510 : vector<8x128xf32>
    %512 = vector.extract_strided_slice %511 {offsets = [0, 0], sizes = [8, 32], strides = [1, 1]} : vector<8x128xf32> to vector<8x32xf32>
    %513 = arith.negf %512 : vector<8x32xf32>
    %514 = math.exp %513 : vector<8x32xf32>
    %cst_109 = arith.constant 1.000000e+00 : f32
    %515 = vector.broadcast %cst_109 : f32 to vector<8x32xf32>
    %516 = arith.addf %515, %514 : vector<8x32xf32>
    %517 = arith.divf %515, %516 : vector<8x32xf32>
    %518 = vector.extract_strided_slice %511 {offsets = [0, 32], sizes = [8, 32], strides = [1, 1]} : vector<8x128xf32> to vector<8x32xf32>
    %519 = arith.negf %518 : vector<8x32xf32>
    %520 = math.exp %519 : vector<8x32xf32>
    %cst_110 = arith.constant 1.000000e+00 : f32
    %521 = vector.broadcast %cst_110 : f32 to vector<8x32xf32>
    %522 = arith.addf %521, %520 : vector<8x32xf32>
    %523 = arith.divf %521, %522 : vector<8x32xf32>
    %524 = vector.extract_strided_slice %511 {offsets = [0, 64], sizes = [8, 32], strides = [1, 1]} : vector<8x128xf32> to vector<8x32xf32>
    %525 = math.tanh %524 : vector<8x32xf32>
    %526 = vector.extract_strided_slice %511 {offsets = [0, 96], sizes = [8, 32], strides = [1, 1]} : vector<8x128xf32> to vector<8x32xf32>
    %527 = arith.negf %526 : vector<8x32xf32>
    %528 = math.exp %527 : vector<8x32xf32>
    %cst_111 = arith.constant 1.000000e+00 : f32
    %529 = vector.broadcast %cst_111 : f32 to vector<8x32xf32>
    %530 = arith.addf %529, %528 : vector<8x32xf32>
    %531 = arith.divf %529, %530 : vector<8x32xf32>
    %532 = arith.mulf %523, %506 : vector<8x32xf32>
    %533 = arith.mulf %517, %525 : vector<8x32xf32>
    %534 = arith.addf %532, %533 : vector<8x32xf32>
    %535 = math.tanh %534 : vector<8x32xf32>
    %536 = arith.mulf %531, %535 : vector<8x32xf32>
    %c8_112 = arith.constant 8 : index
    %c0_113 = arith.constant 0 : index
    %537 = vector.load %arg17[%c8_112, %c0_113] : memref<64x32xf32, #tpu.memory_space<vmem>>, vector<8x32xf32>
    tpu.vector_store %arg17[%c8_112, %c0_113], %536 {strides = array<i32>} : memref<64x32xf32, #tpu.memory_space<vmem>>, vector<8x32xf32>,
    %cst_114 = arith.constant dense<0.000000e+00> : vector<8x128xf32>
    %538 = tpu.matmul %536, %479, %cst_114 {dimension_numbers = #tpu.dot_dimension_numbers<[1], [0], [0], [1], [0, 0, 1, 1], [], []>} : vector<8x32xf32>, vector<32x128xf32>, vector<8x128xf32> -> vector<8x128xf32>
    %539 = arith.addf %478, %538 : vector<8x128xf32>
    %540 = vector.extract_strided_slice %539 {offsets = [0, 0], sizes = [8, 32], strides = [1, 1]} : vector<8x128xf32> to vector<8x32xf32>
    %541 = arith.negf %540 : vector<8x32xf32>
    %542 = math.exp %541 : vector<8x32xf32>
    %cst_115 = arith.constant 1.000000e+00 : f32
    %543 = vector.broadcast %cst_115 : f32 to vector<8x32xf32>
    %544 = arith.addf %543, %542 : vector<8x32xf32>
    %545 = arith.divf %543, %544 : vector<8x32xf32>
    %546 = vector.extract_strided_slice %539 {offsets = [0, 32], sizes = [8, 32], strides = [1, 1]} : vector<8x128xf32> to vector<8x32xf32>
    %547 = arith.negf %546 : vector<8x32xf32>
    %548 = math.exp %547 : vector<8x32xf32>
    %cst_116 = arith.constant 1.000000e+00 : f32
    %549 = vector.broadcast %cst_116 : f32 to vector<8x32xf32>
    %550 = arith.addf %549, %548 : vector<8x32xf32>
    %551 = arith.divf %549, %550 : vector<8x32xf32>
    %552 = vector.extract_strided_slice %539 {offsets = [0, 64], sizes = [8, 32], strides = [1, 1]} : vector<8x128xf32> to vector<8x32xf32>
    %553 = math.tanh %552 : vector<8x32xf32>
    %554 = vector.extract_strided_slice %539 {offsets = [0, 96], sizes = [8, 32], strides = [1, 1]} : vector<8x128xf32> to vector<8x32xf32>
    %555 = arith.negf %554 : vector<8x32xf32>
    %556 = math.exp %555 : vector<8x32xf32>
    %cst_117 = arith.constant 1.000000e+00 : f32
    %557 = vector.broadcast %cst_117 : f32 to vector<8x32xf32>
    %558 = arith.addf %557, %556 : vector<8x32xf32>
    %559 = arith.divf %557, %558 : vector<8x32xf32>
    %560 = arith.mulf %551, %534 : vector<8x32xf32>
    %561 = arith.mulf %545, %553 : vector<8x32xf32>
    %562 = arith.addf %560, %561 : vector<8x32xf32>
    %563 = math.tanh %562 : vector<8x32xf32>
    %564 = arith.mulf %559, %563 : vector<8x32xf32>
    %c16_118 = arith.constant 16 : index
    %c0_119 = arith.constant 0 : index
    %565 = vector.load %arg17[%c16_118, %c0_119] : memref<64x32xf32, #tpu.memory_space<vmem>>, vector<8x32xf32>
    tpu.vector_store %arg17[%c16_118, %c0_119], %564 {strides = array<i32>} : memref<64x32xf32, #tpu.memory_space<vmem>>, vector<8x32xf32>,
    %cst_120 = arith.constant dense<0.000000e+00> : vector<8x128xf32>
    %566 = tpu.matmul %564, %479, %cst_120 {dimension_numbers = #tpu.dot_dimension_numbers<[1], [0], [0], [1], [0, 0, 1, 1], [], []>} : vector<8x32xf32>, vector<32x128xf32>, vector<8x128xf32> -> vector<8x128xf32>
    %567 = arith.addf %478, %566 : vector<8x128xf32>
    %568 = vector.extract_strided_slice %567 {offsets = [0, 0], sizes = [8, 32], strides = [1, 1]} : vector<8x128xf32> to vector<8x32xf32>
    %569 = arith.negf %568 : vector<8x32xf32>
    %570 = math.exp %569 : vector<8x32xf32>
    %cst_121 = arith.constant 1.000000e+00 : f32
    %571 = vector.broadcast %cst_121 : f32 to vector<8x32xf32>
    %572 = arith.addf %571, %570 : vector<8x32xf32>
    %573 = arith.divf %571, %572 : vector<8x32xf32>
    %574 = vector.extract_strided_slice %567 {offsets = [0, 32], sizes = [8, 32], strides = [1, 1]} : vector<8x128xf32> to vector<8x32xf32>
    %575 = arith.negf %574 : vector<8x32xf32>
    %576 = math.exp %575 : vector<8x32xf32>
    %cst_122 = arith.constant 1.000000e+00 : f32
    %577 = vector.broadcast %cst_122 : f32 to vector<8x32xf32>
    %578 = arith.addf %577, %576 : vector<8x32xf32>
    %579 = arith.divf %577, %578 : vector<8x32xf32>
    %580 = vector.extract_strided_slice %567 {offsets = [0, 64], sizes = [8, 32], strides = [1, 1]} : vector<8x128xf32> to vector<8x32xf32>
    %581 = math.tanh %580 : vector<8x32xf32>
    %582 = vector.extract_strided_slice %567 {offsets = [0, 96], sizes = [8, 32], strides = [1, 1]} : vector<8x128xf32> to vector<8x32xf32>
    %583 = arith.negf %582 : vector<8x32xf32>
    %584 = math.exp %583 : vector<8x32xf32>
    %cst_123 = arith.constant 1.000000e+00 : f32
    %585 = vector.broadcast %cst_123 : f32 to vector<8x32xf32>
    %586 = arith.addf %585, %584 : vector<8x32xf32>
    %587 = arith.divf %585, %586 : vector<8x32xf32>
    %588 = arith.mulf %579, %562 : vector<8x32xf32>
    %589 = arith.mulf %573, %581 : vector<8x32xf32>
    %590 = arith.addf %588, %589 : vector<8x32xf32>
    %591 = math.tanh %590 : vector<8x32xf32>
    %592 = arith.mulf %587, %591 : vector<8x32xf32>
    %c24_124 = arith.constant 24 : index
    %c0_125 = arith.constant 0 : index
    %593 = vector.load %arg17[%c24_124, %c0_125] : memref<64x32xf32, #tpu.memory_space<vmem>>, vector<8x32xf32>
    tpu.vector_store %arg17[%c24_124, %c0_125], %592 {strides = array<i32>} : memref<64x32xf32, #tpu.memory_space<vmem>>, vector<8x32xf32>,
    %cst_126 = arith.constant dense<0.000000e+00> : vector<8x128xf32>
    %594 = tpu.matmul %592, %479, %cst_126 {dimension_numbers = #tpu.dot_dimension_numbers<[1], [0], [0], [1], [0, 0, 1, 1], [], []>} : vector<8x32xf32>, vector<32x128xf32>, vector<8x128xf32> -> vector<8x128xf32>
    %595 = arith.addf %478, %594 : vector<8x128xf32>
    %596 = vector.extract_strided_slice %595 {offsets = [0, 0], sizes = [8, 32], strides = [1, 1]} : vector<8x128xf32> to vector<8x32xf32>
    %597 = arith.negf %596 : vector<8x32xf32>
    %598 = math.exp %597 : vector<8x32xf32>
    %cst_127 = arith.constant 1.000000e+00 : f32
    %599 = vector.broadcast %cst_127 : f32 to vector<8x32xf32>
    %600 = arith.addf %599, %598 : vector<8x32xf32>
    %601 = arith.divf %599, %600 : vector<8x32xf32>
    %602 = vector.extract_strided_slice %595 {offsets = [0, 32], sizes = [8, 32], strides = [1, 1]} : vector<8x128xf32> to vector<8x32xf32>
    %603 = arith.negf %602 : vector<8x32xf32>
    %604 = math.exp %603 : vector<8x32xf32>
    %cst_128 = arith.constant 1.000000e+00 : f32
    %605 = vector.broadcast %cst_128 : f32 to vector<8x32xf32>
    %606 = arith.addf %605, %604 : vector<8x32xf32>
    %607 = arith.divf %605, %606 : vector<8x32xf32>
    %608 = vector.extract_strided_slice %595 {offsets = [0, 64], sizes = [8, 32], strides = [1, 1]} : vector<8x128xf32> to vector<8x32xf32>
    %609 = math.tanh %608 : vector<8x32xf32>
    %610 = vector.extract_strided_slice %595 {offsets = [0, 96], sizes = [8, 32], strides = [1, 1]} : vector<8x128xf32> to vector<8x32xf32>
    %611 = arith.negf %610 : vector<8x32xf32>
    %612 = math.exp %611 : vector<8x32xf32>
    %cst_129 = arith.constant 1.000000e+00 : f32
    %613 = vector.broadcast %cst_129 : f32 to vector<8x32xf32>
    %614 = arith.addf %613, %612 : vector<8x32xf32>
    %615 = arith.divf %613, %614 : vector<8x32xf32>
    %616 = arith.mulf %607, %590 : vector<8x32xf32>
    %617 = arith.mulf %601, %609 : vector<8x32xf32>
    %618 = arith.addf %616, %617 : vector<8x32xf32>
    %619 = math.tanh %618 : vector<8x32xf32>
    %620 = arith.mulf %615, %619 : vector<8x32xf32>
    %c32_130 = arith.constant 32 : index
    %c0_131 = arith.constant 0 : index
    %621 = vector.load %arg17[%c32_130, %c0_131] : memref<64x32xf32, #tpu.memory_space<vmem>>, vector<8x32xf32>
    tpu.vector_store %arg17[%c32_130, %c0_131], %620 {strides = array<i32>} : memref<64x32xf32, #tpu.memory_space<vmem>>, vector<8x32xf32>,
    %cst_132 = arith.constant dense<0.000000e+00> : vector<8x128xf32>
    %622 = tpu.matmul %620, %479, %cst_132 {dimension_numbers = #tpu.dot_dimension_numbers<[1], [0], [0], [1], [0, 0, 1, 1], [], []>} : vector<8x32xf32>, vector<32x128xf32>, vector<8x128xf32> -> vector<8x128xf32>
    %623 = arith.addf %478, %622 : vector<8x128xf32>
    %624 = vector.extract_strided_slice %623 {offsets = [0, 0], sizes = [8, 32], strides = [1, 1]} : vector<8x128xf32> to vector<8x32xf32>
    %625 = arith.negf %624 : vector<8x32xf32>
    %626 = math.exp %625 : vector<8x32xf32>
    %cst_133 = arith.constant 1.000000e+00 : f32
    %627 = vector.broadcast %cst_133 : f32 to vector<8x32xf32>
    %628 = arith.addf %627, %626 : vector<8x32xf32>
    %629 = arith.divf %627, %628 : vector<8x32xf32>
    %630 = vector.extract_strided_slice %623 {offsets = [0, 32], sizes = [8, 32], strides = [1, 1]} : vector<8x128xf32> to vector<8x32xf32>
    %631 = arith.negf %630 : vector<8x32xf32>
    %632 = math.exp %631 : vector<8x32xf32>
    %cst_134 = arith.constant 1.000000e+00 : f32
    %633 = vector.broadcast %cst_134 : f32 to vector<8x32xf32>
    %634 = arith.addf %633, %632 : vector<8x32xf32>
    %635 = arith.divf %633, %634 : vector<8x32xf32>
    %636 = vector.extract_strided_slice %623 {offsets = [0, 64], sizes = [8, 32], strides = [1, 1]} : vector<8x128xf32> to vector<8x32xf32>
    %637 = math.tanh %636 : vector<8x32xf32>
    %638 = vector.extract_strided_slice %623 {offsets = [0, 96], sizes = [8, 32], strides = [1, 1]} : vector<8x128xf32> to vector<8x32xf32>
    %639 = arith.negf %638 : vector<8x32xf32>
    %640 = math.exp %639 : vector<8x32xf32>
    %cst_135 = arith.constant 1.000000e+00 : f32
    %641 = vector.broadcast %cst_135 : f32 to vector<8x32xf32>
    %642 = arith.addf %641, %640 : vector<8x32xf32>
    %643 = arith.divf %641, %642 : vector<8x32xf32>
    %644 = arith.mulf %635, %618 : vector<8x32xf32>
    %645 = arith.mulf %629, %637 : vector<8x32xf32>
    %646 = arith.addf %644, %645 : vector<8x32xf32>
    %647 = math.tanh %646 : vector<8x32xf32>
    %648 = arith.mulf %643, %647 : vector<8x32xf32>
    %c40_136 = arith.constant 40 : index
    %c0_137 = arith.constant 0 : index
    %649 = vector.load %arg17[%c40_136, %c0_137] : memref<64x32xf32, #tpu.memory_space<vmem>>, vector<8x32xf32>
    tpu.vector_store %arg17[%c40_136, %c0_137], %648 {strides = array<i32>} : memref<64x32xf32, #tpu.memory_space<vmem>>, vector<8x32xf32>,
    %cst_138 = arith.constant dense<0.000000e+00> : vector<8x128xf32>
    %650 = tpu.matmul %648, %479, %cst_138 {dimension_numbers = #tpu.dot_dimension_numbers<[1], [0], [0], [1], [0, 0, 1, 1], [], []>} : vector<8x32xf32>, vector<32x128xf32>, vector<8x128xf32> -> vector<8x128xf32>
    %651 = arith.addf %478, %650 : vector<8x128xf32>
    %652 = vector.extract_strided_slice %651 {offsets = [0, 0], sizes = [8, 32], strides = [1, 1]} : vector<8x128xf32> to vector<8x32xf32>
    %653 = arith.negf %652 : vector<8x32xf32>
    %654 = math.exp %653 : vector<8x32xf32>
    %cst_139 = arith.constant 1.000000e+00 : f32
    %655 = vector.broadcast %cst_139 : f32 to vector<8x32xf32>
    %656 = arith.addf %655, %654 : vector<8x32xf32>
    %657 = arith.divf %655, %656 : vector<8x32xf32>
    %658 = vector.extract_strided_slice %651 {offsets = [0, 32], sizes = [8, 32], strides = [1, 1]} : vector<8x128xf32> to vector<8x32xf32>
    %659 = arith.negf %658 : vector<8x32xf32>
    %660 = math.exp %659 : vector<8x32xf32>
    %cst_140 = arith.constant 1.000000e+00 : f32
    %661 = vector.broadcast %cst_140 : f32 to vector<8x32xf32>
    %662 = arith.addf %661, %660 : vector<8x32xf32>
    %663 = arith.divf %661, %662 : vector<8x32xf32>
    %664 = vector.extract_strided_slice %651 {offsets = [0, 64], sizes = [8, 32], strides = [1, 1]} : vector<8x128xf32> to vector<8x32xf32>
    %665 = math.tanh %664 : vector<8x32xf32>
    %666 = vector.extract_strided_slice %651 {offsets = [0, 96], sizes = [8, 32], strides = [1, 1]} : vector<8x128xf32> to vector<8x32xf32>
    %667 = arith.negf %666 : vector<8x32xf32>
    %668 = math.exp %667 : vector<8x32xf32>
    %cst_141 = arith.constant 1.000000e+00 : f32
    %669 = vector.broadcast %cst_141 : f32 to vector<8x32xf32>
    %670 = arith.addf %669, %668 : vector<8x32xf32>
    %671 = arith.divf %669, %670 : vector<8x32xf32>
    %672 = arith.mulf %663, %646 : vector<8x32xf32>
    %673 = arith.mulf %657, %665 : vector<8x32xf32>
    %674 = arith.addf %672, %673 : vector<8x32xf32>
    %675 = math.tanh %674 : vector<8x32xf32>
    %676 = arith.mulf %671, %675 : vector<8x32xf32>
    %c48_142 = arith.constant 48 : index
    %c0_143 = arith.constant 0 : index
    %677 = vector.load %arg17[%c48_142, %c0_143] : memref<64x32xf32, #tpu.memory_space<vmem>>, vector<8x32xf32>
    tpu.vector_store %arg17[%c48_142, %c0_143], %676 {strides = array<i32>} : memref<64x32xf32, #tpu.memory_space<vmem>>, vector<8x32xf32>,
    %cst_144 = arith.constant dense<0.000000e+00> : vector<8x128xf32>
    %678 = tpu.matmul %676, %479, %cst_144 {dimension_numbers = #tpu.dot_dimension_numbers<[1], [0], [0], [1], [0, 0, 1, 1], [], []>} : vector<8x32xf32>, vector<32x128xf32>, vector<8x128xf32> -> vector<8x128xf32>
    %679 = arith.addf %478, %678 : vector<8x128xf32>
    %680 = vector.extract_strided_slice %679 {offsets = [0, 0], sizes = [8, 32], strides = [1, 1]} : vector<8x128xf32> to vector<8x32xf32>
    %681 = arith.negf %680 : vector<8x32xf32>
    %682 = math.exp %681 : vector<8x32xf32>
    %cst_145 = arith.constant 1.000000e+00 : f32
    %683 = vector.broadcast %cst_145 : f32 to vector<8x32xf32>
    %684 = arith.addf %683, %682 : vector<8x32xf32>
    %685 = arith.divf %683, %684 : vector<8x32xf32>
    %686 = vector.extract_strided_slice %679 {offsets = [0, 32], sizes = [8, 32], strides = [1, 1]} : vector<8x128xf32> to vector<8x32xf32>
    %687 = arith.negf %686 : vector<8x32xf32>
    %688 = math.exp %687 : vector<8x32xf32>
    %cst_146 = arith.constant 1.000000e+00 : f32
    %689 = vector.broadcast %cst_146 : f32 to vector<8x32xf32>
    %690 = arith.addf %689, %688 : vector<8x32xf32>
    %691 = arith.divf %689, %690 : vector<8x32xf32>
    %692 = vector.extract_strided_slice %679 {offsets = [0, 64], sizes = [8, 32], strides = [1, 1]} : vector<8x128xf32> to vector<8x32xf32>
    %693 = math.tanh %692 : vector<8x32xf32>
    %694 = vector.extract_strided_slice %679 {offsets = [0, 96], sizes = [8, 32], strides = [1, 1]} : vector<8x128xf32> to vector<8x32xf32>
    %695 = arith.negf %694 : vector<8x32xf32>
    %696 = math.exp %695 : vector<8x32xf32>
    %cst_147 = arith.constant 1.000000e+00 : f32
    %697 = vector.broadcast %cst_147 : f32 to vector<8x32xf32>
    %698 = arith.addf %697, %696 : vector<8x32xf32>
    %699 = arith.divf %697, %698 : vector<8x32xf32>
    %700 = arith.mulf %691, %674 : vector<8x32xf32>
    %701 = arith.mulf %685, %693 : vector<8x32xf32>
    %702 = arith.addf %700, %701 : vector<8x32xf32>
    %703 = math.tanh %702 : vector<8x32xf32>
    %704 = arith.mulf %699, %703 : vector<8x32xf32>
    %c56_148 = arith.constant 56 : index
    %c0_149 = arith.constant 0 : index
    %705 = vector.load %arg17[%c56_148, %c0_149] : memref<64x32xf32, #tpu.memory_space<vmem>>, vector<8x32xf32>
    tpu.vector_store %arg17[%c56_148, %c0_149], %704 {strides = array<i32>} : memref<64x32xf32, #tpu.memory_space<vmem>>, vector<8x32xf32>,
    %c0_150 = arith.constant 0 : index
    %c0_151 = arith.constant 0 : index
    %706 = vector.load %arg17[%c0_150, %c0_151] : memref<64x32xf32, #tpu.memory_space<vmem>>, vector<64x32xf32>
    %c0_152 = arith.constant 0 : index
    %c0_153 = arith.constant 0 : index
    %707 = vector.load %arg10[%c0_152, %c0_153] : memref<32x256xf32, #tpu.memory_space<vmem>>, vector<32x256xf32>
    %cst_154 = arith.constant dense<0.000000e+00> : vector<64x256xf32>
    %708 = tpu.matmul %706, %707, %cst_154 {dimension_numbers = #tpu.dot_dimension_numbers<[1], [0], [0], [1], [0, 0, 1, 1], [], []>} : vector<64x32xf32>, vector<32x256xf32>, vector<64x256xf32> -> vector<64x256xf32>
    %c0_155 = arith.constant 0 : index
    %c0_156 = arith.constant 0 : index
    %709 = vector.load %arg12[%c0_155, %c0_156] : memref<1x256xf32, #tpu.memory_space<vmem>>, vector<1x256xf32>
    %710 = vector.broadcast %709 : vector<1x256xf32> to vector<64x256xf32>
    %711 = arith.addf %708, %710 : vector<64x256xf32>
    %c0_157 = arith.constant 0 : index
    %c0_158 = arith.constant 0 : index
    %712 = vector.load %arg11[%c0_157, %c0_158] : memref<64x256xf32, #tpu.memory_space<vmem>>, vector<64x256xf32>
    %cst_159 = arith.constant 0.000000e+00 : f32
    %713 = vector.broadcast %cst_159 : f32 to vector<8x64xf32>
    %cst_160 = arith.constant 0.000000e+00 : f32
    %714 = vector.broadcast %cst_160 : f32 to vector<8x64xf32>
    %715 = vector.extract_strided_slice %711 {offsets = [0, 0], sizes = [8, 256], strides = [1, 1]} : vector<64x256xf32> to vector<8x256xf32>
    %cst_161 = arith.constant dense<0.000000e+00> : vector<8x256xf32>
    %716 = tpu.matmul %713, %712, %cst_161 {dimension_numbers = #tpu.dot_dimension_numbers<[1], [0], [0], [1], [0, 0, 1, 1], [], []>} : vector<8x64xf32>, vector<64x256xf32>, vector<8x256xf32> -> vector<8x256xf32>
    %717 = arith.addf %715, %716 : vector<8x256xf32>
    %718 = vector.extract_strided_slice %717 {offsets = [0, 0], sizes = [8, 64], strides = [1, 1]} : vector<8x256xf32> to vector<8x64xf32>
    %719 = arith.negf %718 : vector<8x64xf32>
    %720 = math.exp %719 : vector<8x64xf32>
    %cst_162 = arith.constant 1.000000e+00 : f32
    %721 = vector.broadcast %cst_162 : f32 to vector<8x64xf32>
    %722 = arith.addf %721, %720 : vector<8x64xf32>
    %723 = arith.divf %721, %722 : vector<8x64xf32>
    %724 = vector.extract_strided_slice %717 {offsets = [0, 64], sizes = [8, 64], strides = [1, 1]} : vector<8x256xf32> to vector<8x64xf32>
    %725 = arith.negf %724 : vector<8x64xf32>
    %726 = math.exp %725 : vector<8x64xf32>
    %cst_163 = arith.constant 1.000000e+00 : f32
    %727 = vector.broadcast %cst_163 : f32 to vector<8x64xf32>
    %728 = arith.addf %727, %726 : vector<8x64xf32>
    %729 = arith.divf %727, %728 : vector<8x64xf32>
    %730 = vector.extract_strided_slice %717 {offsets = [0, 128], sizes = [8, 64], strides = [1, 1]} : vector<8x256xf32> to vector<8x64xf32>
    %731 = math.tanh %730 : vector<8x64xf32>
    %732 = vector.extract_strided_slice %717 {offsets = [0, 192], sizes = [8, 64], strides = [1, 1]} : vector<8x256xf32> to vector<8x64xf32>
    %733 = arith.negf %732 : vector<8x64xf32>
    %734 = math.exp %733 : vector<8x64xf32>
    %cst_164 = arith.constant 1.000000e+00 : f32
    %735 = vector.broadcast %cst_164 : f32 to vector<8x64xf32>
    %736 = arith.addf %735, %734 : vector<8x64xf32>
    %737 = arith.divf %735, %736 : vector<8x64xf32>
    %738 = arith.mulf %729, %714 : vector<8x64xf32>
    %739 = arith.mulf %723, %731 : vector<8x64xf32>
    %740 = arith.addf %738, %739 : vector<8x64xf32>
    %741 = math.tanh %740 : vector<8x64xf32>
    %742 = arith.mulf %737, %741 : vector<8x64xf32>
    %c0_165 = arith.constant 0 : index
    %c0_166 = arith.constant 0 : index
    %743 = vector.load %arg16[%c0_165, %c0_166] : memref<64x64xf32, #tpu.memory_space<vmem>>, vector<8x64xf32>
    tpu.vector_store %arg16[%c0_165, %c0_166], %742 {strides = array<i32>} : memref<64x64xf32, #tpu.memory_space<vmem>>, vector<8x64xf32>,
    %744 = vector.extract_strided_slice %711 {offsets = [8, 0], sizes = [8, 256], strides = [1, 1]} : vector<64x256xf32> to vector<8x256xf32>
    %cst_167 = arith.constant dense<0.000000e+00> : vector<8x256xf32>
    %745 = tpu.matmul %742, %712, %cst_167 {dimension_numbers = #tpu.dot_dimension_numbers<[1], [0], [0], [1], [0, 0, 1, 1], [], []>} : vector<8x64xf32>, vector<64x256xf32>, vector<8x256xf32> -> vector<8x256xf32>
    %746 = arith.addf %744, %745 : vector<8x256xf32>
    %747 = vector.extract_strided_slice %746 {offsets = [0, 0], sizes = [8, 64], strides = [1, 1]} : vector<8x256xf32> to vector<8x64xf32>
    %748 = arith.negf %747 : vector<8x64xf32>
    %749 = math.exp %748 : vector<8x64xf32>
    %cst_168 = arith.constant 1.000000e+00 : f32
    %750 = vector.broadcast %cst_168 : f32 to vector<8x64xf32>
    %751 = arith.addf %750, %749 : vector<8x64xf32>
    %752 = arith.divf %750, %751 : vector<8x64xf32>
    %753 = vector.extract_strided_slice %746 {offsets = [0, 64], sizes = [8, 64], strides = [1, 1]} : vector<8x256xf32> to vector<8x64xf32>
    %754 = arith.negf %753 : vector<8x64xf32>
    %755 = math.exp %754 : vector<8x64xf32>
    %cst_169 = arith.constant 1.000000e+00 : f32
    %756 = vector.broadcast %cst_169 : f32 to vector<8x64xf32>
    %757 = arith.addf %756, %755 : vector<8x64xf32>
    %758 = arith.divf %756, %757 : vector<8x64xf32>
    %759 = vector.extract_strided_slice %746 {offsets = [0, 128], sizes = [8, 64], strides = [1, 1]} : vector<8x256xf32> to vector<8x64xf32>
    %760 = math.tanh %759 : vector<8x64xf32>
    %761 = vector.extract_strided_slice %746 {offsets = [0, 192], sizes = [8, 64], strides = [1, 1]} : vector<8x256xf32> to vector<8x64xf32>
    %762 = arith.negf %761 : vector<8x64xf32>
    %763 = math.exp %762 : vector<8x64xf32>
    %cst_170 = arith.constant 1.000000e+00 : f32
    %764 = vector.broadcast %cst_170 : f32 to vector<8x64xf32>
    %765 = arith.addf %764, %763 : vector<8x64xf32>
    %766 = arith.divf %764, %765 : vector<8x64xf32>
    %767 = arith.mulf %758, %740 : vector<8x64xf32>
    %768 = arith.mulf %752, %760 : vector<8x64xf32>
    %769 = arith.addf %767, %768 : vector<8x64xf32>
    %770 = math.tanh %769 : vector<8x64xf32>
    %771 = arith.mulf %766, %770 : vector<8x64xf32>
    %c8_171 = arith.constant 8 : index
    %c0_172 = arith.constant 0 : index
    %772 = vector.load %arg16[%c8_171, %c0_172] : memref<64x64xf32, #tpu.memory_space<vmem>>, vector<8x64xf32>
    tpu.vector_store %arg16[%c8_171, %c0_172], %771 {strides = array<i32>} : memref<64x64xf32, #tpu.memory_space<vmem>>, vector<8x64xf32>,
    %773 = vector.extract_strided_slice %711 {offsets = [16, 0], sizes = [8, 256], strides = [1, 1]} : vector<64x256xf32> to vector<8x256xf32>
    %cst_173 = arith.constant dense<0.000000e+00> : vector<8x256xf32>
    %774 = tpu.matmul %771, %712, %cst_173 {dimension_numbers = #tpu.dot_dimension_numbers<[1], [0], [0], [1], [0, 0, 1, 1], [], []>} : vector<8x64xf32>, vector<64x256xf32>, vector<8x256xf32> -> vector<8x256xf32>
    %775 = arith.addf %773, %774 : vector<8x256xf32>
    %776 = vector.extract_strided_slice %775 {offsets = [0, 0], sizes = [8, 64], strides = [1, 1]} : vector<8x256xf32> to vector<8x64xf32>
    %777 = arith.negf %776 : vector<8x64xf32>
    %778 = math.exp %777 : vector<8x64xf32>
    %cst_174 = arith.constant 1.000000e+00 : f32
    %779 = vector.broadcast %cst_174 : f32 to vector<8x64xf32>
    %780 = arith.addf %779, %778 : vector<8x64xf32>
    %781 = arith.divf %779, %780 : vector<8x64xf32>
    %782 = vector.extract_strided_slice %775 {offsets = [0, 64], sizes = [8, 64], strides = [1, 1]} : vector<8x256xf32> to vector<8x64xf32>
    %783 = arith.negf %782 : vector<8x64xf32>
    %784 = math.exp %783 : vector<8x64xf32>
    %cst_175 = arith.constant 1.000000e+00 : f32
    %785 = vector.broadcast %cst_175 : f32 to vector<8x64xf32>
    %786 = arith.addf %785, %784 : vector<8x64xf32>
    %787 = arith.divf %785, %786 : vector<8x64xf32>
    %788 = vector.extract_strided_slice %775 {offsets = [0, 128], sizes = [8, 64], strides = [1, 1]} : vector<8x256xf32> to vector<8x64xf32>
    %789 = math.tanh %788 : vector<8x64xf32>
    %790 = vector.extract_strided_slice %775 {offsets = [0, 192], sizes = [8, 64], strides = [1, 1]} : vector<8x256xf32> to vector<8x64xf32>
    %791 = arith.negf %790 : vector<8x64xf32>
    %792 = math.exp %791 : vector<8x64xf32>
    %cst_176 = arith.constant 1.000000e+00 : f32
    %793 = vector.broadcast %cst_176 : f32 to vector<8x64xf32>
    %794 = arith.addf %793, %792 : vector<8x64xf32>
    %795 = arith.divf %793, %794 : vector<8x64xf32>
    %796 = arith.mulf %787, %769 : vector<8x64xf32>
    %797 = arith.mulf %781, %789 : vector<8x64xf32>
    %798 = arith.addf %796, %797 : vector<8x64xf32>
    %799 = math.tanh %798 : vector<8x64xf32>
    %800 = arith.mulf %795, %799 : vector<8x64xf32>
    %c16_177 = arith.constant 16 : index
    %c0_178 = arith.constant 0 : index
    %801 = vector.load %arg16[%c16_177, %c0_178] : memref<64x64xf32, #tpu.memory_space<vmem>>, vector<8x64xf32>
    tpu.vector_store %arg16[%c16_177, %c0_178], %800 {strides = array<i32>} : memref<64x64xf32, #tpu.memory_space<vmem>>, vector<8x64xf32>,
    %802 = vector.extract_strided_slice %711 {offsets = [24, 0], sizes = [8, 256], strides = [1, 1]} : vector<64x256xf32> to vector<8x256xf32>
    %cst_179 = arith.constant dense<0.000000e+00> : vector<8x256xf32>
    %803 = tpu.matmul %800, %712, %cst_179 {dimension_numbers = #tpu.dot_dimension_numbers<[1], [0], [0], [1], [0, 0, 1, 1], [], []>} : vector<8x64xf32>, vector<64x256xf32>, vector<8x256xf32> -> vector<8x256xf32>
    %804 = arith.addf %802, %803 : vector<8x256xf32>
    %805 = vector.extract_strided_slice %804 {offsets = [0, 0], sizes = [8, 64], strides = [1, 1]} : vector<8x256xf32> to vector<8x64xf32>
    %806 = arith.negf %805 : vector<8x64xf32>
    %807 = math.exp %806 : vector<8x64xf32>
    %cst_180 = arith.constant 1.000000e+00 : f32
    %808 = vector.broadcast %cst_180 : f32 to vector<8x64xf32>
    %809 = arith.addf %808, %807 : vector<8x64xf32>
    %810 = arith.divf %808, %809 : vector<8x64xf32>
    %811 = vector.extract_strided_slice %804 {offsets = [0, 64], sizes = [8, 64], strides = [1, 1]} : vector<8x256xf32> to vector<8x64xf32>
    %812 = arith.negf %811 : vector<8x64xf32>
    %813 = math.exp %812 : vector<8x64xf32>
    %cst_181 = arith.constant 1.000000e+00 : f32
    %814 = vector.broadcast %cst_181 : f32 to vector<8x64xf32>
    %815 = arith.addf %814, %813 : vector<8x64xf32>
    %816 = arith.divf %814, %815 : vector<8x64xf32>
    %817 = vector.extract_strided_slice %804 {offsets = [0, 128], sizes = [8, 64], strides = [1, 1]} : vector<8x256xf32> to vector<8x64xf32>
    %818 = math.tanh %817 : vector<8x64xf32>
    %819 = vector.extract_strided_slice %804 {offsets = [0, 192], sizes = [8, 64], strides = [1, 1]} : vector<8x256xf32> to vector<8x64xf32>
    %820 = arith.negf %819 : vector<8x64xf32>
    %821 = math.exp %820 : vector<8x64xf32>
    %cst_182 = arith.constant 1.000000e+00 : f32
    %822 = vector.broadcast %cst_182 : f32 to vector<8x64xf32>
    %823 = arith.addf %822, %821 : vector<8x64xf32>
    %824 = arith.divf %822, %823 : vector<8x64xf32>
    %825 = arith.mulf %816, %798 : vector<8x64xf32>
    %826 = arith.mulf %810, %818 : vector<8x64xf32>
    %827 = arith.addf %825, %826 : vector<8x64xf32>
    %828 = math.tanh %827 : vector<8x64xf32>
    %829 = arith.mulf %824, %828 : vector<8x64xf32>
    %c24_183 = arith.constant 24 : index
    %c0_184 = arith.constant 0 : index
    %830 = vector.load %arg16[%c24_183, %c0_184] : memref<64x64xf32, #tpu.memory_space<vmem>>, vector<8x64xf32>
    tpu.vector_store %arg16[%c24_183, %c0_184], %829 {strides = array<i32>} : memref<64x64xf32, #tpu.memory_space<vmem>>, vector<8x64xf32>,
    %831 = vector.extract_strided_slice %711 {offsets = [32, 0], sizes = [8, 256], strides = [1, 1]} : vector<64x256xf32> to vector<8x256xf32>
    %cst_185 = arith.constant dense<0.000000e+00> : vector<8x256xf32>
    %832 = tpu.matmul %829, %712, %cst_185 {dimension_numbers = #tpu.dot_dimension_numbers<[1], [0], [0], [1], [0, 0, 1, 1], [], []>} : vector<8x64xf32>, vector<64x256xf32>, vector<8x256xf32> -> vector<8x256xf32>
    %833 = arith.addf %831, %832 : vector<8x256xf32>
    %834 = vector.extract_strided_slice %833 {offsets = [0, 0], sizes = [8, 64], strides = [1, 1]} : vector<8x256xf32> to vector<8x64xf32>
    %835 = arith.negf %834 : vector<8x64xf32>
    %836 = math.exp %835 : vector<8x64xf32>
    %cst_186 = arith.constant 1.000000e+00 : f32
    %837 = vector.broadcast %cst_186 : f32 to vector<8x64xf32>
    %838 = arith.addf %837, %836 : vector<8x64xf32>
    %839 = arith.divf %837, %838 : vector<8x64xf32>
    %840 = vector.extract_strided_slice %833 {offsets = [0, 64], sizes = [8, 64], strides = [1, 1]} : vector<8x256xf32> to vector<8x64xf32>
    %841 = arith.negf %840 : vector<8x64xf32>
    %842 = math.exp %841 : vector<8x64xf32>
    %cst_187 = arith.constant 1.000000e+00 : f32
    %843 = vector.broadcast %cst_187 : f32 to vector<8x64xf32>
    %844 = arith.addf %843, %842 : vector<8x64xf32>
    %845 = arith.divf %843, %844 : vector<8x64xf32>
    %846 = vector.extract_strided_slice %833 {offsets = [0, 128], sizes = [8, 64], strides = [1, 1]} : vector<8x256xf32> to vector<8x64xf32>
    %847 = math.tanh %846 : vector<8x64xf32>
    %848 = vector.extract_strided_slice %833 {offsets = [0, 192], sizes = [8, 64], strides = [1, 1]} : vector<8x256xf32> to vector<8x64xf32>
    %849 = arith.negf %848 : vector<8x64xf32>
    %850 = math.exp %849 : vector<8x64xf32>
    %cst_188 = arith.constant 1.000000e+00 : f32
    %851 = vector.broadcast %cst_188 : f32 to vector<8x64xf32>
    %852 = arith.addf %851, %850 : vector<8x64xf32>
    %853 = arith.divf %851, %852 : vector<8x64xf32>
    %854 = arith.mulf %845, %827 : vector<8x64xf32>
    %855 = arith.mulf %839, %847 : vector<8x64xf32>
    %856 = arith.addf %854, %855 : vector<8x64xf32>
    %857 = math.tanh %856 : vector<8x64xf32>
    %858 = arith.mulf %853, %857 : vector<8x64xf32>
    %c32_189 = arith.constant 32 : index
    %c0_190 = arith.constant 0 : index
    %859 = vector.load %arg16[%c32_189, %c0_190] : memref<64x64xf32, #tpu.memory_space<vmem>>, vector<8x64xf32>
    tpu.vector_store %arg16[%c32_189, %c0_190], %858 {strides = array<i32>} : memref<64x64xf32, #tpu.memory_space<vmem>>, vector<8x64xf32>,
    %860 = vector.extract_strided_slice %711 {offsets = [40, 0], sizes = [8, 256], strides = [1, 1]} : vector<64x256xf32> to vector<8x256xf32>
    %cst_191 = arith.constant dense<0.000000e+00> : vector<8x256xf32>
    %861 = tpu.matmul %858, %712, %cst_191 {dimension_numbers = #tpu.dot_dimension_numbers<[1], [0], [0], [1], [0, 0, 1, 1], [], []>} : vector<8x64xf32>, vector<64x256xf32>, vector<8x256xf32> -> vector<8x256xf32>
    %862 = arith.addf %860, %861 : vector<8x256xf32>
    %863 = vector.extract_strided_slice %862 {offsets = [0, 0], sizes = [8, 64], strides = [1, 1]} : vector<8x256xf32> to vector<8x64xf32>
    %864 = arith.negf %863 : vector<8x64xf32>
    %865 = math.exp %864 : vector<8x64xf32>
    %cst_192 = arith.constant 1.000000e+00 : f32
    %866 = vector.broadcast %cst_192 : f32 to vector<8x64xf32>
    %867 = arith.addf %866, %865 : vector<8x64xf32>
    %868 = arith.divf %866, %867 : vector<8x64xf32>
    %869 = vector.extract_strided_slice %862 {offsets = [0, 64], sizes = [8, 64], strides = [1, 1]} : vector<8x256xf32> to vector<8x64xf32>
    %870 = arith.negf %869 : vector<8x64xf32>
    %871 = math.exp %870 : vector<8x64xf32>
    %cst_193 = arith.constant 1.000000e+00 : f32
    %872 = vector.broadcast %cst_193 : f32 to vector<8x64xf32>
    %873 = arith.addf %872, %871 : vector<8x64xf32>
    %874 = arith.divf %872, %873 : vector<8x64xf32>
    %875 = vector.extract_strided_slice %862 {offsets = [0, 128], sizes = [8, 64], strides = [1, 1]} : vector<8x256xf32> to vector<8x64xf32>
    %876 = math.tanh %875 : vector<8x64xf32>
    %877 = vector.extract_strided_slice %862 {offsets = [0, 192], sizes = [8, 64], strides = [1, 1]} : vector<8x256xf32> to vector<8x64xf32>
    %878 = arith.negf %877 : vector<8x64xf32>
    %879 = math.exp %878 : vector<8x64xf32>
    %cst_194 = arith.constant 1.000000e+00 : f32
    %880 = vector.broadcast %cst_194 : f32 to vector<8x64xf32>
    %881 = arith.addf %880, %879 : vector<8x64xf32>
    %882 = arith.divf %880, %881 : vector<8x64xf32>
    %883 = arith.mulf %874, %856 : vector<8x64xf32>
    %884 = arith.mulf %868, %876 : vector<8x64xf32>
    %885 = arith.addf %883, %884 : vector<8x64xf32>
    %886 = math.tanh %885 : vector<8x64xf32>
    %887 = arith.mulf %882, %886 : vector<8x64xf32>
    %c40_195 = arith.constant 40 : index
    %c0_196 = arith.constant 0 : index
    %888 = vector.load %arg16[%c40_195, %c0_196] : memref<64x64xf32, #tpu.memory_space<vmem>>, vector<8x64xf32>
    tpu.vector_store %arg16[%c40_195, %c0_196], %887 {strides = array<i32>} : memref<64x64xf32, #tpu.memory_space<vmem>>, vector<8x64xf32>,
    %889 = vector.extract_strided_slice %711 {offsets = [48, 0], sizes = [8, 256], strides = [1, 1]} : vector<64x256xf32> to vector<8x256xf32>
    %cst_197 = arith.constant dense<0.000000e+00> : vector<8x256xf32>
    %890 = tpu.matmul %887, %712, %cst_197 {dimension_numbers = #tpu.dot_dimension_numbers<[1], [0], [0], [1], [0, 0, 1, 1], [], []>} : vector<8x64xf32>, vector<64x256xf32>, vector<8x256xf32> -> vector<8x256xf32>
    %891 = arith.addf %889, %890 : vector<8x256xf32>
    %892 = vector.extract_strided_slice %891 {offsets = [0, 0], sizes = [8, 64], strides = [1, 1]} : vector<8x256xf32> to vector<8x64xf32>
    %893 = arith.negf %892 : vector<8x64xf32>
    %894 = math.exp %893 : vector<8x64xf32>
    %cst_198 = arith.constant 1.000000e+00 : f32
    %895 = vector.broadcast %cst_198 : f32 to vector<8x64xf32>
    %896 = arith.addf %895, %894 : vector<8x64xf32>
    %897 = arith.divf %895, %896 : vector<8x64xf32>
    %898 = vector.extract_strided_slice %891 {offsets = [0, 64], sizes = [8, 64], strides = [1, 1]} : vector<8x256xf32> to vector<8x64xf32>
    %899 = arith.negf %898 : vector<8x64xf32>
    %900 = math.exp %899 : vector<8x64xf32>
    %cst_199 = arith.constant 1.000000e+00 : f32
    %901 = vector.broadcast %cst_199 : f32 to vector<8x64xf32>
    %902 = arith.addf %901, %900 : vector<8x64xf32>
    %903 = arith.divf %901, %902 : vector<8x64xf32>
    %904 = vector.extract_strided_slice %891 {offsets = [0, 128], sizes = [8, 64], strides = [1, 1]} : vector<8x256xf32> to vector<8x64xf32>
    %905 = math.tanh %904 : vector<8x64xf32>
    %906 = vector.extract_strided_slice %891 {offsets = [0, 192], sizes = [8, 64], strides = [1, 1]} : vector<8x256xf32> to vector<8x64xf32>
    %907 = arith.negf %906 : vector<8x64xf32>
    %908 = math.exp %907 : vector<8x64xf32>
    %cst_200 = arith.constant 1.000000e+00 : f32
    %909 = vector.broadcast %cst_200 : f32 to vector<8x64xf32>
    %910 = arith.addf %909, %908 : vector<8x64xf32>
    %911 = arith.divf %909, %910 : vector<8x64xf32>
    %912 = arith.mulf %903, %885 : vector<8x64xf32>
    %913 = arith.mulf %897, %905 : vector<8x64xf32>
    %914 = arith.addf %912, %913 : vector<8x64xf32>
    %915 = math.tanh %914 : vector<8x64xf32>
    %916 = arith.mulf %911, %915 : vector<8x64xf32>
    %c48_201 = arith.constant 48 : index
    %c0_202 = arith.constant 0 : index
    %917 = vector.load %arg16[%c48_201, %c0_202] : memref<64x64xf32, #tpu.memory_space<vmem>>, vector<8x64xf32>
    tpu.vector_store %arg16[%c48_201, %c0_202], %916 {strides = array<i32>} : memref<64x64xf32, #tpu.memory_space<vmem>>, vector<8x64xf32>,
    %918 = vector.extract_strided_slice %711 {offsets = [56, 0], sizes = [8, 256], strides = [1, 1]} : vector<64x256xf32> to vector<8x256xf32>
    %cst_203 = arith.constant dense<0.000000e+00> : vector<8x256xf32>
    %919 = tpu.matmul %916, %712, %cst_203 {dimension_numbers = #tpu.dot_dimension_numbers<[1], [0], [0], [1], [0, 0, 1, 1], [], []>} : vector<8x64xf32>, vector<64x256xf32>, vector<8x256xf32> -> vector<8x256xf32>
    %920 = arith.addf %918, %919 : vector<8x256xf32>
    %921 = vector.extract_strided_slice %920 {offsets = [0, 0], sizes = [8, 64], strides = [1, 1]} : vector<8x256xf32> to vector<8x64xf32>
    %922 = arith.negf %921 : vector<8x64xf32>
    %923 = math.exp %922 : vector<8x64xf32>
    %cst_204 = arith.constant 1.000000e+00 : f32
    %924 = vector.broadcast %cst_204 : f32 to vector<8x64xf32>
    %925 = arith.addf %924, %923 : vector<8x64xf32>
    %926 = arith.divf %924, %925 : vector<8x64xf32>
    %927 = vector.extract_strided_slice %920 {offsets = [0, 64], sizes = [8, 64], strides = [1, 1]} : vector<8x256xf32> to vector<8x64xf32>
    %928 = arith.negf %927 : vector<8x64xf32>
    %929 = math.exp %928 : vector<8x64xf32>
    %cst_205 = arith.constant 1.000000e+00 : f32
    %930 = vector.broadcast %cst_205 : f32 to vector<8x64xf32>
    %931 = arith.addf %930, %929 : vector<8x64xf32>
    %932 = arith.divf %930, %931 : vector<8x64xf32>
    %933 = vector.extract_strided_slice %920 {offsets = [0, 128], sizes = [8, 64], strides = [1, 1]} : vector<8x256xf32> to vector<8x64xf32>
    %934 = math.tanh %933 : vector<8x64xf32>
    %935 = vector.extract_strided_slice %920 {offsets = [0, 192], sizes = [8, 64], strides = [1, 1]} : vector<8x256xf32> to vector<8x64xf32>
    %936 = arith.negf %935 : vector<8x64xf32>
    %937 = math.exp %936 : vector<8x64xf32>
    %cst_206 = arith.constant 1.000000e+00 : f32
    %938 = vector.broadcast %cst_206 : f32 to vector<8x64xf32>
    %939 = arith.addf %938, %937 : vector<8x64xf32>
    %940 = arith.divf %938, %939 : vector<8x64xf32>
    %941 = arith.mulf %932, %914 : vector<8x64xf32>
    %942 = arith.mulf %926, %934 : vector<8x64xf32>
    %943 = arith.addf %941, %942 : vector<8x64xf32>
    %944 = math.tanh %943 : vector<8x64xf32>
    %945 = arith.mulf %940, %944 : vector<8x64xf32>
    %c56_207 = arith.constant 56 : index
    %c0_208 = arith.constant 0 : index
    %946 = vector.load %arg16[%c56_207, %c0_208] : memref<64x64xf32, #tpu.memory_space<vmem>>, vector<8x64xf32>
    tpu.vector_store %arg16[%c56_207, %c0_208], %945 {strides = array<i32>} : memref<64x64xf32, #tpu.memory_space<vmem>>, vector<8x64xf32>,
    %c0_209 = arith.constant 0 : index
    %c0_210 = arith.constant 0 : index
    %947 = vector.load %arg16[%c0_209, %c0_210] : memref<64x64xf32, #tpu.memory_space<vmem>>, vector<64x64xf32>
    %c0_211 = arith.constant 0 : index
    %c0_212 = arith.constant 0 : index
    %948 = vector.load %arg13[%c0_211, %c0_212] : memref<64x4xf32, #tpu.memory_space<vmem>>, vector<64x4xf32>
    %cst_213 = arith.constant dense<0.000000e+00> : vector<64x4xf32>
    %949 = tpu.matmul %947, %948, %cst_213 {dimension_numbers = #tpu.dot_dimension_numbers<[1], [0], [0], [1], [0, 0, 1, 1], [], []>} : vector<64x64xf32>, vector<64x4xf32>, vector<64x4xf32> -> vector<64x4xf32>
    %c0_214 = arith.constant 0 : index
    %c0_215 = arith.constant 0 : index
    %950 = vector.load %arg14[%c0_214, %c0_215] : memref<1x4xf32, #tpu.memory_space<vmem>>, vector<1x4xf32>
    %951 = vector.broadcast %950 : vector<1x4xf32> to vector<64x4xf32>
    %952 = arith.addf %949, %951 : vector<64x4xf32>
    %c0_216 = arith.constant 0 : index
    %c0_217 = arith.constant 0 : index
    %953 = vector.load %arg15[%c0_216, %c0_217] : memref<64x4xf32, #tpu.memory_space<vmem>>, vector<64x4xf32>
    tpu.vector_store %arg15[%c0_216, %c0_217], %952 {strides = array<i32>} : memref<64x4xf32, #tpu.memory_space<vmem>>, vector<64x4xf32>,
    return
  }
}

</mosaic_0001>

<bundles_post_ra>
// kernel: lstm_autoencoder_forward.1
= control target key start
LH: loop header
LB: loop body
LE: loop exit
PB: predicated region body
PF: predicated region fallthrough
CT: control target
= control target key end

     0   :  { %20 = vsyncpa [#allocation5], 0  ;;  %s5033_s0 = inlined_call_operand.vmem [shape: f32[64,4], index: 0, kind: input, shape index: {}]   ;;  %s5034_s1 = inlined_call_operand.vmem [shape: f32[4,256], index: 1, kind: input, shape index: {}]   ;;  %s5035_s2 = inlined_call_operand.vmem [shape: f32[64,256], index: 2, kind: input, shape index: {}]   ;;  %s5036_s3 = inlined_call_operand.vmem [shape: f32[1,256], index: 3, kind: input, shape index: {}]   ;;  %s5037_s4 = inlined_call_operand.hbm [shape: f32[64,128], index: 4, kind: input, shape index: {}]   ;;  %s5038_s5 = inlined_call_operand.vmem [shape: f32[32,128], index: 5, kind: input, shape index: {}]   ;;  %s5039_s6 = inlined_call_operand.vmem [shape: f32[1,128], index: 6, kind: input, shape index: {}]   ;;  %s5040_s7 = inlined_call_operand.hbm [shape: f32[32,128], index: 7, kind: input, shape index: {}]   ;;  %s5041_s8 = inlined_call_operand.hbm [shape: f32[32,128], index: 8, kind: input, shape index: {}]   ;;  %s5042_s9 = inlined_call_operand.hbm [shape: f32[1,128], index: 9, kind: input, shape index: {}]   ;;  %s5043_s10 = inlined_call_operand.hbm [shape: f32[32,256], index: 10, kind: input, shape index: {}]   ;;  %s5044_s11 = inlined_call_operand.hbm [shape: f32[64,256], index: 11, kind: input, shape index: {}]   ;;  %s5045_s12 = inlined_call_operand.hbm [shape: f32[1,256], index: 12, kind: input, shape index: {}]   ;;  %s5046_s13 = inlined_call_operand.vmem [shape: f32[64,4], index: 13, kind: input, shape index: {}]   ;;  %s5047_s14 = inlined_call_operand.vmem [shape: f32[1,4], index: 14, kind: input, shape index: {}]   ;;  %s5048_s15 = inlined_call_operand.vmem [shape: f32[64,4], index: 15, kind: output, shape index: {}]  }
   0x1   :  { %21 = vsyncpa [#allocation7], 0 }
   0x2   :  { %22 = vsyncpa [#allocation10], 0 }
   0x3   :  { %23 = vsyncpa [#allocation13], 0  ;;  %s53_s20 = sshll.u32 %s5040_s7, 4  ;;  %s3904_s21 = smov [#allocation6]   ;;  %s54_s20 = int_to_ptr.hbm [resolvable:$true] %s53_s20 }
   0x4   :  { %s55_s22 = sshll.u32 %s3904_s21, 4  ;;  %s80_s25 = sshll.u32 %s5042_s9, 4  ;;  %s56_s22 = int_to_ptr.vmem [resolvable:$true] %s55_s22  ;;  %s81_s25 = int_to_ptr.hbm [resolvable:$true] %s80_s25 }
   0x5   :  { %s3905_s26 = smov 128   ;;  %s3906_s27 = smov 8  }
   0x6   :  { %61 = dma.hbm_to_vmem [thread:$0]  %s54_s20, 512, %s56_s22, [#allocation7], %s3905_s26, %s3905_s26, %s3906_s27  }
   0x7   :  { %s3907_s28 = smov [#allocation9]   ;;  %s103_s16 = sshll.u32 %s5044_s11, 4  ;;  %s104_s16 = int_to_ptr.hbm [resolvable:$true] %s103_s16 }
   0x8   :  { %s82_s29 = sshll.u32 %s3907_s28, 4  ;;  %s3908_s17 = smov [#allocation12]   ;;  %s83_s29 = int_to_ptr.vmem [resolvable:$true] %s82_s29 }
   0x9   :  { %85 = dma.hbm_to_vmem [thread:$0]  %s81_s25, 16, %s83_s29, [#allocation10]  }
   0xa   :  { %s105_s18 = sshll.u32 %s3908_s17, 4  ;;  %s36_s21 = sshll.u32 %s5037_s4, 4  ;;  %s106_s18 = int_to_ptr.vmem [resolvable:$true] %s105_s18  ;;  %s37_s21 = int_to_ptr.hbm [resolvable:$true] %s36_s21 }
   0xb   :  { %s3909_s23 = smov 256   ;;  %s3910_s24 = smov 16  }
   0xc   :  { %111 = dma.hbm_to_vmem [thread:$0]  %s104_s16, 2048, %s106_s18, [#allocation13], %s3909_s23, %s3909_s23, %s3910_s24  }
   0xd   :  { %s3911_s20 = smov [#allocation4]   ;;  %s66_s29 = sshll.u32 %s5041_s8, 4  ;;  %s67_s29 = int_to_ptr.hbm [resolvable:$true] %s66_s29 }
   0xe   :  { %s38_s22 = sshll.u32 %s3911_s20, 4  ;;  %s90_s4 = sshll.u32 %s5043_s10, 4  ;;  %s39_s22 = int_to_ptr.vmem [resolvable:$true] %s38_s22  ;;  %s91_s4 = int_to_ptr.hbm [resolvable:$true] %s90_s4 }
   0xf   :  { %44 = dma.hbm_to_vmem [thread:$0]  %s37_s21, 1024, %s39_s22, [#allocation5], %s3905_s26, %s3905_s26, %s3906_s27  }
  0x10   :  { %s3912_s30 = smov [#allocation8]   ;;  %s3913_s16 = smov [#allocation11]  }
  0x11   :  { %s68_s17 = sshll.u32 %s3912_s30, 4  ;;  %s92_s8 = sshll.u32 %s3913_s16, 4  ;;  %s69_s17 = int_to_ptr.vmem [resolvable:$true] %s68_s17  ;;  %s93_s8 = int_to_ptr.vmem [resolvable:$true] %s92_s8 }
  0x12   :  { %74 = dma.hbm_to_vmem [thread:$0]  %s67_s29, 512, %s69_s17, [#allocation7], %s3905_s26, %s3905_s26, %s3906_s27  }
  0x13   :  { %s117_s19 = sshll.u32 %s5045_s12, 4  ;;  %s3914_s21 = smov [#allocation14]   ;;  %s118_s19 = int_to_ptr.hbm [resolvable:$true] %s117_s19 }
  0x14   :  { %98 = dma.hbm_to_vmem [thread:$0]  %s91_s4, 1024, %s93_s8, [#allocation10], %s3909_s23, %s3909_s23, %s3910_s24  }
  0x15   :  { %s119_s20 = sshll.u32 %s3914_s21, 4  ;;  %s120_s20 = int_to_ptr.vmem [resolvable:$true] %s119_s20 }
  0x16   :  { %122 = dma.hbm_to_vmem [thread:$0]  %s118_s19, 32, %s120_s20, [#allocation13]  }
  0x17   :  { %3896 = dma.done.wait [#allocation5], 1024  }
  0x18   :  { %3897 = vsyncadd [#allocation5], 4294966272 }
  0x19   :  { %3898 = dma.done.wait [#allocation7], 1024  }
  0x1a   :  { %3899 = vsyncadd [#allocation7], 4294966272 }
  0x1b   :  { %3900 = dma.done.wait [#allocation10], 1040  }
  0x1c   :  { %3901 = vsyncadd [#allocation10], 4294966256 }
  0x1d   :  { %3902 = dma.done.wait [#allocation13], 2080  }
  0x1e   :  { %3903 = vsyncadd [#allocation13], 4294965216  ;;  %v4031_v0 = vld [vmem:[%s5035_s2 + $0x70] sm:$0xff]  ;;  %v4036_v1 = vld [vmem:[%s5035_s2 + $0x60] sm:$0xff]  ;;  %vm199_vm0 = vcmask 1043456   ;;  %vm174_vm1 = vcmask 31744  }
  0x1f   :  { %314 = vmatpush.msra.mxu2 %v4031_v0  ;;  %v4042_v2 = vld [vmem:[%s5035_s2 + $0x78] sm:$0xff]  ;;  %v4047_v3 = vld [vmem:[%s5035_s2 + $0x50] sm:$0xff]  ;;  %v163_v4 = vld [vmem:[%s5034_s1] sm:$0xff]  ;;  %v3915_v21 = vmov 0.0   ;;  %vm302_vm10 = vcmask 523264  }
  0x20   :  { %334 = vmatpush.msra.mxu3 %v4042_v2  ;;  %v4056_v5 = vld [vmem:[%s5035_s2 + $0x68] sm:$0xff]  ;;  %171 = vst [vmem:[#allocation1] ss:$2 sm:$0xff] %v163_v4  ;;  %v4062_v6 = vld [vmem:[%s5035_s2 + $0x58] sm:$0xff]  ;;  %v4067_v7 = vld [vmem:[%s5035_s2 + $0x40] sm:$0xff] }
  0x21   :  { %315 = vmatpush.msra.mxu2 %v4036_v1  ;;  %v4074_v8 = vld [vmem:[%s5035_s2 + $0x48] sm:$0xff]  ;;  %v4079_v9 = vld [vmem:[%s5035_s2 + $0x30] sm:$0xff]  ;;  %v4086_v10 = vld [vmem:[%s5035_s2 + $0x38] sm:$0xff] }
  0x22   :  { %335 = vmatpush.msra.mxu3 %v4056_v5  ;;  %v4091_v11 = vld [vmem:[%s5035_s2 + $0x20] sm:$0xff]  ;;  %v4098_v12 = vld [vmem:[%s5033_s0 + $0x30] sm:$0xff]  ;;  %v4109_v15 = vld [vmem:[%s5035_s2 + $0x28] sm:$0xff] }
  0x23   :  { %316 = vmatpush.msra.mxu2 %v4047_v3  ;;  %v4103_v14 = vld [vmem:[%s5035_s2 + $0x10] sm:$0xff]  ;;  %v155_v16 = vld [vmem:[%s5033_s0] sm:$0xff]  ;;  %v4127_v19 = vld [vmem:[%s5035_s2 + $0x18] sm:$0xff] }
  0x24   :  { %336 = vmatpush.msra.mxu3 %v4062_v6  ;;  %v4121_v18 = vld [vmem:[%s5035_s2] sm:$0xff]  ;;  %v4135_v20 = vld [vmem:[%s5035_s2 + $0x8] sm:$0xff]  ;;  %v4145_v22 = vld [vmem:[%s5033_s0 + $0x38] sm:$0xff] }
  0x25   :  { %317 = vmatpush.msra.mxu2 %v4067_v7  ;;  %v164_v23 = vld [vmem:[%s5036_s3] sm:$0x3]  ;;  %s3916_s3 = smov 64  }
  0x26   :  { %337 = vmatpush.msra.mxu3 %v4074_v8  ;;  %v4218_v24 = vperm.slane %v164_v23, 0  ;;  %v4225_v34 = vperm.slane %v164_v23, 1 }
  0x27   :  { %318 = vmatpush.msra.mxu2 %v4079_v9  ;;  %v172_v13 = vld.sshfl [vmem:[#allocation1] sm:$0xff pattern:$0x75316420]  ;;  %v173_v17 = vld.sshfl [vmem:[#allocation1 + $0x8] sm:$0xff pattern:$0x75316420] }
  0x28   :  { %338 = vmatpush.msra.mxu3 %v4086_v10  ;;  %3386 = vmatpush.msk.msra.mxu1 %vm199_vm0, %v172_v13 }
  0x29   :  { %319 = vmatpush.msra.mxu2 %v4091_v11  ;;  %3252 = vmatmul.msk.f32.vlgmr.msra.gmra.mxu1 %vm174_vm1, %v4098_v12 }
  0x2a   :  { %3245 = vmatpush.msk.msra.mxu0 %vm199_vm0, %v172_v13  ;;  %339 = vmatpush.msra.mxu3 %v4109_v15 }
  0x2b   :  { %320 = vmatpush.msra.mxu2 %v4103_v14  ;;  %3246 = vmatmul.msk.f32.vlgmr.msra.gmra.mxu0 %vm174_vm1, %v155_v16 }
  0x2c   :  { %3254 = vmatpush.msk.msrb.mxu1 %vm199_vm0, %v173_v17  ;;  %340 = vmatpush.msra.mxu3 %v4127_v19 }
  0x2d   :  { %321 = vmatpush.msra.mxu2 %v4121_v18  ;;  %702 = vmatpush.msrb.mxu0 %v4031_v0 }
  0x2e   :  { %322 = vmatmul.f32.vlgmr.msra.gmra.mxu2 %v3915_v21  ;;  %341 = vmatpush.msra.mxu3 %v4135_v20 }
  0x2f   :  { %411 = vmatpush.msrb.mxu2 %v4031_v0  ;;  %342 = vmatmul.f32.vlgmr.msra.gmra.mxu3 %v3915_v21 }
  0x30   :  { %722 = vmatpush.msra.mxu1 %v4042_v2  ;;  %431 = vmatpush.msrb.mxu3 %v4042_v2 }
  0x31   :  { %412 = vmatpush.msrb.mxu2 %v4036_v1  ;;  %3253 = vmatmul.msk.f32.gmra.mxu1 %vm174_vm1, %v4145_v22 }
  0x32   :  { %703 = vmatpush.msrb.mxu0 %v4036_v1  ;;  %432 = vmatpush.msrb.mxu3 %v4056_v5 }
  0x33   :  { %413 = vmatpush.msrb.mxu2 %v4047_v3  ;;  %723 = vmatpush.msra.mxu1 %v4056_v5 }
  0x34   :  { %704 = vmatpush.msrb.mxu0 %v4047_v3  ;;  %433 = vmatpush.msrb.mxu3 %v4062_v6 }
  0x35   :  { %414 = vmatpush.msrb.mxu2 %v4067_v7  ;;  %724 = vmatpush.msra.mxu1 %v4062_v6 }
  0x36   :  { %705 = vmatpush.msrb.mxu0 %v4067_v7  ;;  %434 = vmatpush.msrb.mxu3 %v4074_v8 }
  0x37   :  { %415 = vmatpush.msrb.mxu2 %v4079_v9  ;;  %725 = vmatpush.msra.mxu1 %v4074_v8 }
  0x38   :  { %706 = vmatpush.msrb.mxu0 %v4079_v9  ;;  %435 = vmatpush.msrb.mxu3 %v4086_v10 }
  0x39   :  { %416 = vmatpush.msrb.mxu2 %v4091_v11  ;;  %3255 = vmatmul.msk.f32.vlgmr.msrb.gmra.mxu1 %vm174_vm1, %v155_v16 }
  0x3a   :  { %707 = vmatpush.msrb.mxu0 %v4091_v11  ;;  %436 = vmatpush.msrb.mxu3 %v4109_v15 }
  0x3b   :  { %417 = vmatpush.msrb.mxu2 %v4103_v14  ;;  %726 = vmatpush.msra.mxu1 %v4086_v10 }
  0x3c   :  { %708 = vmatpush.msrb.mxu0 %v4103_v14  ;;  %437 = vmatpush.msrb.mxu3 %v4127_v19 }
  0x3d   :  { %418 = vmatpush.msrb.mxu2 %v4121_v18  ;;  %727 = vmatpush.msra.mxu1 %v4109_v15 }
  0x3e   :  { %709 = vmatpush.msrb.mxu0 %v4121_v18  ;;  %438 = vmatpush.msrb.mxu3 %v4135_v20 }
  0x3f   :  { %508 = vmatpush.msra.mxu2 %v4031_v0  ;;  %728 = vmatpush.msra.mxu1 %v4127_v19 }
  0x40   :  { %528 = vmatpush.msra.mxu3 %v4042_v2  ;;  %896 = vmatpush.msra.mxu0 %v4031_v0 }
  0x41   :  { %509 = vmatpush.msra.mxu2 %v4036_v1  ;;  %729 = vmatpush.msra.mxu1 %v4135_v20 }
  0x42   :  { %529 = vmatpush.msra.mxu3 %v4056_v5  ;;  %897 = vmatpush.msra.mxu0 %v4036_v1 }
  0x43   :  { %510 = vmatpush.msra.mxu2 %v4047_v3  ;;  %916 = vmatpush.msrb.mxu1 %v4042_v2 }
  0x44   :  { %530 = vmatpush.msra.mxu3 %v4062_v6  ;;  %898 = vmatpush.msra.mxu0 %v4047_v3 }
  0x45   :  { %511 = vmatpush.msra.mxu2 %v4067_v7  ;;  %917 = vmatpush.msrb.mxu1 %v4056_v5 }
  0x46   :  { %531 = vmatpush.msra.mxu3 %v4074_v8  ;;  %899 = vmatpush.msra.mxu0 %v4067_v7 }
  0x47   :  { %512 = vmatpush.msra.mxu2 %v4079_v9  ;;  %918 = vmatpush.msrb.mxu1 %v4062_v6 }
  0x48   :  { %532 = vmatpush.msra.mxu3 %v4086_v10  ;;  %900 = vmatpush.msra.mxu0 %v4079_v9 }
  0x49   :  { %513 = vmatpush.msra.mxu2 %v4091_v11  ;;  %919 = vmatpush.msrb.mxu1 %v4074_v8 }
  0x4a   :  { %533 = vmatpush.msra.mxu3 %v4109_v15  ;;  %901 = vmatpush.msra.mxu0 %v4091_v11 }
  0x4b   :  { %514 = vmatpush.msra.mxu2 %v4103_v14  ;;  %920 = vmatpush.msrb.mxu1 %v4086_v10 }
  0x4c   :  { %534 = vmatpush.msra.mxu3 %v4127_v19  ;;  %902 = vmatpush.msra.mxu0 %v4103_v14 }
  0x4d   :  { %515 = vmatpush.msra.mxu2 %v4121_v18  ;;  %921 = vmatpush.msrb.mxu1 %v4109_v15 }
  0x4e   :  { %535 = vmatpush.msra.mxu3 %v4135_v20  ;;  %903 = vmatpush.msra.mxu0 %v4121_v18 }
  0x4f   :  { %922 = vmatpush.msrb.mxu1 %v4127_v19 }
  0x51   :  { %923 = vmatpush.msrb.mxu1 %v4135_v20 }
  0xa6   :  { %v4220_v25 = vpop.f32.mrf.mxu1 }
  0xa8   :  { %v221_v26 = vpop.f32.mrf.mxu0 }
  0xa9   :  { %v222_v27 = vadd.f32 %v221_v26, %v4218_v24  ;;  %v156_v26 = vld [vmem:[%s5033_s0 + $0x8] sm:$0xff] }
  0xaa   :  { %3247 = vmatmul.msk.f32.gmra.mxu0 %vm174_vm1, %v156_v26  ;;  %3256 = vmatmul.msk.f32.gmra.mxu1 %vm174_vm1, %v156_v26 }
  0xae   :  { %v4223_v30 = vpop.f32.mrf.mxu1 }
  0xb1   :  { %v323_v28 = vpop.f32.mrf.mxu2 }
  0xb2   :  { %v346_v29 = vadd.f32 %v323_v28, %v222_v27  ;;  %v343_v37 = vpop.f32.mrf.mxu3 }
  0xb4   :  { %v3263_v31 = vmul.f32 -1.442695, %v346_v29 }
  0xb6   :  { %3408 = vpow2.f32 %v3263_v31  ;;  %v262_v35 = vpop.f32.mrf.mxu1 }
  0xb7   :  { %v263_v36 = vadd.f32 %v262_v35, %v4225_v34 }
  0xb9   :  { %v347_v39 = vadd.f32 %v343_v37, %v263_v36 }
  0xbb   :  { %v3264_v51 = vmul.f32 -1.442695, %v347_v39 }
  0xbc   :  { %v3409_v32 = vpop.eup %3408 }
  0xbd   :  { %v351_v33 = vadd.f32 1.0, %v3409_v32 }
  0xbf   :  { %3410 = vrcp.f32 %v351_v33  ;;  %v363_v42 = vand.u32 2147483648, %v351_v33  ;;  %v361_v44 = vand.u32 2147483647, %v351_v33  ;;  %vm357_vm3 = vweird.f32 %v351_v33 }
  0xc0   :  { %3412 = vtanh.f32 %v347_v39 }
  0xc1   :  { %v364_v47 = vor.u32 1.1754944e-38, %v363_v42  ;;  %vm362_vm5 = vcmp.eq.f32.partialorder %v361_v44, 8.507059e+37  ;;  %3414 = vpow2.f32 %v3264_v51 }
  0xc5   :  { %v3411_v38 = vpop.eup %3410 }
  0xc6   :  { %v353_v40 = vmul.f32 %v3411_v38, %v351_v33  ;;  %vm358_vm2 = vweird.f32 %v3411_v38  ;;  %v3413_v46 = vpop.eup %3412 }
  0xc7   :  { %vm359_vm4 = vmor %vm357_vm3, %vm358_vm2  ;;  %v3415_v52 = vpop.eup %3414 }
  0xc8   :  { %v354_v41 = vsub.f32 1.0, %v353_v40  ;;  %v371_v53 = vadd.f32 1.0, %v3415_v52 }
  0xca   :  { %v355_v43 = vmul.f32 %v3411_v38, %v354_v41  ;;  %3416 = vrcp.f32 %v371_v53  ;;  %vm377_vm6 = vweird.f32 %v371_v53  ;;  %v383_v61 = vand.u32 2147483648, %v371_v53 }
  0xcb   :  { %v381_v63 = vand.u32 2147483647, %v371_v53 }
  0xcc   :  { %v356_v45 = vadd.f32 %v3411_v38, %v355_v43  ;;  %v384_v4 = vor.u32 1.1754944e-38, %v383_v61 }
  0xcd   :  { %vm382_vm9 = vcmp.eq.f32.partialorder %v381_v63, 8.507059e+37 }
  0xce   :  { %v360_v48 = vsel %vm359_vm4, %v3411_v38, %v356_v45 }
  0xcf   :  { %v365_v49 = vsel %vm362_vm5, %v364_v47, %v360_v48 }
  0xd0   :  { %v388_v50 = vmul.f32 %v3413_v46, %v365_v49  ;;  %v3417_v54 = vpop.eup %3416  ;;  %v387_v58 = vmul.f32 0.0, %v365_v49 }
  0xd1   :  { %v373_v55 = vmul.f32 %v3417_v54, %v371_v53  ;;  %vm378_vm7 = vweird.f32 %v3417_v54 }
  0xd2   :  { %390 = vrot.lane.b32.xlu0 %v388_v50, %s3916_s3  ;;  %vm379_vm8 = vmor %vm377_vm6, %vm378_vm7 }
  0xd3   :  { %v374_v56 = vsub.f32 1.0, %v373_v55 }
  0xd5   :  { %v375_v57 = vmul.f32 %v3417_v54, %v374_v56 }
  0xd7   :  { %v376_v62 = vadd.f32 %v3417_v54, %v375_v57 }
  0xd9   :  { %v380_v13 = vsel %vm379_vm8, %v3417_v54, %v376_v62 }
  0xda   :  { %v385_v17 = vsel %vm382_vm9, %v384_v4, %v380_v13 }
 0x127   :  { %v224_v28 = vpop.f32.mrf.mxu0  ;;  %v265_v37 = vpop.f32.mrf.mxu1 }
 0x128   :  { %v225_v29 = vadd.f32 %v224_v28, %v4218_v24  ;;  %v266_v38 = vadd.f32 %v265_v37, %v4225_v34 }
 0x144   :  { %v391_v59 = vpop.permute.xlu0 %390 }
 0x145   :  { %v4229_v60 = vadd.f32 %v391_v59, %v387_v58 }
 0x147   :  { %3418 = vtanh.f32 %v4229_v60 }
 0x14d   :  { %v3419_v16 = vpop.eup %3418 }
 0x14e   :  { %v395_v23 = vmul.f32 %v3419_v16, %v385_v17 }
 0x150   :  { %397 = vrot.lane.b32.xlu0 %v395_v23, %s3916_s3 }
 0x1c2   :  { %v398_v27 = vpop.permute.xlu0 %397 }
 0x1c3   :  { %400 = vst.msk [vmem:[#allocation2] sm:$0xff] %vm302_vm10, %v398_v27  ;;  %3265 = vmatmul.msk.f32.vlgmr.msrb.gmra.mxu2 %vm302_vm10, %v398_v27  ;;  %3266 = vmatmul.msk.f32.vlgmr.msrb.gmra.mxu3 %vm302_vm10, %v398_v27 }
 0x1c4   :  { %605 = vmatpush.msrb.mxu2 %v4031_v0  ;;  %625 = vmatpush.msrb.mxu3 %v4042_v2 }
 0x1c6   :  { %606 = vmatpush.msrb.mxu2 %v4036_v1  ;;  %626 = vmatpush.msrb.mxu3 %v4056_v5 }
 0x1c8   :  { %607 = vmatpush.msrb.mxu2 %v4047_v3  ;;  %627 = vmatpush.msrb.mxu3 %v4062_v6 }
 0x1ca   :  { %608 = vmatpush.msrb.mxu2 %v4067_v7  ;;  %628 = vmatpush.msrb.mxu3 %v4074_v8 }
 0x1cc   :  { %609 = vmatpush.msrb.mxu2 %v4079_v9  ;;  %629 = vmatpush.msrb.mxu3 %v4086_v10 }
 0x1ce   :  { %610 = vmatpush.msrb.mxu2 %v4091_v11  ;;  %630 = vmatpush.msrb.mxu3 %v4109_v15 }
 0x1d0   :  { %611 = vmatpush.msrb.mxu2 %v4103_v14  ;;  %631 = vmatpush.msrb.mxu3 %v4127_v19 }
 0x1d2   :  { %612 = vmatpush.msrb.mxu2 %v4121_v18  ;;  %632 = vmatpush.msrb.mxu3 %v4135_v20 }
 0x246   :  { %v420_v31 = vpop.f32.mrf.mxu2  ;;  %v440_v39 = vpop.f32.mrf.mxu3 }
 0x247   :  { %v443_v32 = vadd.f32 %v420_v31, %v225_v29  ;;  %v444_v41 = vadd.f32 %v440_v39, %v266_v38 }
 0x249   :  { %v3267_v33 = vmul.f32 -1.442695, %v443_v32  ;;  %v3268_v53 = vmul.f32 -1.442695, %v444_v41 }
 0x24b   :  { %3420 = vpow2.f32 %v3267_v33 }
 0x251   :  { %v3421_v35 = vpop.eup %3420 }
 0x252   :  { %v448_v36 = vadd.f32 1.0, %v3421_v35 }
 0x254   :  { %3422 = vrcp.f32 %v448_v36  ;;  %v460_v44 = vand.u32 2147483648, %v448_v36  ;;  %v458_v46 = vand.u32 2147483647, %v448_v36  ;;  %vm454_vm12 = vweird.f32 %v448_v36 }
 0x255   :  { %3424 = vtanh.f32 %v444_v41 }
 0x256   :  { %v461_v48 = vor.u32 1.1754944e-38, %v460_v44  ;;  %vm459_vm14 = vcmp.eq.f32.partialorder %v458_v46, 8.507059e+37  ;;  %3426 = vpow2.f32 %v3268_v53 }
 0x25a   :  { %v3423_v40 = vpop.eup %3422 }
 0x25b   :  { %v450_v42 = vmul.f32 %v3423_v40, %v448_v36  ;;  %vm455_vm11 = vweird.f32 %v3423_v40  ;;  %v3425_v50 = vpop.eup %3424 }
 0x25c   :  { %vm456_vm13 = vmor %vm454_vm12, %vm455_vm11  ;;  %v3427_v54 = vpop.eup %3426 }
 0x25d   :  { %v451_v43 = vsub.f32 1.0, %v450_v42  ;;  %v468_v55 = vadd.f32 1.0, %v3427_v54 }
 0x25f   :  { %v452_v45 = vmul.f32 %v3423_v40, %v451_v43  ;;  %3428 = vrcp.f32 %v468_v55  ;;  %v480_v13 = vand.u32 2147483648, %v468_v55  ;;  %vm474_vm0 = vweird.f32 %v468_v55 }
 0x260   :  { %v478_v16 = vand.u32 2147483647, %v468_v55 }
 0x261   :  { %v453_v47 = vadd.f32 %v3423_v40, %v452_v45  ;;  %v481_v23 = vor.u32 1.1754944e-38, %v480_v13 }
 0x262   :  { %vm479_vm3 = vcmp.eq.f32.partialorder %v478_v16, 8.507059e+37 }
 0x263   :  { %v457_v49 = vsel %vm456_vm13, %v3423_v40, %v453_v47 }
 0x264   :  { %v462_v51 = vsel %vm459_vm14, %v461_v48, %v457_v49 }
 0x265   :  { %v485_v52 = vmul.f32 %v3425_v50, %v462_v51  ;;  %v3429_v56 = vpop.eup %3428  ;;  %v484_v61 = vmul.f32 %v462_v51, %v4229_v60  ;;  %v157_v60 = vld [vmem:[%s5033_s0 + $0x10] sm:$0xff] }
 0x266   :  { %v470_v57 = vmul.f32 %v3429_v56, %v468_v55  ;;  %vm475_vm15 = vweird.f32 %v3429_v56  ;;  %3248 = vmatmul.msk.f32.gmra.mxu0 %vm174_vm1, %v157_v60  ;;  %3257 = vmatmul.msk.f32.gmra.mxu1 %vm174_vm1, %v157_v60 }
 0x267   :  { %487 = vrot.lane.b32.xlu1 %v485_v52, %s3916_s3  ;;  %vm476_vm2 = vmor %vm474_vm0, %vm475_vm15 }
 0x268   :  { %v471_v58 = vsub.f32 1.0, %v470_v57 }
 0x26a   :  { %v472_v59 = vmul.f32 %v3429_v56, %v471_v58 }
 0x26c   :  { %v473_v4 = vadd.f32 %v3429_v56, %v472_v59 }
 0x26e   :  { %v477_v17 = vsel %vm476_vm2, %v3429_v56, %v473_v4 }
 0x26f   :  { %v482_v27 = vsel %vm479_vm3, %v481_v23, %v477_v17 }
 0x2d9   :  { %v488_v62 = vpop.permute.xlu1 %487 }
 0x2da   :  { %v4261_v63 = vadd.f32 %v488_v62, %v484_v61 }
 0x2dc   :  { %3430 = vtanh.f32 %v4261_v63 }
 0x2e2   :  { %v3431_v26 = vpop.eup %3430 }
 0x2e3   :  { %v492_v28 = vmul.f32 %v3431_v26, %v482_v27  ;;  %v227_v31 = vpop.f32.mrf.mxu0  ;;  %v268_v39 = vpop.f32.mrf.mxu1 }
 0x2e4   :  { %v228_v32 = vadd.f32 %v227_v31, %v4218_v24  ;;  %v269_v40 = vadd.f32 %v268_v39, %v4225_v34 }
 0x2e5   :  { %494 = vrot.lane.b32.xlu1 %v492_v28, %s3916_s3 }
 0x357   :  { %v495_v29 = vpop.permute.xlu1 %494 }
 0x358   :  { %497 = vst.msk [vmem:[#allocation2 + $0x8] sm:$0xff] %vm302_vm10, %v495_v29  ;;  %3269 = vmatmul.msk.f32.vlgmr.msra.gmra.mxu2 %vm302_vm10, %v495_v29  ;;  %3270 = vmatmul.msk.f32.vlgmr.msra.gmra.mxu3 %vm302_vm10, %v495_v29 }
 0x359   :  { %799 = vmatpush.msra.mxu2 %v4031_v0  ;;  %819 = vmatpush.msra.mxu3 %v4042_v2 }
 0x35b   :  { %800 = vmatpush.msra.mxu2 %v4036_v1  ;;  %820 = vmatpush.msra.mxu3 %v4056_v5 }
 0x35d   :  { %801 = vmatpush.msra.mxu2 %v4047_v3  ;;  %821 = vmatpush.msra.mxu3 %v4062_v6 }
 0x35f   :  { %802 = vmatpush.msra.mxu2 %v4067_v7  ;;  %822 = vmatpush.msra.mxu3 %v4074_v8 }
 0x361   :  { %803 = vmatpush.msra.mxu2 %v4079_v9  ;;  %823 = vmatpush.msra.mxu3 %v4086_v10 }
 0x363   :  { %804 = vmatpush.msra.mxu2 %v4091_v11  ;;  %824 = vmatpush.msra.mxu3 %v4109_v15 }
 0x365   :  { %805 = vmatpush.msra.mxu2 %v4103_v14  ;;  %825 = vmatpush.msra.mxu3 %v4127_v19 }
 0x367   :  { %806 = vmatpush.msra.mxu2 %v4121_v18  ;;  %826 = vmatpush.msra.mxu3 %v4135_v20 }
 0x3db   :  { %v517_v33 = vpop.f32.mrf.mxu2  ;;  %v537_v41 = vpop.f32.mrf.mxu3 }
 0x3dc   :  { %v540_v35 = vadd.f32 %v517_v33, %v228_v32  ;;  %v541_v43 = vadd.f32 %v537_v41, %v269_v40 }
 0x3de   :  { %v3271_v36 = vmul.f32 -1.442695, %v540_v35  ;;  %v3272_v55 = vmul.f32 -1.442695, %v541_v43 }
 0x3e0   :  { %3432 = vpow2.f32 %v3271_v36 }
 0x3e6   :  { %v3433_v37 = vpop.eup %3432 }
 0x3e7   :  { %v545_v38 = vadd.f32 1.0, %v3433_v37 }
 0x3e9   :  { %3434 = vrcp.f32 %v545_v38  ;;  %v557_v46 = vand.u32 2147483648, %v545_v38  ;;  %v555_v48 = vand.u32 2147483647, %v545_v38  ;;  %vm551_vm5 = vweird.f32 %v545_v38 }
 0x3ea   :  { %3436 = vtanh.f32 %v541_v43 }
 0x3eb   :  { %v558_v50 = vor.u32 1.1754944e-38, %v557_v46  ;;  %vm556_vm7 = vcmp.eq.f32.partialorder %v555_v48, 8.507059e+37  ;;  %3438 = vpow2.f32 %v3272_v55 }
 0x3ef   :  { %v3435_v42 = vpop.eup %3434 }
 0x3f0   :  { %v547_v44 = vmul.f32 %v3435_v42, %v545_v38  ;;  %vm552_vm4 = vweird.f32 %v3435_v42  ;;  %v3437_v52 = vpop.eup %3436 }
 0x3f1   :  { %vm553_vm6 = vmor %vm551_vm5, %vm552_vm4  ;;  %v3439_v56 = vpop.eup %3438 }
 0x3f2   :  { %v548_v45 = vsub.f32 1.0, %v547_v44  ;;  %v565_v57 = vadd.f32 1.0, %v3439_v56  ;;  %v159_v44 = vld [vmem:[%s5033_s0 + $0x20] sm:$0xff] }
 0x3f4   :  { %v549_v47 = vmul.f32 %v3435_v42, %v548_v45  ;;  %3440 = vrcp.f32 %v565_v57  ;;  %v577_v23 = vand.u32 2147483648, %v565_v57  ;;  %vm571_vm9 = vweird.f32 %v565_v57  ;;  %v160_v45 = vld [vmem:[%s5033_s0 + $0x28] sm:$0xff] }
 0x3f5   :  { %v575_v26 = vand.u32 2147483647, %v565_v57 }
 0x3f6   :  { %v550_v49 = vadd.f32 %v3435_v42, %v549_v47  ;;  %v578_v28 = vor.u32 1.1754944e-38, %v577_v23 }
 0x3f7   :  { %vm576_vm12 = vcmp.eq.f32.partialorder %v575_v26, 8.507059e+37 }
 0x3f8   :  { %v554_v51 = vsel %vm553_vm6, %v3435_v42, %v550_v49 }
 0x3f9   :  { %v559_v53 = vsel %vm556_vm7, %v558_v50, %v554_v51 }
 0x3fa   :  { %v582_v54 = vmul.f32 %v3437_v52, %v559_v53  ;;  %v3441_v58 = vpop.eup %3440  ;;  %v581_v4 = vmul.f32 %v559_v53, %v4261_v63  ;;  %v158_v63 = vld [vmem:[%s5033_s0 + $0x18] sm:$0xff] }
 0x3fb   :  { %v567_v59 = vmul.f32 %v3441_v58, %v565_v57  ;;  %vm572_vm8 = vweird.f32 %v3441_v58  ;;  %3249 = vmatmul.msk.f32.gmra.mxu0 %vm174_vm1, %v158_v63  ;;  %3258 = vmatmul.msk.f32.gmra.mxu1 %vm174_vm1, %v158_v63 }
 0x3fc   :  { %584 = vrot.lane.b32.xlu2 %v582_v54, %s3916_s3  ;;  %vm573_vm11 = vmor %vm571_vm9, %vm572_vm8 }
 0x3fd   :  { %v568_v61 = vsub.f32 1.0, %v567_v59 }
 0x3ff   :  { %v569_v62 = vmul.f32 %v3441_v58, %v568_v61 }
 0x401   :  { %v570_v17 = vadd.f32 %v3441_v58, %v569_v62 }
 0x403   :  { %v574_v27 = vsel %vm573_vm11, %v3441_v58, %v570_v17  ;;  %3259 = vmatmul.msk.f32.gmra.mxu1 %vm174_vm1, %v159_v44  ;;  %3250 = vmatmul.msk.f32.gmra.mxu0 %vm174_vm1, %v159_v44 }
 0x404   :  { %v579_v29 = vsel %vm576_vm12, %v578_v28, %v574_v27 }
 0x40b   :  { %3260 = vmatmul.msk.f32.gmra.mxu1 %vm174_vm1, %v160_v45  ;;  %3251 = vmatmul.msk.f32.gmra.mxu0 %vm174_vm1, %v160_v45 }
 0x413   :  { %3261 = vmatmul.msk.f32.gmra.mxu1 %vm174_vm1, %v4098_v12 }
 0x41b   :  { %3262 = vmatmul.msk.f32.gmra.mxu1 %vm174_vm1, %v4145_v22 }
 0x456   :  { %v585_v13 = vpop.permute.xlu2 %584 }
 0x457   :  { %v4293_v16 = vadd.f32 %v585_v13, %v581_v4 }
 0x459   :  { %3442 = vtanh.f32 %v4293_v16 }
 0x45f   :  { %v3443_v60 = vpop.eup %3442 }
 0x460   :  { %v589_v31 = vmul.f32 %v3443_v60, %v579_v29 }
 0x462   :  { %591 = vrot.lane.b32.xlu2 %v589_v31, %s3916_s3 }
 0x4bc   :  { %v592_v32 = vpop.permute.xlu2 %591 }
 0x4bd   :  { %594 = vst.msk [vmem:[#allocation2 + $0x10] sm:$0xff] %vm302_vm10, %v592_v32  ;;  %3273 = vmatmul.msk.f32.vlgmr.msrb.gmra.mxu2 %vm302_vm10, %v592_v32  ;;  %3274 = vmatmul.msk.f32.vlgmr.msrb.gmra.mxu3 %vm302_vm10, %v592_v32 }
 0x4be   :  { %993 = vmatpush.msrb.mxu2 %v4031_v0  ;;  %1013 = vmatpush.msrb.mxu3 %v4042_v2  ;;  %v230_v0 = vpop.f32.mrf.mxu0 }
 0x4c0   :  { %994 = vmatpush.msrb.mxu2 %v4036_v1  ;;  %1014 = vmatpush.msrb.mxu3 %v4056_v5  ;;  %v231_v1 = vadd.f32 %v230_v0, %v4218_v24 }
 0x4c2   :  { %995 = vmatpush.msrb.mxu2 %v4047_v3  ;;  %1015 = vmatpush.msrb.mxu3 %v4062_v6 }
 0x4c4   :  { %996 = vmatpush.msrb.mxu2 %v4067_v7  ;;  %1016 = vmatpush.msrb.mxu3 %v4074_v8  ;;  %v271_v8 = vpop.f32.mrf.mxu1 }
 0x4c6   :  { %997 = vmatpush.msrb.mxu2 %v4079_v9  ;;  %1017 = vmatpush.msrb.mxu3 %v4086_v10  ;;  %v272_v9 = vadd.f32 %v271_v8, %v4225_v34  ;;  %v233_v4 = vpop.f32.mrf.mxu0 }
 0x4c7   :  { %v234_v17 = vadd.f32 %v233_v4, %v4218_v24 }
 0x4c8   :  { %998 = vmatpush.msrb.mxu2 %v4091_v11  ;;  %1018 = vmatpush.msrb.mxu3 %v4109_v15 }
 0x4ca   :  { %999 = vmatpush.msrb.mxu2 %v4103_v14  ;;  %1019 = vmatpush.msrb.mxu3 %v4127_v19 }
 0x4cc   :  { %1000 = vmatpush.msrb.mxu2 %v4121_v18  ;;  %1020 = vmatpush.msrb.mxu3 %v4135_v20  ;;  %v274_v62 = vpop.f32.mrf.mxu1 }
 0x4cd   :  { %v275_v63 = vadd.f32 %v274_v62, %v4225_v34 }
 0x4ce   :  { %v236_v22 = vpop.f32.mrf.mxu0 }
 0x4d4   :  { %v4346_v13 = vpop.f32.mrf.mxu1 }
 0x540   :  { %v614_v2 = vpop.f32.mrf.mxu2  ;;  %v634_v10 = vpop.f32.mrf.mxu3 }
 0x541   :  { %v637_v3 = vadd.f32 %v614_v2, %v231_v1  ;;  %v638_v14 = vadd.f32 %v634_v10, %v272_v9 }
 0x543   :  { %v3275_v5 = vmul.f32 -1.442695, %v637_v3  ;;  %v3276_v41 = vmul.f32 -1.442695, %v638_v14 }
 0x545   :  { %3444 = vpow2.f32 %v3275_v5 }
 0x54b   :  { %v3445_v6 = vpop.eup %3444 }
 0x54c   :  { %v642_v7 = vadd.f32 1.0, %v3445_v6 }
 0x54e   :  { %3446 = vrcp.f32 %v642_v7  ;;  %v654_v19 = vand.u32 2147483648, %v642_v7  ;;  %v652_v33 = vand.u32 2147483647, %v642_v7  ;;  %vm648_vm14 = vweird.f32 %v642_v7 }
 0x54f   :  { %3448 = vtanh.f32 %v638_v14 }
 0x550   :  { %v655_v36 = vor.u32 1.1754944e-38, %v654_v19  ;;  %vm653_vm0 = vcmp.eq.f32.partialorder %v652_v33, 8.507059e+37  ;;  %3450 = vpow2.f32 %v3276_v41 }
 0x554   :  { %v3447_v11 = vpop.eup %3446 }
 0x555   :  { %v644_v15 = vmul.f32 %v3447_v11, %v642_v7  ;;  %vm649_vm13 = vweird.f32 %v3447_v11  ;;  %v3449_v38 = vpop.eup %3448 }
 0x556   :  { %vm650_vm15 = vmor %vm648_vm14, %vm649_vm13  ;;  %v3451_v42 = vpop.eup %3450 }
 0x557   :  { %v645_v18 = vsub.f32 1.0, %v644_v15  ;;  %v662_v43 = vadd.f32 1.0, %v3451_v42 }
 0x559   :  { %v646_v20 = vmul.f32 %v3447_v11, %v645_v18  ;;  %3452 = vrcp.f32 %v662_v43  ;;  %v674_v54 = vand.u32 2147483648, %v662_v43  ;;  %vm668_vm3 = vweird.f32 %v662_v43 }
 0x55a   :  { %v672_v55 = vand.u32 2147483647, %v662_v43 }
 0x55b   :  { %v647_v35 = vadd.f32 %v3447_v11, %v646_v20  ;;  %v675_v57 = vor.u32 1.1754944e-38, %v674_v54 }
 0x55c   :  { %vm673_vm5 = vcmp.eq.f32.partialorder %v672_v55, 8.507059e+37 }
 0x55d   :  { %v651_v37 = vsel %vm650_vm15, %v3447_v11, %v647_v35 }
 0x55e   :  { %v656_v39 = vsel %vm653_vm0, %v655_v36, %v651_v37 }
 0x55f   :  { %v679_v40 = vmul.f32 %v3449_v38, %v656_v39  ;;  %v3453_v46 = vpop.eup %3452  ;;  %v678_v50 = vmul.f32 %v656_v39, %v4293_v16  ;;  %v4348_v16 = vpop.f32.mrf.mxu1 }
 0x560   :  { %v664_v47 = vmul.f32 %v3453_v46, %v662_v43  ;;  %vm669_vm2 = vweird.f32 %v3453_v46 }
 0x561   :  { %681 = vrot.lane.b32.xlu0 %v679_v40, %s3916_s3  ;;  %vm670_vm4 = vmor %vm668_vm3, %vm669_vm2 }
 0x562   :  { %v665_v48 = vsub.f32 1.0, %v664_v47 }
 0x564   :  { %v666_v49 = vmul.f32 %v3453_v46, %v665_v48 }
 0x566   :  { %v667_v53 = vadd.f32 %v3453_v46, %v666_v49  ;;  %v237_v49 = vadd.f32 %v236_v22, %v4218_v24 }
 0x567   :  { %v4351_v28 = vpop.f32.mrf.mxu1 }
 0x568   :  { %v671_v56 = vsel %vm670_vm4, %v3453_v46, %v667_v53 }
 0x569   :  { %v676_v58 = vsel %vm673_vm5, %v675_v57, %v671_v56  ;;  %v278_v56 = vadd.f32 %v4346_v13, %v4225_v34 }
 0x5d3   :  { %v682_v51 = vpop.permute.xlu0 %681 }
 0x5d4   :  { %v4337_v52 = vadd.f32 %v682_v51, %v678_v50 }
 0x5d6   :  { %3454 = vtanh.f32 %v4337_v52 }
 0x5dc   :  { %v3455_v12 = vpop.eup %3454 }
 0x5dd   :  { %v686_v59 = vmul.f32 %v3455_v12, %v676_v58 }
 0x5df   :  { %688 = vrot.lane.b32.xlu1 %v686_v59, %s3916_s3 }
 0x651   :  { %v689_v61 = vpop.permute.xlu1 %688 }
 0x652   :  { %691 = vst.msk [vmem:[#allocation2 + $0x18] sm:$0xff] %vm302_vm10, %v689_v61  ;;  %3277 = vmatmul.msk.f32.vlgmr.msrb.gmra.mxu0 %vm302_vm10, %v689_v61  ;;  %3278 = vmatmul.msk.f32.vlgmr.msra.gmra.mxu1 %vm302_vm10, %v689_v61 }
 0x6cf   :  { %v711_v23 = vpop.f32.mrf.mxu0  ;;  %v731_v31 = vpop.f32.mrf.mxu1 }
 0x6d0   :  { %v734_v26 = vadd.f32 %v711_v23, %v234_v17  ;;  %v735_v0 = vadd.f32 %v731_v31, %v275_v63  ;;  %v1095_v63 = vld [vmem:[#allocation4 + $0x38] sm:$0xff] }
 0x6d1   :  { %1132 = vmatpush.msrb.mxu0 %v1095_v63 }
 0x6d2   :  { %v3279_v27 = vmul.f32 -1.442695, %v734_v26  ;;  %v3280_v15 = vmul.f32 -1.442695, %v735_v0 }
 0x6d4   :  { %3456 = vpow2.f32 %v3279_v27 }
 0x6da   :  { %v3457_v60 = vpop.eup %3456 }
 0x6db   :  { %v739_v29 = vadd.f32 1.0, %v3457_v60 }
 0x6dd   :  { %3458 = vrcp.f32 %v739_v29  ;;  %v751_v3 = vand.u32 2147483648, %v739_v29  ;;  %v749_v6 = vand.u32 2147483647, %v739_v29  ;;  %vm745_vm7 = vweird.f32 %v739_v29 }
 0x6de   :  { %3460 = vtanh.f32 %v735_v0  ;;  %v1093_v0 = vld [vmem:[#allocation4 + $0x28] sm:$0xff] }
 0x6df   :  { %v752_v8 = vor.u32 1.1754944e-38, %v751_v3  ;;  %vm750_vm9 = vcmp.eq.f32.partialorder %v749_v6, 8.507059e+37  ;;  %3462 = vpow2.f32 %v3280_v15 }
 0x6e3   :  { %v3459_v32 = vpop.eup %3458 }
 0x6e4   :  { %v741_v1 = vmul.f32 %v3459_v32, %v739_v29  ;;  %vm746_vm6 = vweird.f32 %v3459_v32  ;;  %v3461_v10 = vpop.eup %3460 }
 0x6e5   :  { %vm747_vm8 = vmor %vm745_vm7, %vm746_vm6  ;;  %v3463_v18 = vpop.eup %3462 }
 0x6e6   :  { %v742_v2 = vsub.f32 1.0, %v741_v1  ;;  %v759_v19 = vadd.f32 1.0, %v3463_v18  ;;  %v1092_v1 = vld [vmem:[#allocation4 + $0x20] sm:$0xff] }
 0x6e8   :  { %v743_v5 = vmul.f32 %v3459_v32, %v742_v2  ;;  %3464 = vrcp.f32 %v759_v19  ;;  %v771_v41 = vand.u32 2147483648, %v759_v19  ;;  %vm765_vm12 = vweird.f32 %v759_v19 }
 0x6e9   :  { %v769_v42 = vand.u32 2147483647, %v759_v19 }
 0x6ea   :  { %v744_v7 = vadd.f32 %v3459_v32, %v743_v5  ;;  %v772_v44 = vor.u32 1.1754944e-38, %v771_v41  ;;  %v1088_v41 = vld [vmem:[#allocation4] sm:$0xff] }
 0x6eb   :  { %vm770_vm14 = vcmp.eq.f32.partialorder %v769_v42, 8.507059e+37  ;;  %v4399_v42 = vld [vmem:[%s5038_s5] sm:$0xff] }
 0x6ec   :  { %v748_v9 = vsel %vm747_vm8, %v3459_v32, %v744_v7  ;;  %v1094_v32 = vld [vmem:[#allocation4 + $0x30] sm:$0xff] }
 0x6ed   :  { %v753_v11 = vsel %vm750_vm9, %v752_v8, %v748_v9  ;;  %1133 = vmatpush.msrb.mxu0 %v1094_v32 }
 0x6ee   :  { %v776_v14 = vmul.f32 %v3461_v10, %v753_v11  ;;  %v3465_v20 = vpop.eup %3464  ;;  %v775_v37 = vmul.f32 %v753_v11, %v4337_v52 }
 0x6ef   :  { %v761_v33 = vmul.f32 %v3465_v20, %v759_v19  ;;  %vm766_vm11 = vweird.f32 %v3465_v20  ;;  %1134 = vmatpush.msrb.mxu0 %v1093_v0 }
 0x6f0   :  { %778 = vrot.lane.b32.xlu2 %v776_v14, %s3916_s3  ;;  %vm767_vm13 = vmor %vm765_vm12, %vm766_vm11 }
 0x6f1   :  { %v762_v35 = vsub.f32 1.0, %v761_v33  ;;  %1135 = vmatpush.msrb.mxu0 %v1092_v1 }
 0x6f3   :  { %v763_v36 = vmul.f32 %v3465_v20, %v762_v35  ;;  %v1091_v35 = vld [vmem:[#allocation4 + $0x18] sm:$0xff] }
 0x6f4   :  { %1136 = vmatpush.msrb.mxu0 %v1091_v35 }
 0x6f5   :  { %v764_v40 = vadd.f32 %v3465_v20, %v763_v36  ;;  %v4375_v36 = vld [vmem:[%s5038_s5 + $0x18] sm:$0xff] }
 0x6f6   :  { %1184 = vmatpush.msra.mxu1 %v4375_v36 }
 0x6f7   :  { %v768_v43 = vsel %vm767_vm13, %v3465_v20, %v764_v40  ;;  %v4386_v40 = vld [vmem:[%s5038_s5 + $0x8] sm:$0xff] }
 0x6f8   :  { %v773_v46 = vsel %vm770_vm14, %v772_v44, %v768_v43  ;;  %v1080_v44 = vld [vmem:[#allocation2] sm:$0xff] }
 0x74a   :  { %v779_v38 = vpop.permute.xlu2 %778 }
 0x74b   :  { %v4356_v39 = vadd.f32 %v779_v38, %v775_v37  ;;  %v1090_v37 = vld [vmem:[#allocation4 + $0x10] sm:$0xff]  ;;  %v4381_v38 = vld [vmem:[%s5038_s5 + $0x10] sm:$0xff] }
 0x74c   :  { %1137 = vmatpush.msrb.mxu0 %v1090_v37  ;;  %1185 = vmatpush.msra.mxu1 %v4381_v38 }
 0x74d   :  { %3466 = vtanh.f32 %v4356_v39 }
 0x74e   :  { %1186 = vmatpush.msra.mxu1 %v4386_v40 }
 0x750   :  { %1187 = vmatpush.msra.mxu1 %v4399_v42 }
 0x753   :  { %v3467_v45 = vpop.eup %3466 }
 0x754   :  { %v783_v47 = vmul.f32 %v3467_v45, %v773_v46  ;;  %v1081_v45 = vld [vmem:[#allocation2 + $0x8] sm:$0xff]  ;;  %v1082_v46 = vld [vmem:[#allocation2 + $0x10] sm:$0xff] }
 0x756   :  { %785 = vrot.lane.b32.xlu0 %v783_v47, %s3916_s3  ;;  %v1083_v47 = vld [vmem:[#allocation2 + $0x18] sm:$0xff] }
 0x7c8   :  { %v786_v48 = vpop.permute.xlu0 %785 }
 0x7c9   :  { %788 = vst.msk [vmem:[#allocation2 + $0x20] sm:$0xff] %vm302_vm10, %v786_v48  ;;  %3281 = vmatmul.msk.f32.vlgmr.msra.gmra.mxu2 %vm302_vm10, %v786_v48  ;;  %3282 = vmatmul.msk.f32.vlgmr.msra.gmra.mxu3 %vm302_vm10, %v786_v48 }
 0x7ca   :  { %1310 = vmatpush.msra.mxu2 %v4375_v36  ;;  %1562 = vmatpush.msra.mxu3 %v4375_v36 }
 0x7cc   :  { %1311 = vmatpush.msra.mxu2 %v4381_v38  ;;  %1563 = vmatpush.msra.mxu3 %v4381_v38 }
 0x7ce   :  { %1312 = vmatpush.msra.mxu2 %v4386_v40  ;;  %1564 = vmatpush.msra.mxu3 %v4386_v40 }
 0x7d0   :  { %1313 = vmatpush.msra.mxu2 %v4399_v42  ;;  %1565 = vmatpush.msra.mxu3 %v4399_v42  ;;  %v1084_v48 = vld [vmem:[#allocation2 + $0x20] sm:$0xff] }
 0x84c   :  { %v808_v50 = vpop.f32.mrf.mxu2  ;;  %v828_v55 = vpop.f32.mrf.mxu3 }
 0x84d   :  { %v831_v51 = vadd.f32 %v808_v50, %v237_v49  ;;  %v832_v12 = vadd.f32 %v828_v55, %v278_v56  ;;  %v240_v50 = vadd.f32 %v4220_v25, %v4218_v24 }
 0x84f   :  { %v3283_v52 = vmul.f32 -1.442695, %v831_v51  ;;  %v3284_v13 = vmul.f32 -1.442695, %v832_v12  ;;  %v281_v51 = vadd.f32 %v4348_v16, %v4225_v34 }
 0x851   :  { %3468 = vpow2.f32 %v3283_v52 }
 0x857   :  { %v3469_v53 = vpop.eup %3468 }
 0x858   :  { %v836_v54 = vadd.f32 1.0, %v3469_v53 }
 0x85a   :  { %3470 = vrcp.f32 %v836_v54  ;;  %v848_v61 = vand.u32 2147483648, %v836_v54  ;;  %v846_v4 = vand.u32 2147483647, %v836_v54  ;;  %vm842_vm0 = vweird.f32 %v836_v54 }
 0x85b   :  { %3472 = vtanh.f32 %v832_v12 }
 0x85c   :  { %v849_v17 = vor.u32 1.1754944e-38, %v848_v61  ;;  %vm847_vm3 = vcmp.eq.f32.partialorder %v846_v4, 8.507059e+37  ;;  %3474 = vpow2.f32 %v3284_v13 }
 0x860   :  { %v3471_v57 = vpop.eup %3470 }
 0x861   :  { %v838_v58 = vmul.f32 %v3471_v57, %v836_v54  ;;  %vm843_vm15 = vweird.f32 %v3471_v57  ;;  %v3473_v26 = vpop.eup %3472 }
 0x862   :  { %vm844_vm2 = vmor %vm842_vm0, %vm843_vm15  ;;  %v3475_v29 = vpop.eup %3474 }
 0x863   :  { %v839_v59 = vsub.f32 1.0, %v838_v58  ;;  %v856_v31 = vadd.f32 1.0, %v3475_v29 }
 0x865   :  { %v840_v62 = vmul.f32 %v3471_v57, %v839_v59  ;;  %3476 = vrcp.f32 %v856_v31  ;;  %v868_v11 = vand.u32 2147483648, %v856_v31  ;;  %vm862_vm5 = vweird.f32 %v856_v31 }
 0x866   :  { %v866_v14 = vand.u32 2147483647, %v856_v31 }
 0x867   :  { %v841_v22 = vadd.f32 %v3471_v57, %v840_v62  ;;  %v869_v18 = vor.u32 1.1754944e-38, %v868_v11 }
 0x868   :  { %vm867_vm7 = vcmp.eq.f32.partialorder %v866_v14, 8.507059e+37 }
 0x869   :  { %v845_v23 = vsel %vm844_vm2, %v3471_v57, %v841_v22  ;;  %v4431_v57 = vld [vmem:[%s5039_s6] ss:$0 sm:$0xff]  ;;  %s3917_s6 = smov 32   ;;  %vm1169_vm2 = vcmask 261120  }
 0x86a   :  { %v850_v27 = vsel %vm847_vm3, %v849_v17, %v845_v23 }
 0x86b   :  { %v873_v60 = vmul.f32 %v3473_v26, %v850_v27  ;;  %v3477_v2 = vpop.eup %3476  ;;  %v872_v7 = vmul.f32 %v850_v27, %v4356_v39  ;;  %v1089_v39 = vld [vmem:[#allocation4 + $0x8] sm:$0xff] }
 0x86c   :  { %v858_v3 = vmul.f32 %v3477_v2, %v856_v31  ;;  %vm863_vm4 = vweird.f32 %v3477_v2  ;;  %1138 = vmatpush.msrb.mxu0 %v1089_v39 }
 0x86d   :  { %875 = vrot.lane.b32.xlu1 %v873_v60, %s3916_s3  ;;  %vm864_vm6 = vmor %vm862_vm5, %vm863_vm4 }
 0x86e   :  { %v859_v5 = vsub.f32 1.0, %v858_v3  ;;  %1139 = vmatpush.msrb.mxu0 %v1088_v41 }
 0x870   :  { %v860_v6 = vmul.f32 %v3477_v2, %v859_v5 }
 0x872   :  { %v861_v10 = vadd.f32 %v3477_v2, %v860_v6 }
 0x874   :  { %v865_v15 = vsel %vm864_vm6, %v3477_v2, %v861_v10 }
 0x875   :  { %v870_v20 = vsel %vm867_vm7, %v869_v18, %v865_v15 }
 0x8df   :  { %v876_v8 = vpop.permute.xlu1 %875 }
 0x8e0   :  { %v4368_v9 = vadd.f32 %v876_v8, %v872_v7 }
 0x8e2   :  { %3478 = vtanh.f32 %v4368_v9 }
 0x8e8   :  { %v3479_v19 = vpop.eup %3478 }
 0x8e9   :  { %v880_v33 = vmul.f32 %v3479_v19, %v870_v20 }
 0x8eb   :  { %882 = vrot.lane.b32.xlu2 %v880_v33, %s3916_s3 }
 0x945   :  { %v883_v43 = vpop.permute.xlu2 %882 }
 0x946   :  { %885 = vst.msk [vmem:[#allocation2 + $0x28] sm:$0xff] %vm302_vm10, %v883_v43  ;;  %3285 = vmatmul.msk.f32.vlgmr.msra.gmra.mxu0 %vm302_vm10, %v883_v43  ;;  %3286 = vmatmul.msk.f32.vlgmr.msrb.gmra.mxu1 %vm302_vm10, %v883_v43 }
 0x947   :  { %1247 = vmatpush.msrb.mxu1 %v4375_v36 }
 0x949   :  { %1248 = vmatpush.msrb.mxu1 %v4381_v38 }
 0x94b   :  { %1249 = vmatpush.msrb.mxu1 %v4386_v40 }
 0x94d   :  { %1250 = vmatpush.msrb.mxu1 %v4399_v42  ;;  %v1085_v49 = vld [vmem:[#allocation2 + $0x28] sm:$0xff] }
 0x94e   :  { %3293 = vmatmul.msk.f32.vlgmr.msrb.gmra.mxu0 %vm302_vm10, %v1080_v44  ;;  %1188 = vmatmul.f32.vlgmr.msra.gmra.mxu1 %v3915_v21 }
 0x94f   :  { %1436 = vmatpush.msra.mxu1 %v4375_v36 }
 0x951   :  { %1437 = vmatpush.msra.mxu1 %v4381_v38 }
 0x953   :  { %1438 = vmatpush.msra.mxu1 %v4386_v40 }
 0x955   :  { %1439 = vmatpush.msra.mxu1 %v4399_v42 }
 0x956   :  { %3294 = vmatmul.msk.f32.gmra.mxu0 %vm302_vm10, %v1081_v45 }
 0x95e   :  { %3295 = vmatmul.msk.f32.gmra.mxu0 %vm302_vm10, %v1082_v46 }
 0x966   :  { %3296 = vmatmul.msk.f32.gmra.mxu0 %vm302_vm10, %v1083_v47 }
 0x96e   :  { %3297 = vmatmul.msk.f32.gmra.mxu0 %vm302_vm10, %v1084_v48 }
 0x976   :  { %3298 = vmatmul.msk.f32.gmra.mxu0 %vm302_vm10, %v1085_v49 }
 0x9c3   :  { %v905_v52 = vpop.f32.mrf.mxu0  ;;  %v925_v53 = vpop.f32.mrf.mxu1 }
 0x9c4   :  { %v928_v54 = vadd.f32 %v905_v52, %v240_v50  ;;  %v4426_v55 = vadd.f32 %v925_v53, %v281_v51 }
 0x9c6   :  { %v3287_v56 = vmul.f32 -1.442695, %v928_v54  ;;  %v3288_v51 = vmul.f32 -1.442695, %v4426_v55 }
 0x9c8   :  { %3480 = vpow2.f32 %v3287_v56 }
 0x9cb   :  { %v1141_v12 = vpop.f32.mrf.mxu0  ;;  %v1189_v58 = vpop.f32.mrf.mxu1 }
 0x9cc   :  { %v1142_v59 = vadd.f32 %v4431_v57, %v1141_v12 }
 0x9ce   :  { %v3481_v25 = vpop.eup %3480  ;;  %v1192_v61 = vadd.f32 %v1189_v58, %v1142_v59 }
 0x9cf   :  { %v933_v62 = vadd.f32 1.0, %v3481_v25 }
 0x9d0   :  { %3482 = vtanh.f32 %v1192_v61  ;;  %v3301_v0 = vmul.f32 -1.442695, %v1192_v61 }
 0x9d1   :  { %3484 = vrcp.f32 %v933_v62  ;;  %v945_v23 = vand.u32 2147483648, %v933_v62  ;;  %v943_v27 = vand.u32 2147483647, %v933_v62  ;;  %vm939_vm9 = vweird.f32 %v933_v62 }
 0x9d2   :  { %3486 = vtanh.f32 %v4426_v55 }
 0x9d3   :  { %v946_v13 = vor.u32 1.1754944e-38, %v945_v23  ;;  %vm944_vm12 = vcmp.eq.f32.partialorder %v943_v27, 8.507059e+37  ;;  %3488 = vpow2.f32 %v3301_v0  ;;  %v1144_v45 = vpop.f32.mrf.mxu0 }
 0x9d4   :  { %v1145_v46 = vadd.f32 %v4431_v57, %v1144_v45 }
 0x9d6   :  { %v3483_v16 = vpop.eup %3482 }
 0x9d7   :  { %v3485_v4 = vpop.eup %3484  ;;  %1215 = vrot.lane.b32.xlu0 %v3483_v16, %s3916_s3 }
 0x9d8   :  { %v935_v22 = vmul.f32 %v3485_v4, %v933_v62  ;;  %vm940_vm8 = vweird.f32 %v3485_v4  ;;  %v3487_v31 = vpop.eup %3486 }
 0x9d9   :  { %vm941_vm11 = vmor %vm939_vm9, %vm940_vm8  ;;  %v3489_v1 = vpop.eup %3488 }
 0x9da   :  { %v936_v17 = vsub.f32 1.0, %v935_v22  ;;  %v1196_v2 = vadd.f32 1.0, %v3489_v1 }
 0x9dc   :  { %v937_v26 = vmul.f32 %v3485_v4, %v936_v17  ;;  %3490 = vrcp.f32 %v1196_v2  ;;  %v1208_v10 = vand.u32 2147483648, %v1196_v2  ;;  %vm1202_vm14 = vweird.f32 %v1196_v2 }
 0x9dd   :  { %v1206_v11 = vand.u32 2147483647, %v1196_v2 }
 0x9de   :  { %v938_v60 = vadd.f32 %v3485_v4, %v937_v26  ;;  %v1209_v15 = vor.u32 1.1754944e-38, %v1208_v10 }
 0x9df   :  { %vm1207_vm0 = vcmp.eq.f32.partialorder %v1206_v11, 8.507059e+37 }
 0x9e0   :  { %v942_v29 = vsel %vm941_vm11, %v3485_v4, %v938_v60 }
 0x9e1   :  { %v4436_v63 = vsel %vm944_vm12, %v946_v13, %v942_v29 }
 0x9e2   :  { %v970_v32 = vmul.f32 %v3487_v31, %v4436_v63  ;;  %v3491_v3 = vpop.eup %3490  ;;  %v969_v55 = vmul.f32 %v4436_v63, %v4368_v9 }
 0x9e3   :  { %v1198_v5 = vmul.f32 %v3491_v3, %v1196_v2  ;;  %vm1203_vm13 = vweird.f32 %v3491_v3 }
 0x9e4   :  { %vm1204_vm15 = vmor %vm1202_vm14, %vm1203_vm13 }
 0x9e5   :  { %v1199_v6 = vsub.f32 1.0, %v1198_v5 }
 0x9e7   :  { %v1200_v7 = vmul.f32 %v3491_v3, %v1199_v6 }
 0x9e9   :  { %v1201_v8 = vadd.f32 %v3491_v3, %v1200_v7 }
 0x9eb   :  { %v1205_v14 = vsel %vm1204_vm15, %v3491_v3, %v1201_v8 }
 0x9ec   :  { %v1210_v19 = vsel %vm1207_vm0, %v1209_v15, %v1205_v14 }
 0x9ed   :  { %v1213_v33 = vmul.f32 0.0, %v1210_v19 }
 0xa49   :  { %v1216_v18 = vpop.permute.xlu0 %1215 }
 0xa4a   :  { %v1218_v20 = vmul.f32 %v1216_v18, %v1210_v19 }
 0xa4c   :  { %1220 = vrot.lane.b32.xlu1 %v1218_v20, %s3917_s6 }
 0xabe   :  { %v1221_v35 = vpop.permute.xlu1 %1220 }
 0xabf   :  { %v4440_v37 = vadd.f32 %v1221_v35, %v1213_v33  ;;  %v1147_v35 = vpop.f32.mrf.mxu0 }
 0xac1   :  { %3492 = vtanh.f32 %v4440_v37 }
 0xac7   :  { %v3493_v39 = vpop.eup %3492 }
 0xac8   :  { %1226 = vrot.lane.b32.xlu2 %v3493_v39, %s3916_s3 }
 0xb22   :  { %v1227_v41 = vpop.permute.xlu2 %1226 }
 0xb23   :  { %v1229_v43 = vmul.f32 %v1227_v41, %v1210_v19 }
 0xb25   :  { %1231 = vrot.lane.b32.xlu0 %v1229_v43, %s3917_s6 }
 0xb2d   :  { %972 = vrot.lane.b32.xlu0 %v970_v32, %s3916_s3 }
 0xb97   :  { %v1232_v44 = vpop.permute.xlu0 %1231 }
 0xb98   :  { %3302 = vmatmul.msk.f32.vlgmr.msrb.gmra.mxu1 %vm1169_vm2, %v1232_v44 }
 0xb99   :  { %1625 = vmatpush.msrb.mxu1 %v4375_v36 }
 0xb9b   :  { %1626 = vmatpush.msrb.mxu1 %v4381_v38 }
 0xb9d   :  { %1627 = vmatpush.msrb.mxu1 %v4386_v40 }
 0xb9f   :  { %1628 = vmatpush.msrb.mxu1 %v4399_v42  ;;  %v973_v16 = vpop.permute.xlu0 %972 }
 0xba0   :  { %v4456_v26 = vadd.f32 %v973_v16, %v969_v55  ;;  %v1150_v16 = vpop.f32.mrf.mxu0 }
 0xc15   :  { %v1252_v47 = vpop.f32.mrf.mxu1 }
 0xc16   :  { %v1255_v48 = vadd.f32 %v1252_v47, %v1145_v46 }
 0xc18   :  { %3494 = vtanh.f32 %v1255_v48  ;;  %v3303_v50 = vmul.f32 -1.442695, %v1255_v48 }
 0xc1a   :  { %3496 = vpow2.f32 %v3303_v50 }
 0xc1b   :  { %3498 = vpow2.f32 %v3288_v51 }
 0xc1e   :  { %v3495_v49 = vpop.eup %3494 }
 0xc1f   :  { %1278 = vrot.lane.b32.xlu1 %v3495_v49, %s3916_s3 }
 0xc20   :  { %v3497_v52 = vpop.eup %3496 }
 0xc21   :  { %v1259_v53 = vadd.f32 1.0, %v3497_v52  ;;  %v3499_v54 = vpop.eup %3498 }
 0xc22   :  { %v953_v56 = vadd.f32 1.0, %v3499_v54 }
 0xc23   :  { %3500 = vrcp.f32 %v1259_v53  ;;  %v1271_v17 = vand.u32 2147483648, %v1259_v53  ;;  %vm1265_vm4 = vweird.f32 %v1259_v53  ;;  %v1269_v23 = vand.u32 2147483647, %v1259_v53 }
 0xc24   :  { %3502 = vrcp.f32 %v953_v56  ;;  %v965_v1 = vand.u32 2147483648, %v953_v56  ;;  %vm959_vm8 = vweird.f32 %v953_v56  ;;  %v963_v9 = vand.u32 2147483647, %v953_v56 }
 0xc25   :  { %v1272_v13 = vor.u32 1.1754944e-38, %v1271_v17  ;;  %vm1270_vm6 = vcmp.eq.f32.partialorder %v1269_v23, 8.507059e+37  ;;  %3504 = vtanh.f32 %v4456_v26 }
 0xc26   :  { %v966_v3 = vor.u32 1.1754944e-38, %v965_v1  ;;  %vm964_vm11 = vcmp.eq.f32.partialorder %v963_v9, 8.507059e+37 }
 0xc29   :  { %v3501_v12 = vpop.eup %3500 }
 0xc2a   :  { %v1261_v58 = vmul.f32 %v3501_v12, %v1259_v53  ;;  %v3503_v25 = vpop.eup %3502  ;;  %vm1266_vm3 = vweird.f32 %v3501_v12 }
 0xc2b   :  { %v955_v62 = vmul.f32 %v3503_v25, %v953_v56  ;;  %vm1267_vm5 = vmor %vm1265_vm4, %vm1266_vm3  ;;  %vm960_vm7 = vweird.f32 %v3503_v25  ;;  %v3505_v2 = vpop.eup %3504 }
 0xc2c   :  { %v1262_v59 = vsub.f32 1.0, %v1261_v58  ;;  %vm961_vm9 = vmor %vm959_vm8, %vm960_vm7 }
 0xc2d   :  { %v956_v22 = vsub.f32 1.0, %v955_v62 }
 0xc2e   :  { %v1263_v61 = vmul.f32 %v3501_v12, %v1262_v59 }
 0xc2f   :  { %v957_v60 = vmul.f32 %v3503_v25, %v956_v22 }
 0xc30   :  { %v1264_v4 = vadd.f32 %v3501_v12, %v1263_v61 }
 0xc31   :  { %v958_v0 = vadd.f32 %v3503_v25, %v957_v60 }
 0xc32   :  { %v1268_v27 = vsel %vm1267_vm5, %v3501_v12, %v1264_v4  ;;  %v1151_v4 = vadd.f32 %v4431_v57, %v1150_v16 }
 0xc33   :  { %v1273_v31 = vsel %vm1270_vm6, %v1272_v13, %v1268_v27  ;;  %v962_v63 = vsel %vm961_vm9, %v3503_v25, %v958_v0 }
 0xc34   :  { %v967_v5 = vsel %vm964_vm11, %v966_v3, %v962_v63  ;;  %v1276_v7 = vmul.f32 %v1273_v31, %v4440_v37  ;;  %v1148_v37 = vadd.f32 %v4431_v57, %v1147_v35 }
 0xc35   :  { %v977_v6 = vmul.f32 %v3505_v2, %v967_v5 }
 0xc91   :  { %v1279_v29 = vpop.permute.xlu1 %1278 }
 0xc92   :  { %v1281_v32 = vmul.f32 %v1279_v29, %v1273_v31 }
 0xc94   :  { %1283 = vrot.lane.b32.xlu2 %v1281_v32, %s3917_s6 }
 0xc9c   :  { %979 = vrot.lane.b32.xlu2 %v977_v6, %s3916_s3 }
 0xcee   :  { %v1284_v8 = vpop.permute.xlu2 %1283 }
 0xcef   :  { %v1286_v10 = vadd.f32 %v1284_v8, %v1276_v7 }
 0xcf1   :  { %3506 = vtanh.f32 %v1286_v10 }
 0xcf6   :  { %v980_v11 = vpop.permute.xlu2 %979 }
 0xcf7   :  { %v3507_v14 = vpop.eup %3506  ;;  %982 = vst.msk [vmem:[#allocation2 + $0x30] sm:$0xff] %vm302_vm10, %v980_v11  ;;  %3289 = vmatmul.msk.f32.vlgmr.msrb.gmra.mxu2 %vm302_vm10, %v980_v11  ;;  %3290 = vmatmul.msk.f32.vlgmr.msrb.gmra.mxu3 %vm302_vm10, %v980_v11 }
 0xcf8   :  { %1289 = vrot.lane.b32.xlu1 %v3507_v14, %s3916_s3  ;;  %1373 = vmatpush.msrb.mxu2 %v4375_v36 }
 0xcfa   :  { %1374 = vmatpush.msrb.mxu2 %v4381_v38 }
 0xcfc   :  { %1375 = vmatpush.msrb.mxu2 %v4386_v40 }
 0xcfe   :  { %v1086_v15 = vld [vmem:[#allocation2 + $0x30] sm:$0xff]  ;;  %1376 = vmatpush.msrb.mxu2 %v4399_v42 }
 0xcff   :  { %3299 = vmatmul.msk.f32.gmra.mxu0 %vm302_vm10, %v1086_v15 }
 0xd6a   :  { %v1290_v18 = vpop.permute.xlu1 %1289 }
 0xd6b   :  { %v1292_v19 = vmul.f32 %v1290_v18, %v1273_v31 }
 0xd6d   :  { %1294 = vrot.lane.b32.xlu0 %v1292_v19, %s3917_s6  ;;  %v1153_v19 = vpop.f32.mrf.mxu0 }
 0xd7a   :  { %v4477_v33 = vpop.f32.mrf.mxu2 }
 0xddf   :  { %v1295_v20 = vpop.permute.xlu0 %1294 }
 0xde0   :  { %3304 = vmatmul.msk.f32.vlgmr.msra.gmra.mxu2 %vm1169_vm2, %v1295_v20  ;;  %v1154_v20 = vadd.f32 %v4431_v57, %v1153_v19 }
 0xde1   :  { %1499 = vmatpush.msra.mxu2 %v4375_v36 }
 0xde3   :  { %1500 = vmatpush.msra.mxu2 %v4381_v38 }
 0xde5   :  { %1501 = vmatpush.msra.mxu2 %v4386_v40 }
 0xde7   :  { %1502 = vmatpush.msra.mxu2 %v4399_v42 }
 0xe63   :  { %v1315_v39 = vpop.f32.mrf.mxu2 }
 0xe64   :  { %v1318_v41 = vadd.f32 %v1315_v39, %v1148_v37 }
 0xe66   :  { %3508 = vtanh.f32 %v1318_v41  ;;  %v3305_v44 = vmul.f32 -1.442695, %v1318_v41 }
 0xe68   :  { %3510 = vpow2.f32 %v3305_v44 }
 0xe6c   :  { %v3509_v43 = vpop.eup %3508 }
 0xe6d   :  { %1341 = vrot.lane.b32.xlu1 %v3509_v43, %s3916_s3 }
 0xe6e   :  { %v3511_v36 = vpop.eup %3510 }
 0xe6f   :  { %v1322_v45 = vadd.f32 1.0, %v3511_v36 }
 0xe71   :  { %3512 = vrcp.f32 %v1322_v45  ;;  %v1334_v48 = vand.u32 2147483648, %v1322_v45  ;;  %vm1328_vm13 = vweird.f32 %v1322_v45  ;;  %v1332_v49 = vand.u32 2147483647, %v1322_v45 }
 0xe73   :  { %v1335_v51 = vor.u32 1.1754944e-38, %v1334_v48  ;;  %vm1333_vm15 = vcmp.eq.f32.partialorder %v1332_v49, 8.507059e+37 }
 0xe77   :  { %v3513_v38 = vpop.eup %3512 }
 0xe78   :  { %v1324_v40 = vmul.f32 %v3513_v38, %v1322_v45  ;;  %vm1329_vm12 = vweird.f32 %v3513_v38 }
 0xe79   :  { %vm1330_vm14 = vmor %vm1328_vm13, %vm1329_vm12 }
 0xe7a   :  { %v1325_v46 = vsub.f32 1.0, %v1324_v40 }
 0xe7c   :  { %v1326_v42 = vmul.f32 %v3513_v38, %v1325_v46 }
 0xe7e   :  { %v1327_v47 = vadd.f32 %v3513_v38, %v1326_v42 }
 0xe80   :  { %v1331_v50 = vsel %vm1330_vm14, %v3513_v38, %v1327_v47 }
 0xe81   :  { %v1336_v53 = vsel %vm1333_vm15, %v1335_v51, %v1331_v50 }
 0xe82   :  { %v1339_v56 = vmul.f32 %v1336_v53, %v1286_v10 }
 0xedf   :  { %v1342_v52 = vpop.permute.xlu1 %1341 }
 0xee0   :  { %v1344_v54 = vmul.f32 %v1342_v52, %v1336_v53 }
 0xee2   :  { %1346 = vrot.lane.b32.xlu2 %v1344_v54, %s3917_s6 }
 0xf3c   :  { %v1347_v12 = vpop.permute.xlu2 %1346 }
 0xf3d   :  { %v1349_v58 = vadd.f32 %v1347_v12, %v1339_v56 }
 0xf3f   :  { %3514 = vtanh.f32 %v1349_v58 }
 0xf45   :  { %v3515_v59 = vpop.eup %3514 }
 0xf46   :  { %1352 = vrot.lane.b32.xlu0 %v3515_v59, %s3916_s3 }
 0xfb8   :  { %v1353_v25 = vpop.permute.xlu0 %1352 }
 0xfb9   :  { %v1355_v61 = vmul.f32 %v1353_v25, %v1336_v53 }
 0xfbb   :  { %1357 = vrot.lane.b32.xlu1 %v1355_v61, %s3917_s6  ;;  %v1156_v61 = vpop.f32.mrf.mxu0 }
0x102d   :  { %v1358_v62 = vpop.permute.xlu1 %1357 }
0x102e   :  { %3306 = vmatmul.msk.f32.vlgmr.msrb.gmra.mxu2 %vm1169_vm2, %v1358_v62  ;;  %v1157_v62 = vadd.f32 %v4431_v57, %v1156_v61 }
0x10b1   :  { %v1378_v22 = vpop.f32.mrf.mxu2 }
0x10b2   :  { %v1381_v55 = vadd.f32 %v1378_v22, %v1151_v4 }
0x10b4   :  { %3516 = vtanh.f32 %v1381_v55  ;;  %v3307_v23 = vmul.f32 -1.442695, %v1381_v55 }
0x10b6   :  { %3518 = vpow2.f32 %v3307_v23 }
0x10ba   :  { %v3517_v17 = vpop.eup %3516 }
0x10bb   :  { %1404 = vrot.lane.b32.xlu2 %v3517_v17, %s3916_s3 }
0x10bc   :  { %v3519_v27 = vpop.eup %3518 }
0x10bd   :  { %v1385_v60 = vadd.f32 1.0, %v3519_v27 }
0x10bf   :  { %3520 = vrcp.f32 %v1385_v60  ;;  %v1397_v1 = vand.u32 2147483648, %v1385_v60  ;;  %vm1391_vm3 = vweird.f32 %v1385_v60  ;;  %v1395_v9 = vand.u32 2147483647, %v1385_v60 }
0x10c1   :  { %v1398_v2 = vor.u32 1.1754944e-38, %v1397_v1  ;;  %vm1396_vm5 = vcmp.eq.f32.partialorder %v1395_v9, 8.507059e+37 }
0x10c5   :  { %v3521_v13 = vpop.eup %3520 }
0x10c6   :  { %v1387_v29 = vmul.f32 %v3521_v13, %v1385_v60  ;;  %vm1392_vm0 = vweird.f32 %v3521_v13 }
0x10c7   :  { %vm1393_vm4 = vmor %vm1391_vm3, %vm1392_vm0 }
0x10c8   :  { %v1388_v31 = vsub.f32 1.0, %v1387_v29 }
0x10ca   :  { %v1389_v32 = vmul.f32 %v3521_v13, %v1388_v31 }
0x10cc   :  { %v1390_v0 = vadd.f32 %v3521_v13, %v1389_v32 }
0x10ce   :  { %v1394_v63 = vsel %vm1393_vm4, %v3521_v13, %v1390_v0 }
0x10cf   :  { %v1399_v5 = vsel %vm1396_vm5, %v1398_v2, %v1394_v63 }
0x10d0   :  { %v1402_v7 = vmul.f32 %v1399_v5, %v1349_v58 }
0x1115   :  { %v1405_v3 = vpop.permute.xlu2 %1404 }
0x1116   :  { %v1407_v6 = vmul.f32 %v1405_v3, %v1399_v5 }
0x1118   :  { %1409 = vrot.lane.b32.xlu0 %v1407_v6, %s3917_s6 }
0x118a   :  { %v1410_v8 = vpop.permute.xlu0 %1409 }
0x118b   :  { %v1412_v10 = vadd.f32 %v1410_v8, %v1402_v7 }
0x118d   :  { %3522 = vtanh.f32 %v1412_v10 }
0x1193   :  { %v3523_v11 = vpop.eup %3522 }
0x1194   :  { %1415 = vrot.lane.b32.xlu1 %v3523_v11, %s3916_s3 }
0x1206   :  { %v1416_v14 = vpop.permute.xlu1 %1415 }
0x1207   :  { %v1418_v15 = vmul.f32 %v1416_v14, %v1399_v5 }
0x1209   :  { %1420 = vrot.lane.b32.xlu2 %v1418_v15, %s3917_s6 }
0x1263   :  { %v1421_v18 = vpop.permute.xlu2 %1420 }
0x1264   :  { %3308 = vmatmul.msk.f32.vlgmr.msra.gmra.mxu1 %vm1169_vm2, %v1421_v18 }
0x12e1   :  { %v1441_v35 = vpop.f32.mrf.mxu1 }
0x12e2   :  { %v1444_v37 = vadd.f32 %v1441_v35, %v1154_v20 }
0x12e4   :  { %3524 = vtanh.f32 %v1444_v37  ;;  %v3309_v41 = vmul.f32 -1.442695, %v1444_v37  ;;  %v1022_v37 = vpop.f32.mrf.mxu3 }
0x12e6   :  { %3526 = vpow2.f32 %v3309_v41  ;;  %v284_v41 = vadd.f32 %v4351_v28, %v4225_v34 }
0x12ea   :  { %v3525_v39 = vpop.eup %3524 }
0x12eb   :  { %1467 = vrot.lane.b32.xlu0 %v3525_v39, %s3916_s3 }
0x12ec   :  { %v3527_v43 = vpop.eup %3526 }
0x12ed   :  { %v1448_v44 = vadd.f32 1.0, %v3527_v43  ;;  %v1026_v43 = vadd.f32 %v1022_v37, %v284_v41 }
0x12ef   :  { %3528 = vrcp.f32 %v1448_v44  ;;  %v1460_v42 = vand.u32 2147483648, %v1448_v44  ;;  %vm1454_vm7 = vweird.f32 %v1448_v44  ;;  %v1458_v47 = vand.u32 2147483647, %v1448_v44 }
0x12f0   :  { %v3292_v34 = vmul.f32 -1.442695, %v1026_v43 }
0x12f1   :  { %v1461_v49 = vor.u32 1.1754944e-38, %v1460_v42  ;;  %vm1459_vm9 = vcmp.eq.f32.partialorder %v1458_v47, 8.507059e+37 }
0x12f5   :  { %v3529_v36 = vpop.eup %3528 }
0x12f6   :  { %v1450_v45 = vmul.f32 %v3529_v36, %v1448_v44  ;;  %vm1455_vm6 = vweird.f32 %v3529_v36 }
0x12f7   :  { %vm1456_vm8 = vmor %vm1454_vm7, %vm1455_vm6 }
0x12f8   :  { %v1451_v38 = vsub.f32 1.0, %v1450_v45 }
0x12fa   :  { %v1452_v40 = vmul.f32 %v3529_v36, %v1451_v38 }
0x12fc   :  { %v1453_v46 = vadd.f32 %v3529_v36, %v1452_v40 }
0x12fe   :  { %v1457_v48 = vsel %vm1456_vm8, %v3529_v36, %v1453_v46 }
0x12ff   :  { %v1462_v51 = vsel %vm1459_vm9, %v1461_v49, %v1457_v48 }
0x1300   :  { %v1465_v53 = vmul.f32 %v1462_v51, %v1412_v10  ;;  %v243_v10 = vadd.f32 %v4223_v30, %v4218_v24 }
0x1302   :  { %v1025_v11 = vadd.f32 %v4477_v33, %v243_v10 }
0x1304   :  { %v3291_v14 = vmul.f32 -1.442695, %v1025_v11 }
0x135d   :  { %v1468_v50 = vpop.permute.xlu0 %1467 }
0x135e   :  { %v1470_v52 = vmul.f32 %v1468_v50, %v1462_v51 }
0x1360   :  { %1472 = vrot.lane.b32.xlu1 %v1470_v52, %s3917_s6 }
0x13d2   :  { %v1473_v54 = vpop.permute.xlu1 %1472 }
0x13d3   :  { %v1475_v56 = vadd.f32 %v1473_v54, %v1465_v53 }
0x13d5   :  { %3530 = vtanh.f32 %v1475_v56 }
0x13db   :  { %v3531_v12 = vpop.eup %3530 }
0x13dc   :  { %1478 = vrot.lane.b32.xlu2 %v3531_v12, %s3916_s3 }
0x1436   :  { %v1479_v58 = vpop.permute.xlu2 %1478 }
0x1437   :  { %v1481_v59 = vmul.f32 %v1479_v58, %v1462_v51 }
0x1439   :  { %1483 = vrot.lane.b32.xlu0 %v1481_v59, %s3917_s6 }
0x14ab   :  { %v1484_v25 = vpop.permute.xlu0 %1483 }
0x14ac   :  { %3310 = vmatmul.msk.f32.vlgmr.msra.gmra.mxu2 %vm1169_vm2, %v1484_v25 }
0x152f   :  { %v1504_v16 = vpop.f32.mrf.mxu2 }
0x1530   :  { %v1507_v4 = vadd.f32 %v1504_v16, %v1157_v62 }
0x1532   :  { %3532 = vtanh.f32 %v1507_v4  ;;  %v3311_v55 = vmul.f32 -1.442695, %v1507_v4 }
0x1534   :  { %3534 = vpow2.f32 %v3311_v55 }
0x1538   :  { %v3533_v22 = vpop.eup %3532 }
0x1539   :  { %1530 = vrot.lane.b32.xlu1 %v3533_v22, %s3916_s3  ;;  %v1159_v22 = vpop.f32.mrf.mxu0 }
0x153a   :  { %v3535_v17 = vpop.eup %3534  ;;  %v1160_v55 = vadd.f32 %v4431_v57, %v1159_v22 }
0x153b   :  { %v1511_v23 = vadd.f32 1.0, %v3535_v17 }
0x153d   :  { %3536 = vrcp.f32 %v1511_v23  ;;  %v1523_v32 = vand.u32 2147483648, %v1511_v23  ;;  %vm1517_vm12 = vweird.f32 %v1511_v23  ;;  %v1521_v0 = vand.u32 2147483647, %v1511_v23 }
0x153f   :  { %v1524_v9 = vor.u32 1.1754944e-38, %v1523_v32  ;;  %vm1522_vm14 = vcmp.eq.f32.partialorder %v1521_v0, 8.507059e+37 }
0x1543   :  { %v3537_v27 = vpop.eup %3536 }
0x1544   :  { %v1513_v60 = vmul.f32 %v3537_v27, %v1511_v23  ;;  %vm1518_vm11 = vweird.f32 %v3537_v27 }
0x1545   :  { %vm1519_vm13 = vmor %vm1517_vm12, %vm1518_vm11 }
0x1546   :  { %v1514_v13 = vsub.f32 1.0, %v1513_v60 }
0x1548   :  { %v1515_v29 = vmul.f32 %v3537_v27, %v1514_v13 }
0x154a   :  { %v1516_v31 = vadd.f32 %v3537_v27, %v1515_v29 }
0x154c   :  { %v1520_v1 = vsel %vm1519_vm13, %v3537_v27, %v1516_v31 }
0x154d   :  { %v1525_v2 = vsel %vm1522_vm14, %v1524_v9, %v1520_v1 }
0x154e   :  { %v1528_v5 = vmul.f32 %v1525_v2, %v1475_v56 }
0x15ab   :  { %v1531_v63 = vpop.permute.xlu1 %1530 }
0x15ac   :  { %v1533_v3 = vmul.f32 %v1531_v63, %v1525_v2 }
0x15ae   :  { %1535 = vrot.lane.b32.xlu2 %v1533_v3, %s3917_s6 }
0x1608   :  { %v1536_v6 = vpop.permute.xlu2 %1535 }
0x1609   :  { %v4500_v7 = vadd.f32 %v1536_v6, %v1528_v5 }
0x160b   :  { %3538 = vtanh.f32 %v4500_v7 }
0x160c   :  { %3540 = vpow2.f32 %v3291_v14 }
0x1611   :  { %v3539_v8 = vpop.eup %3538 }
0x1612   :  { %1541 = vrot.lane.b32.xlu0 %v3539_v8, %s3916_s3  ;;  %v3541_v15 = vpop.eup %3540 }
0x1613   :  { %v1030_v18 = vadd.f32 1.0, %v3541_v15 }
0x1615   :  { %3542 = vrcp.f32 %v1030_v18  ;;  %v1042_v24 = vand.u32 2147483648, %v1030_v18  ;;  %vm1036_vm0 = vweird.f32 %v1030_v18  ;;  %v1040_v33 = vand.u32 2147483647, %v1030_v18 }
0x1616   :  { %3544 = vtanh.f32 %v1026_v43 }
0x1617   :  { %v1043_v38 = vor.u32 1.1754944e-38, %v1042_v24  ;;  %vm1041_vm4 = vcmp.eq.f32.partialorder %v1040_v33, 8.507059e+37  ;;  %3546 = vpow2.f32 %v3292_v34 }
0x161b   :  { %v3543_v19 = vpop.eup %3542 }
0x161c   :  { %v1032_v20 = vmul.f32 %v3543_v19, %v1030_v18  ;;  %vm1037_vm15 = vweird.f32 %v3543_v19  ;;  %v3545_v46 = vpop.eup %3544 }
0x161d   :  { %vm1038_vm3 = vmor %vm1036_vm0, %vm1037_vm15  ;;  %v3547_v28 = vpop.eup %3546 }
0x161e   :  { %v1033_v35 = vsub.f32 1.0, %v1032_v20  ;;  %v1050_v47 = vadd.f32 1.0, %v3547_v28 }
0x1620   :  { %v1034_v39 = vmul.f32 %v3543_v19, %v1033_v35  ;;  %3548 = vrcp.f32 %v1050_v47  ;;  %v1062_v58 = vand.u32 2147483648, %v1050_v47  ;;  %vm1056_vm6 = vweird.f32 %v1050_v47 }
0x1621   :  { %v1060_v59 = vand.u32 2147483647, %v1050_v47 }
0x1622   :  { %v1035_v44 = vadd.f32 %v3543_v19, %v1034_v39  ;;  %v1063_v61 = vor.u32 1.1754944e-38, %v1062_v58  ;;  %v4530_v58 = vld [vmem:[#allocation8 + $0x10] sm:$0xff] }
0x1623   :  { %vm1061_vm8 = vcmp.eq.f32.partialorder %v1060_v59, 8.507059e+37  ;;  %v1672_v59 = vld [vmem:[#allocation6 + $0x8] sm:$0xff] }
0x1624   :  { %v1039_v45 = vsel %vm1038_vm3, %v3543_v19, %v1035_v44 }
0x1625   :  { %v1044_v40 = vsel %vm1041_vm4, %v1043_v38, %v1039_v45 }
0x1626   :  { %v1067_v42 = vmul.f32 %v3545_v46, %v1044_v40  ;;  %v3549_v48 = vpop.eup %3548  ;;  %v1066_v53 = vmul.f32 %v1044_v40, %v4456_v26 }
0x1627   :  { %v1052_v49 = vmul.f32 %v3549_v48, %v1050_v47  ;;  %vm1057_vm5 = vweird.f32 %v3549_v48 }
0x1628   :  { %vm1058_vm7 = vmor %vm1056_vm6, %vm1057_vm5 }
0x1629   :  { %v1053_v51 = vsub.f32 1.0, %v1052_v49 }
0x162b   :  { %v1054_v52 = vmul.f32 %v3549_v48, %v1053_v51 }
0x162d   :  { %v1055_v12 = vadd.f32 %v3549_v48, %v1054_v52 }
0x162f   :  { %v1059_v25 = vsel %vm1058_vm7, %v3549_v48, %v1055_v12  ;;  %v4527_v12 = vld [vmem:[#allocation8 + $0x18] sm:$0xff] }
0x1630   :  { %v1064_v16 = vsel %vm1061_vm8, %v1063_v61, %v1059_v25  ;;  %1720 = vmatpush.msrb.mxu3 %v4527_v12  ;;  %v4532_v25 = vld [vmem:[#allocation8 + $0x8] sm:$0xff]  ;;  %1785 = vmatpush.msra.mxu1 %v4527_v12  ;;  %v1671_v61 = vld [vmem:[#allocation6] sm:$0xff] }
0x1632   :  { %1721 = vmatpush.msrb.mxu3 %v4530_v58  ;;  %1786 = vmatpush.msra.mxu1 %v4530_v58 }
0x1634   :  { %1722 = vmatpush.msrb.mxu3 %v4532_v25  ;;  %1787 = vmatpush.msra.mxu1 %v4532_v25 }
0x1684   :  { %v1542_v36 = vpop.permute.xlu0 %1541 }
0x1685   :  { %v1544_v30 = vmul.f32 %v1542_v36, %v1525_v2 }
0x1687   :  { %1546 = vrot.lane.b32.xlu1 %v1544_v30, %s3917_s6 }
0x168f   :  { %1069 = vrot.lane.b32.xlu1 %v1067_v42, %s3916_s3 }
0x16f9   :  { %v1547_v50 = vpop.permute.xlu1 %1546 }
0x16fa   :  { %3312 = vmatmul.msk.f32.vlgmr.msra.gmra.mxu3 %vm1169_vm2, %v1547_v50 }
0x1701   :  { %v1070_v54 = vpop.permute.xlu1 %1069 }
0x1702   :  { %v1072_v56 = vadd.f32 %v1070_v54, %v1066_v53  ;;  %v1674_v54 = vld [vmem:[#allocation6 + $0x18] sm:$0xff] }
0x1703   :  { %1696 = vmatpush.msrb.mxu2 %v1674_v54 }
0x1704   :  { %3550 = vtanh.f32 %v1072_v56  ;;  %v1673_v56 = vld [vmem:[#allocation6 + $0x10] sm:$0xff] }
0x1705   :  { %1697 = vmatpush.msrb.mxu2 %v1673_v56 }
0x1707   :  { %1698 = vmatpush.msrb.mxu2 %v1672_v59 }
0x1709   :  { %1699 = vmatpush.msrb.mxu2 %v1671_v61 }
0x170a   :  { %v3551_v62 = vpop.eup %3550 }
0x170b   :  { %v1074_v4 = vmul.f32 %v3551_v62, %v1064_v16  ;;  %1850 = vmatpush.msra.mxu2 %v4527_v12 }
0x170d   :  { %1851 = vmatpush.msra.mxu2 %v4530_v58 }
0x170f   :  { %1852 = vmatpush.msra.mxu2 %v4532_v25 }
0x177d   :  { %v1567_v17 = vpop.f32.mrf.mxu3 }
0x177e   :  { %v1570_v26 = vadd.f32 %v1567_v17, %v1160_v55  ;;  %v3406_v55 = vld [vmem:[#allocation9] ss:$0 sm:$0xff] }
0x1780   :  { %3552 = vtanh.f32 %v1570_v26  ;;  %v3313_v27 = vmul.f32 -1.442695, %v1570_v26 }
0x1782   :  { %3554 = vpow2.f32 %v3313_v27 }
0x1786   :  { %v3553_v23 = vpop.eup %3552 }
0x1787   :  { %1593 = vrot.lane.b32.xlu2 %v3553_v23, %s3916_s3 }
0x1788   :  { %v3555_v60 = vpop.eup %3554 }
0x1789   :  { %v1574_v13 = vadd.f32 1.0, %v3555_v60 }
0x178b   :  { %3556 = vrcp.f32 %v1574_v13  ;;  %v1586_v9 = vand.u32 2147483648, %v1574_v13  ;;  %vm1580_vm11 = vweird.f32 %v1574_v13  ;;  %v1584_v63 = vand.u32 2147483647, %v1574_v13 }
0x178d   :  { %v1587_v3 = vor.u32 1.1754944e-38, %v1586_v9  ;;  %vm1585_vm13 = vcmp.eq.f32.partialorder %v1584_v63, 8.507059e+37 }
0x1791   :  { %v3557_v29 = vpop.eup %3556 }
0x1792   :  { %v1576_v31 = vmul.f32 %v3557_v29, %v1574_v13  ;;  %vm1581_vm9 = vweird.f32 %v3557_v29 }
0x1793   :  { %vm1582_vm12 = vmor %vm1580_vm11, %vm1581_vm9 }
0x1794   :  { %v1577_v32 = vsub.f32 1.0, %v1576_v31 }
0x1796   :  { %v1578_v0 = vmul.f32 %v3557_v29, %v1577_v32 }
0x1798   :  { %v1579_v1 = vadd.f32 %v3557_v29, %v1578_v0 }
0x179a   :  { %v1583_v2 = vsel %vm1582_vm12, %v3557_v29, %v1579_v1 }
0x179b   :  { %v1588_v6 = vsel %vm1585_vm13, %v1587_v3, %v1583_v2 }
0x179c   :  { %v1591_v10 = vmul.f32 %v1588_v6, %v4500_v7 }
0x17e1   :  { %v1594_v5 = vpop.permute.xlu2 %1593 }
0x17e2   :  { %v1596_v8 = vmul.f32 %v1594_v5, %v1588_v6 }
0x17e4   :  { %1598 = vrot.lane.b32.xlu0 %v1596_v8, %s3917_s6 }
0x17ec   :  { %1076 = vrot.lane.b32.xlu0 %v1074_v4, %s3916_s3  ;;  %v4543_v4 = vld [vmem:[#allocation8] sm:$0xff] }
0x17ed   :  { %1723 = vmatpush.msrb.mxu3 %v4543_v4  ;;  %1788 = vmatpush.msra.mxu1 %v4543_v4 }
0x17ee   :  { %1724 = vmatmul.f32.vlgmr.msrb.gmra.mxu3 %v3915_v21  ;;  %1853 = vmatpush.msra.mxu2 %v4543_v4 }
0x17ef   :  { %1915 = vmatpush.msra.mxu3 %v4527_v12 }
0x17f1   :  { %1916 = vmatpush.msra.mxu3 %v4530_v58 }
0x17f3   :  { %1917 = vmatpush.msra.mxu3 %v4532_v25 }
0x17f5   :  { %1918 = vmatpush.msra.mxu3 %v4543_v4 }
0x17f7   :  { %2110 = vmatpush.msrb.mxu3 %v4527_v12 }
0x17f9   :  { %2111 = vmatpush.msrb.mxu3 %v4530_v58 }
0x17fb   :  { %2112 = vmatpush.msrb.mxu3 %v4532_v25 }
0x17fd   :  { %2113 = vmatpush.msrb.mxu3 %v4543_v4 }
0x1856   :  { %v1599_v11 = vpop.permute.xlu0 %1598 }
0x1857   :  { %v1601_v14 = vadd.f32 %v1599_v11, %v1591_v10 }
0x1859   :  { %3558 = vtanh.f32 %v1601_v14 }
0x185e   :  { %v1077_v15 = vpop.permute.xlu0 %1076 }
0x185f   :  { %v3559_v18 = vpop.eup %3558  ;;  %1079 = vst.msk [vmem:[#allocation2 + $0x38] sm:$0xff] %vm302_vm10, %v1077_v15 }
0x1860   :  { %1604 = vrot.lane.b32.xlu2 %v3559_v18, %s3916_s3 }
0x1866   :  { %v1087_v19 = vld [vmem:[#allocation2 + $0x38] sm:$0xff] }
0x1867   :  { %3300 = vmatmul.msk.f32.gmra.mxu0 %vm302_vm10, %v1087_v19 }
0x1871   :  { %v1725_v26 = vpop.f32.mrf.mxu3 }
0x18ba   :  { %v1605_v20 = vpop.permute.xlu2 %1604 }
0x18bb   :  { %v1607_v35 = vmul.f32 %v1605_v20, %v1588_v6 }
0x18bd   :  { %1609 = vrot.lane.b32.xlu1 %v1607_v35, %s3917_s6 }
0x18e4   :  { %v1162_v7 = vpop.f32.mrf.mxu0 }
0x18e5   :  { %v1163_v39 = vadd.f32 %v4431_v57, %v1162_v7  ;;  %v4575_v7 = vld [vmem:[#allocation11 + $0x28] sm:$0xff] }
0x192f   :  { %v1610_v37 = vpop.permute.xlu1 %1609 }
0x1930   :  { %3314 = vmatmul.msk.f32.vlgmr.msrb.gmra.mxu1 %vm1169_vm2, %v1610_v37  ;;  %v4573_v37 = vld [vmem:[#allocation11 + $0x38] sm:$0xff] }
0x1931   :  { %1980 = vmatpush.msrb.mxu1 %v4527_v12  ;;  %2325 = vmatpush.msra.mxu0 %v4573_v37 }
0x1933   :  { %1981 = vmatpush.msrb.mxu1 %v4530_v58  ;;  %2326 = vmatpush.msra.mxu0 %v4575_v7 }
0x1935   :  { %1982 = vmatpush.msrb.mxu1 %v4532_v25 }
0x1937   :  { %1983 = vmatpush.msrb.mxu1 %v4543_v4 }
0x19ad   :  { %v1630_v41 = vpop.f32.mrf.mxu1 }
0x19ae   :  { %v1633_v43 = vadd.f32 %v1630_v41, %v1163_v39  ;;  %v4578_v39 = vld [vmem:[#allocation11 + $0x18] sm:$0xff]  ;;  %v4581_v41 = vld [vmem:[#allocation11 + $0x8] sm:$0xff] }
0x19af   :  { %2327 = vmatpush.msra.mxu0 %v4578_v39 }
0x19b0   :  { %3560 = vtanh.f32 %v1633_v43  ;;  %v3315_v36 = vmul.f32 -1.442695, %v1633_v43 }
0x19b1   :  { %2328 = vmatpush.msra.mxu0 %v4581_v41 }
0x19b2   :  { %3562 = vpow2.f32 %v3315_v36 }
0x19b6   :  { %v3561_v44 = vpop.eup %3560 }
0x19b7   :  { %1656 = vrot.lane.b32.xlu2 %v3561_v44, %s3916_s3 }
0x19b8   :  { %v3563_v24 = vpop.eup %3562 }
0x19b9   :  { %v1637_v30 = vadd.f32 1.0, %v3563_v24 }
0x19bb   :  { %3564 = vrcp.f32 %v1637_v30  ;;  %v1649_v42 = vand.u32 2147483648, %v1637_v30  ;;  %vm1643_vm15 = vweird.f32 %v1637_v30  ;;  %v1647_v57 = vand.u32 2147483647, %v1637_v30 }
0x19bd   :  { %v1650_v28 = vor.u32 1.1754944e-38, %v1649_v42  ;;  %vm1648_vm3 = vcmp.eq.f32.partialorder %v1647_v57, 8.507059e+37 }
0x19c1   :  { %v3565_v33 = vpop.eup %3564 }
0x19c2   :  { %v1639_v45 = vmul.f32 %v3565_v33, %v1637_v30  ;;  %vm1644_vm14 = vweird.f32 %v3565_v33 }
0x19c3   :  { %vm1645_vm0 = vmor %vm1643_vm15, %vm1644_vm14 }
0x19c4   :  { %v1640_v38 = vsub.f32 1.0, %v1639_v45 }
0x19c6   :  { %v1641_v40 = vmul.f32 %v3565_v33, %v1640_v38 }
0x19c8   :  { %v1642_v46 = vadd.f32 %v3565_v33, %v1641_v40 }
0x19ca   :  { %v1646_v34 = vsel %vm1645_vm0, %v3565_v33, %v1642_v46 }
0x19cb   :  { %v1651_v48 = vsel %vm1648_vm3, %v1650_v28, %v1646_v34 }
0x19cc   :  { %v1654_v50 = vmul.f32 %v1651_v48, %v1601_v14 }
0x1a11   :  { %v1657_v47 = vpop.permute.xlu2 %1656 }
0x1a12   :  { %v1659_v49 = vmul.f32 %v1657_v47, %v1651_v48 }
0x1a14   :  { %1661 = vrot.lane.b32.xlu0 %v1659_v49, %s3917_s6 }
0x1a86   :  { %v1662_v51 = vpop.permute.xlu0 %1661 }
0x1a87   :  { %v1664_v52 = vadd.f32 %v1662_v51, %v1654_v50 }
0x1a89   :  { %3566 = vtanh.f32 %v1664_v52 }
0x1a8f   :  { %v3567_v53 = vpop.eup %3566 }
0x1a90   :  { %1667 = vrot.lane.b32.xlu1 %v3567_v53, %s3916_s3 }
0x1b02   :  { %v1668_v62 = vpop.permute.xlu1 %1667 }
0x1b03   :  { %v1670_v16 = vmul.f32 %v1668_v62, %v1651_v48 }
0x1b05   :  { %1680 = vrot.lane.b32.xlu2 %v1670_v16, %s3917_s6 }
0x1b5f   :  { %v1681_v22 = vpop.permute.xlu2 %1680 }
0x1b60   :  { %3316 = vmatmul.msk.f32.vlgmr.msrb.gmra.mxu2 %vm1169_vm2, %v1681_v22 }
0x1b61   :  { %2045 = vmatpush.msrb.mxu2 %v4527_v12 }
0x1b63   :  { %2046 = vmatpush.msrb.mxu2 %v4530_v58 }
0x1b65   :  { %2047 = vmatpush.msrb.mxu2 %v4532_v25 }
0x1b67   :  { %2048 = vmatpush.msrb.mxu2 %v4543_v4 }
0x1be3   :  { %v1701_v17 = vpop.f32.mrf.mxu2 }
0x1be4   :  { %v4566_v23 = vadd.f32 %v3406_v55, %v1701_v17 }
0x1be6   :  { %v1728_v27 = vadd.f32 %v1725_v26, %v4566_v23 }
0x1be8   :  { %3568 = vtanh.f32 %v1728_v27  ;;  %v3317_v13 = vmul.f32 -1.442695, %v1728_v27 }
0x1bea   :  { %3570 = vpow2.f32 %v3317_v13 }
0x1bee   :  { %v3569_v60 = vpop.eup %3568 }
0x1bef   :  { %1751 = vrot.lane.b32.xlu0 %v3569_v60, %s3916_s3 }
0x1bf0   :  { %v3571_v29 = vpop.eup %3570 }
0x1bf1   :  { %v1732_v31 = vadd.f32 1.0, %v3571_v29 }
0x1bf3   :  { %3572 = vrcp.f32 %v1732_v31  ;;  %v1744_v2 = vand.u32 2147483648, %v1732_v31  ;;  %vm1738_vm5 = vweird.f32 %v1732_v31  ;;  %v1742_v3 = vand.u32 2147483647, %v1732_v31 }
0x1bf5   :  { %v1745_v6 = vor.u32 1.1754944e-38, %v1744_v2  ;;  %vm1743_vm7 = vcmp.eq.f32.partialorder %v1742_v3, 8.507059e+37 }
0x1bf9   :  { %v3573_v32 = vpop.eup %3572 }
0x1bfa   :  { %v1734_v0 = vmul.f32 %v3573_v32, %v1732_v31  ;;  %vm1739_vm4 = vweird.f32 %v3573_v32 }
0x1bfb   :  { %vm1740_vm6 = vmor %vm1738_vm5, %vm1739_vm4 }
0x1bfc   :  { %v1735_v1 = vsub.f32 1.0, %v1734_v0 }
0x1bfe   :  { %v1736_v9 = vmul.f32 %v3573_v32, %v1735_v1 }
0x1c00   :  { %v1737_v63 = vadd.f32 %v3573_v32, %v1736_v9 }
0x1c02   :  { %v1741_v5 = vsel %vm1740_vm6, %v3573_v32, %v1737_v63 }
0x1c03   :  { %v1746_v10 = vsel %vm1743_vm7, %v1745_v6, %v1741_v5 }
0x1c04   :  { %v1749_v14 = vmul.f32 0.0, %v1746_v10 }
0x1c61   :  { %v1752_v8 = vpop.permute.xlu0 %1751 }
0x1c62   :  { %v1754_v11 = vmul.f32 %v1752_v8, %v1746_v10 }
0x1c64   :  { %1756 = vrot.lane.b32.xlu1 %v1754_v11, %s3917_s6 }
0x1cd6   :  { %v1757_v15 = vpop.permute.xlu1 %1756 }
0x1cd7   :  { %v1759_v18 = vadd.f32 %v1757_v15, %v1749_v14 }
0x1cd9   :  { %3574 = vtanh.f32 %v1759_v18 }
0x1cdf   :  { %v3575_v19 = vpop.eup %3574 }
0x1ce0   :  { %1762 = vrot.lane.b32.xlu2 %v3575_v19, %s3916_s3 }
0x1d3a   :  { %v1763_v20 = vpop.permute.xlu2 %1762 }
0x1d3b   :  { %v1765_v35 = vmul.f32 %v1763_v20, %v1746_v10 }
0x1d3d   :  { %1767 = vrot.lane.b32.xlu0 %v1765_v35, %s3917_s6 }
0x1daf   :  { %v1768_v43 = vpop.permute.xlu0 %1767 }
0x1db0   :  { %1770 = vst.msk [vmem:[#allocation3] sm:$0xff] %vm1169_vm2, %v1768_v43  ;;  %3318 = vmatmul.msk.f32.vlgmr.msra.gmra.mxu1 %vm1169_vm2, %v1768_v43 }
0x1db1   :  { %2175 = vmatpush.msra.mxu1 %v4527_v12 }
0x1db3   :  { %2176 = vmatpush.msra.mxu1 %v4530_v58 }
0x1db5   :  { %2177 = vmatpush.msra.mxu1 %v4532_v25 }
0x1db7   :  { %v4590_v44 = vld [vmem:[#allocation3] sm:$0xff]  ;;  %2178 = vmatpush.msra.mxu1 %v4543_v4 }
0x1db8   :  { %3340 = vmatmul.msk.f32.vlgmr.msra.gmra.mxu0 %vm1169_vm2, %v4590_v44 }
0x1e2d   :  { %v1790_v36 = vpop.f32.mrf.mxu1 }
0x1e2e   :  { %v1793_v24 = vadd.f32 %v1790_v36, %v4566_v23 }
0x1e30   :  { %3576 = vtanh.f32 %v1793_v24  ;;  %v3319_v33 = vmul.f32 -1.442695, %v1793_v24 }
0x1e32   :  { %3578 = vpow2.f32 %v3319_v33 }
0x1e36   :  { %v3577_v30 = vpop.eup %3576 }
0x1e37   :  { %1816 = vrot.lane.b32.xlu1 %v3577_v30, %s3916_s3 }
0x1e38   :  { %v3579_v45 = vpop.eup %3578 }
0x1e39   :  { %v1797_v38 = vadd.f32 1.0, %v3579_v45 }
0x1e3b   :  { %3580 = vrcp.f32 %v1797_v38  ;;  %v1809_v28 = vand.u32 2147483648, %v1797_v38  ;;  %vm1803_vm9 = vweird.f32 %v1797_v38  ;;  %v1807_v47 = vand.u32 2147483647, %v1797_v38 }
0x1e3d   :  { %v1810_v49 = vor.u32 1.1754944e-38, %v1809_v28  ;;  %vm1808_vm12 = vcmp.eq.f32.partialorder %v1807_v47, 8.507059e+37 }
0x1e41   :  { %v3581_v40 = vpop.eup %3580 }
0x1e42   :  { %v1799_v46 = vmul.f32 %v3581_v40, %v1797_v38  ;;  %vm1804_vm8 = vweird.f32 %v3581_v40 }
0x1e43   :  { %vm1805_vm11 = vmor %vm1803_vm9, %vm1804_vm8 }
0x1e44   :  { %v1800_v42 = vsub.f32 1.0, %v1799_v46 }
0x1e46   :  { %v1801_v57 = vmul.f32 %v3581_v40, %v1800_v42 }
0x1e48   :  { %v1802_v34 = vadd.f32 %v3581_v40, %v1801_v57 }
0x1e4a   :  { %v1806_v48 = vsel %vm1805_vm11, %v3581_v40, %v1802_v34 }
0x1e4b   :  { %v1811_v51 = vsel %vm1808_vm12, %v1810_v49, %v1806_v48 }
0x1e4c   :  { %v1814_v53 = vmul.f32 %v1811_v51, %v1759_v18 }
0x1ea9   :  { %v1817_v50 = vpop.permute.xlu1 %1816 }
0x1eaa   :  { %v1819_v52 = vmul.f32 %v1817_v50, %v1811_v51 }
0x1eac   :  { %1821 = vrot.lane.b32.xlu2 %v1819_v52, %s3917_s6 }
0x1f06   :  { %v1822_v54 = vpop.permute.xlu2 %1821 }
0x1f07   :  { %v1824_v56 = vadd.f32 %v1822_v54, %v1814_v53 }
0x1f09   :  { %3582 = vtanh.f32 %v1824_v56 }
0x1f0f   :  { %v3583_v12 = vpop.eup %3582 }
0x1f10   :  { %1827 = vrot.lane.b32.xlu0 %v3583_v12, %s3916_s3 }
0x1f82   :  { %v1828_v58 = vpop.permute.xlu0 %1827 }
0x1f83   :  { %v1830_v59 = vmul.f32 %v1828_v58, %v1811_v51 }
0x1f85   :  { %1832 = vrot.lane.b32.xlu1 %v1830_v59, %s3917_s6 }
0x1ff7   :  { %v1833_v25 = vpop.permute.xlu1 %1832 }
0x1ff8   :  { %1835 = vst.msk [vmem:[#allocation3 + $0x8] sm:$0xff] %vm1169_vm2, %v1833_v25  ;;  %3320 = vmatmul.msk.f32.vlgmr.msra.gmra.mxu2 %vm1169_vm2, %v1833_v25 }
0x1fff   :  { %v4602_v61 = vld [vmem:[#allocation3 + $0x8] sm:$0xff] }
0x2000   :  { %3341 = vmatmul.msk.f32.gmra.mxu0 %vm1169_vm2, %v4602_v61 }
0x207b   :  { %v1855_v62 = vpop.f32.mrf.mxu2 }
0x207c   :  { %v1858_v16 = vadd.f32 %v1855_v62, %v4566_v23 }
0x207e   :  { %3584 = vtanh.f32 %v1858_v16  ;;  %v3321_v22 = vmul.f32 -1.442695, %v1858_v16 }
0x2080   :  { %3586 = vpow2.f32 %v3321_v22 }
0x2084   :  { %v3585_v4 = vpop.eup %3584 }
0x2085   :  { %1881 = vrot.lane.b32.xlu2 %v3585_v4, %s3916_s3 }
0x2086   :  { %v3587_v55 = vpop.eup %3586 }
0x2087   :  { %v1862_v17 = vadd.f32 1.0, %v3587_v55 }
0x2089   :  { %3588 = vrcp.f32 %v1862_v17  ;;  %v1874_v31 = vand.u32 2147483648, %v1862_v17  ;;  %vm1868_vm14 = vweird.f32 %v1862_v17  ;;  %v1872_v32 = vand.u32 2147483647, %v1862_v17 }
0x208b   :  { %v1875_v1 = vor.u32 1.1754944e-38, %v1874_v31  ;;  %vm1873_vm0 = vcmp.eq.f32.partialorder %v1872_v32, 8.507059e+37 }
0x208f   :  { %v3589_v26 = vpop.eup %3588 }
0x2090   :  { %v1864_v27 = vmul.f32 %v3589_v26, %v1862_v17  ;;  %vm1869_vm13 = vweird.f32 %v3589_v26 }
0x2091   :  { %vm1870_vm15 = vmor %vm1868_vm14, %vm1869_vm13 }
0x2092   :  { %v1865_v60 = vsub.f32 1.0, %v1864_v27 }
0x2094   :  { %v1866_v13 = vmul.f32 %v3589_v26, %v1865_v60 }
0x2096   :  { %v1867_v29 = vadd.f32 %v3589_v26, %v1866_v13 }
0x2098   :  { %v1871_v0 = vsel %vm1870_vm15, %v3589_v26, %v1867_v29 }
0x2099   :  { %v1876_v63 = vsel %vm1873_vm0, %v1875_v1, %v1871_v0 }
0x209a   :  { %v1879_v3 = vmul.f32 %v1876_v63, %v1824_v56 }
0x20df   :  { %v1882_v9 = vpop.permute.xlu2 %1881 }
0x20e0   :  { %v1884_v2 = vmul.f32 %v1882_v9, %v1876_v63 }
0x20e2   :  { %1886 = vrot.lane.b32.xlu0 %v1884_v2, %s3917_s6  ;;  %v4640_v2 = vld [vmem:[#allocation12 + $0x78] sm:$0xff] }
0x20e3   :  { %2398 = vmatpush.msrb.mxu0 %v4640_v2 }
0x2154   :  { %v1887_v5 = vpop.permute.xlu0 %1886 }
0x2155   :  { %v1889_v6 = vadd.f32 %v1887_v5, %v1879_v3  ;;  %v2238_v3 = vld [vmem:[#allocation11 + $0x20] sm:$0xff]  ;;  %v4643_v5 = vld [vmem:[#allocation12 + $0x68] sm:$0xff] }
0x2156   :  { %2399 = vmatpush.msrb.mxu0 %v4643_v5 }
0x2157   :  { %3590 = vtanh.f32 %v1889_v6 }
0x215d   :  { %v3591_v8 = vpop.eup %3590 }
0x215e   :  { %1892 = vrot.lane.b32.xlu1 %v3591_v8, %s3916_s3  ;;  %v4645_v8 = vld [vmem:[#allocation12 + $0x58] sm:$0xff] }
0x215f   :  { %2400 = vmatpush.msrb.mxu0 %v4645_v8 }
0x21d0   :  { %v1893_v10 = vpop.permute.xlu1 %1892 }
0x21d1   :  { %v1895_v11 = vmul.f32 %v1893_v10, %v1876_v63  ;;  %v2240_v63 = vld [vmem:[#allocation11 + $0x30] sm:$0xff]  ;;  %v2234_v10 = vld [vmem:[#allocation11] sm:$0xff] }
0x21d2   :  { %2284 = vmatpush.msra.mxu2 %v2240_v63  ;;  %v4726_v63 = vld [vmem:[#allocation12 + $0x70] sm:$0xff] }
0x21d3   :  { %1897 = vrot.lane.b32.xlu2 %v1895_v11, %s3917_s6  ;;  %v4648_v11 = vld [vmem:[#allocation12 + $0x48] sm:$0xff] }
0x21d4   :  { %2285 = vmatpush.msra.mxu2 %v2238_v3  ;;  %2401 = vmatpush.msrb.mxu0 %v4648_v11  ;;  %v4728_v3 = vld [vmem:[#allocation12 + $0x60] sm:$0xff] }
0x222d   :  { %v1898_v14 = vpop.permute.xlu2 %1897 }
0x222e   :  { %1900 = vst.msk [vmem:[#allocation3 + $0x10] sm:$0xff] %vm1169_vm2, %v1898_v14  ;;  %3322 = vmatmul.msk.f32.vlgmr.msra.gmra.mxu3 %vm1169_vm2, %v1898_v14  ;;  %v4652_v14 = vld [vmem:[#allocation12 + $0x38] sm:$0xff] }
0x222f   :  { %3387 = vmatpush.msra.mxu3 %v4573_v37  ;;  %2402 = vmatpush.msrb.mxu0 %v4652_v14 }
0x2231   :  { %3388 = vmatpush.msra.mxu3 %v4575_v7 }
0x2233   :  { %3389 = vmatpush.msra.mxu3 %v4578_v39 }
0x2235   :  { %v4616_v15 = vld [vmem:[#allocation3 + $0x10] sm:$0xff]  ;;  %3390 = vmatpush.msra.mxu3 %v4581_v41 }
0x2236   :  { %3342 = vmatmul.msk.f32.gmra.mxu0 %vm1169_vm2, %v4616_v15 }
0x22b1   :  { %v1920_v18 = vpop.f32.mrf.mxu3 }
0x22b2   :  { %v1923_v19 = vadd.f32 %v1920_v18, %v4566_v23  ;;  %v4654_v18 = vld [vmem:[#allocation12 + $0x28] sm:$0xff] }
0x22b3   :  { %2403 = vmatpush.msrb.mxu0 %v4654_v18 }
0x22b4   :  { %3592 = vtanh.f32 %v1923_v19  ;;  %v3323_v35 = vmul.f32 -1.442695, %v1923_v19  ;;  %v4657_v19 = vld [vmem:[#allocation12 + $0x18] sm:$0xff] }
0x22b5   :  { %2404 = vmatpush.msrb.mxu0 %v4657_v19 }
0x22b6   :  { %3594 = vpow2.f32 %v3323_v35 }
0x22ba   :  { %v3593_v20 = vpop.eup %3592 }
0x22bb   :  { %1946 = vrot.lane.b32.xlu0 %v3593_v20, %s3916_s3  ;;  %v4660_v20 = vld [vmem:[#allocation12 + $0x8] sm:$0xff] }
0x22bc   :  { %v3595_v37 = vpop.eup %3594  ;;  %2405 = vmatpush.msrb.mxu0 %v4660_v20 }
0x22bd   :  { %v1927_v7 = vadd.f32 1.0, %v3595_v37 }
0x22be   :  { %2495 = vmatpush.msra.mxu0 %v4640_v2 }
0x22bf   :  { %3596 = vrcp.f32 %v1927_v7  ;;  %v1939_v30 = vand.u32 2147483648, %v1927_v7  ;;  %vm1933_vm4 = vweird.f32 %v1927_v7  ;;  %v1937_v33 = vand.u32 2147483647, %v1927_v7 }
0x22c0   :  { %2496 = vmatpush.msra.mxu0 %v4643_v5 }
0x22c1   :  { %v1940_v38 = vor.u32 1.1754944e-38, %v1939_v30  ;;  %vm1938_vm6 = vcmp.eq.f32.partialorder %v1937_v33, 8.507059e+37 }
0x22c2   :  { %2497 = vmatpush.msra.mxu0 %v4645_v8 }
0x22c4   :  { %2498 = vmatpush.msra.mxu0 %v4648_v11 }
0x22c5   :  { %v3597_v39 = vpop.eup %3596 }
0x22c6   :  { %v1929_v43 = vmul.f32 %v3597_v39, %v1927_v7  ;;  %vm1934_vm3 = vweird.f32 %v3597_v39  ;;  %2499 = vmatpush.msra.mxu0 %v4652_v14 }
0x22c7   :  { %vm1935_vm5 = vmor %vm1933_vm4, %vm1934_vm3 }
0x22c8   :  { %v1930_v36 = vsub.f32 1.0, %v1929_v43  ;;  %2500 = vmatpush.msra.mxu0 %v4654_v18 }
0x22ca   :  { %v1931_v24 = vmul.f32 %v3597_v39, %v1930_v36  ;;  %2501 = vmatpush.msra.mxu0 %v4657_v19 }
0x22cc   :  { %v1932_v41 = vadd.f32 %v3597_v39, %v1931_v24  ;;  %2502 = vmatpush.msra.mxu0 %v4660_v20 }
0x22ce   :  { %v1936_v45 = vsel %vm1935_vm5, %v3597_v39, %v1932_v41 }
0x22cf   :  { %v1941_v46 = vsel %vm1938_vm6, %v1940_v38, %v1936_v45 }
0x22d0   :  { %v1944_v57 = vmul.f32 %v1941_v46, %v1889_v6  ;;  %v2236_v6 = vld [vmem:[#allocation11 + $0x10] sm:$0xff] }
0x22d1   :  { %2286 = vmatpush.msra.mxu2 %v2236_v6  ;;  %v4732_v6 = vld [vmem:[#allocation12 + $0x50] sm:$0xff] }
0x22d3   :  { %2287 = vmatpush.msra.mxu2 %v2234_v10  ;;  %v4736_v10 = vld [vmem:[#allocation12 + $0x40] sm:$0xff] }
0x232d   :  { %v1947_v40 = vpop.permute.xlu0 %1946 }
0x232e   :  { %v1949_v42 = vmul.f32 %v1947_v40, %v1941_v46 }
0x2330   :  { %1951 = vrot.lane.b32.xlu1 %v1949_v42, %s3917_s6 }
0x23a2   :  { %v1952_v34 = vpop.permute.xlu1 %1951 }
0x23a3   :  { %v1954_v28 = vadd.f32 %v1952_v34, %v1944_v57 }
0x23a5   :  { %3598 = vtanh.f32 %v1954_v28 }
0x23ab   :  { %v3599_v47 = vpop.eup %3598 }
0x23ac   :  { %1957 = vrot.lane.b32.xlu2 %v3599_v47, %s3916_s3 }
0x2406   :  { %v1958_v48 = vpop.permute.xlu2 %1957 }
0x2407   :  { %v1960_v49 = vmul.f32 %v1958_v48, %v1941_v46 }
0x2409   :  { %1962 = vrot.lane.b32.xlu0 %v1960_v49, %s3917_s6 }
0x247b   :  { %v1963_v50 = vpop.permute.xlu0 %1962 }
0x247c   :  { %1965 = vst.msk [vmem:[#allocation3 + $0x18] sm:$0xff] %vm1169_vm2, %v1963_v50  ;;  %3324 = vmatmul.msk.f32.vlgmr.msrb.gmra.mxu1 %vm1169_vm2, %v1963_v50 }
0x247d   :  { %2378 = vmatpush.msrb.mxu1 %v4726_v63 }
0x247f   :  { %2379 = vmatpush.msrb.mxu1 %v4728_v3 }
0x2481   :  { %2380 = vmatpush.msrb.mxu1 %v4732_v6 }
0x2483   :  { %v4628_v51 = vld [vmem:[#allocation3 + $0x18] sm:$0xff]  ;;  %2381 = vmatpush.msrb.mxu1 %v4736_v10 }
0x2484   :  { %3343 = vmatmul.msk.f32.gmra.mxu0 %vm1169_vm2, %v4628_v51 }
0x24f9   :  { %v1985_v52 = vpop.f32.mrf.mxu1 }
0x24fa   :  { %v1988_v53 = vadd.f32 %v1985_v52, %v4566_v23 }
0x24fc   :  { %3600 = vtanh.f32 %v1988_v53  ;;  %v3325_v56 = vmul.f32 -1.442695, %v1988_v53 }
0x24fe   :  { %3602 = vpow2.f32 %v3325_v56 }
0x2502   :  { %v3601_v54 = vpop.eup %3600 }
0x2503   :  { %2011 = vrot.lane.b32.xlu1 %v3601_v54, %s3916_s3 }
0x2504   :  { %v3603_v12 = vpop.eup %3602 }
0x2505   :  { %v1992_v58 = vadd.f32 1.0, %v3603_v12 }
0x2507   :  { %3604 = vrcp.f32 %v1992_v58  ;;  %v2004_v22 = vand.u32 2147483648, %v1992_v58  ;;  %vm1998_vm8 = vweird.f32 %v1992_v58  ;;  %v2002_v55 = vand.u32 2147483647, %v1992_v58 }
0x2509   :  { %v2005_v26 = vor.u32 1.1754944e-38, %v2004_v22  ;;  %vm2003_vm11 = vcmp.eq.f32.partialorder %v2002_v55, 8.507059e+37 }
0x250d   :  { %v3605_v59 = vpop.eup %3604 }
0x250e   :  { %v1994_v25 = vmul.f32 %v3605_v59, %v1992_v58  ;;  %vm1999_vm7 = vweird.f32 %v3605_v59 }
0x250f   :  { %vm2000_vm9 = vmor %vm1998_vm8, %vm1999_vm7 }
0x2510   :  { %v1995_v62 = vsub.f32 1.0, %v1994_v25 }
0x2512   :  { %v1996_v16 = vmul.f32 %v3605_v59, %v1995_v62 }
0x2514   :  { %v1997_v4 = vadd.f32 %v3605_v59, %v1996_v16 }
0x2516   :  { %v2001_v17 = vsel %vm2000_vm9, %v3605_v59, %v1997_v4 }
0x2517   :  { %v2006_v60 = vsel %vm2003_vm11, %v2005_v26, %v2001_v17 }
0x2518   :  { %v2009_v29 = vmul.f32 %v2006_v60, %v1954_v28 }
0x2575   :  { %v2012_v27 = vpop.permute.xlu1 %2011 }
0x2576   :  { %v2014_v13 = vmul.f32 %v2012_v27, %v2006_v60 }
0x2578   :  { %2016 = vrot.lane.b32.xlu2 %v2014_v13, %s3917_s6 }
0x25d2   :  { %v2017_v31 = vpop.permute.xlu2 %2016 }
0x25d3   :  { %v4635_v32 = vadd.f32 %v2017_v31, %v2009_v29 }
0x25d5   :  { %3606 = vtanh.f32 %v4635_v32 }
0x25db   :  { %v3607_v0 = vpop.eup %3606 }
0x25dc   :  { %2022 = vrot.lane.b32.xlu0 %v3607_v0, %s3916_s3 }
0x264e   :  { %v2023_v1 = vpop.permute.xlu0 %2022 }
0x264f   :  { %v2025_v9 = vmul.f32 %v2023_v1, %v2006_v60 }
0x2651   :  { %2027 = vrot.lane.b32.xlu1 %v2025_v9, %s3917_s6 }
0x26c3   :  { %v2028_v35 = vpop.permute.xlu1 %2027 }
0x26c4   :  { %2030 = vst.msk [vmem:[#allocation3 + $0x20] sm:$0xff] %vm1169_vm2, %v2028_v35  ;;  %3326 = vmatmul.msk.f32.vlgmr.msrb.gmra.mxu2 %vm1169_vm2, %v2028_v35 }
0x26c5   :  { %2689 = vmatpush.msrb.mxu2 %v4640_v2 }
0x26c7   :  { %2690 = vmatpush.msrb.mxu2 %v4643_v5 }
0x26c9   :  { %2691 = vmatpush.msrb.mxu2 %v4645_v8 }
0x26cb   :  { %v2230_v37 = vld [vmem:[#allocation3 + $0x20] sm:$0xff]  ;;  %2692 = vmatpush.msrb.mxu2 %v4648_v11 }
0x26cc   :  { %3332 = vmatmul.msk.f32.vlgmr.msra.gmra.mxu2 %vm1169_vm2, %v4590_v44  ;;  %3344 = vmatmul.msk.f32.gmra.mxu0 %vm1169_vm2, %v2230_v37 }
0x26cd   :  { %2693 = vmatpush.msrb.mxu2 %v4652_v14 }
0x26cf   :  { %2694 = vmatpush.msrb.mxu2 %v4654_v18 }
0x26d1   :  { %2695 = vmatpush.msrb.mxu2 %v4657_v19 }
0x26d3   :  { %2696 = vmatpush.msrb.mxu2 %v4660_v20 }
0x26d4   :  { %3333 = vmatmul.msk.f32.gmra.mxu2 %vm1169_vm2, %v4602_v61  ;;  %2406 = vmatmul.f32.vlgmr.msrb.gmra.mxu0 %v3915_v21 }
0x26d5   :  { %2592 = vmatpush.msrb.mxu0 %v4640_v2  ;;  %2883 = vmatpush.msra.mxu2 %v4640_v2 }
0x26d7   :  { %2593 = vmatpush.msrb.mxu0 %v4643_v5  ;;  %2884 = vmatpush.msra.mxu2 %v4643_v5 }
0x26d9   :  { %2594 = vmatpush.msrb.mxu0 %v4645_v8  ;;  %2885 = vmatpush.msra.mxu2 %v4645_v8 }
0x26db   :  { %2595 = vmatpush.msrb.mxu0 %v4648_v11  ;;  %2886 = vmatpush.msra.mxu2 %v4648_v11 }
0x26dc   :  { %3334 = vmatmul.msk.f32.gmra.mxu2 %vm1169_vm2, %v4616_v15 }
0x26dd   :  { %2596 = vmatpush.msrb.mxu0 %v4652_v14  ;;  %2887 = vmatpush.msra.mxu2 %v4652_v14 }
0x26df   :  { %2597 = vmatpush.msrb.mxu0 %v4654_v18  ;;  %2888 = vmatpush.msra.mxu2 %v4654_v18 }
0x26e1   :  { %2598 = vmatpush.msrb.mxu0 %v4657_v19  ;;  %2889 = vmatpush.msra.mxu2 %v4657_v19 }
0x26e3   :  { %2599 = vmatpush.msrb.mxu0 %v4660_v20  ;;  %2890 = vmatpush.msra.mxu2 %v4660_v20 }
0x26e4   :  { %3335 = vmatmul.msk.f32.gmra.mxu2 %vm1169_vm2, %v4628_v51 }
0x26ec   :  { %3336 = vmatmul.msk.f32.gmra.mxu2 %vm1169_vm2, %v2230_v37 }
0x2747   :  { %v2050_v44 = vpop.f32.mrf.mxu2 }
0x2748   :  { %v2053_v61 = vadd.f32 %v2050_v44, %v4566_v23  ;;  %v4743_v44 = vld [vmem:[#allocation12 + $0x30] sm:$0xff] }
0x2749   :  { %2382 = vmatpush.msrb.mxu1 %v4743_v44 }
0x274a   :  { %3608 = vtanh.f32 %v2053_v61  ;;  %v3327_v7 = vmul.f32 -1.442695, %v2053_v61  ;;  %v4745_v61 = vld [vmem:[#allocation12 + $0x20] sm:$0xff] }
0x274b   :  { %2383 = vmatpush.msrb.mxu1 %v4745_v61 }
0x274c   :  { %3610 = vpow2.f32 %v3327_v7  ;;  %v4753_v7 = vld [vmem:[#allocation12] sm:$0xff] }
0x2750   :  { %v3609_v15 = vpop.eup %3608 }
0x2751   :  { %2076 = vrot.lane.b32.xlu2 %v3609_v15, %s3916_s3  ;;  %v4749_v15 = vld [vmem:[#allocation12 + $0x10] sm:$0xff] }
0x2752   :  { %v3611_v39 = vpop.eup %3610  ;;  %2384 = vmatpush.msrb.mxu1 %v4749_v15 }
0x2753   :  { %v2057_v43 = vadd.f32 1.0, %v3611_v39 }
0x2754   :  { %2385 = vmatpush.msrb.mxu1 %v4753_v7 }
0x2755   :  { %3612 = vrcp.f32 %v2057_v43  ;;  %v2069_v45 = vand.u32 2147483648, %v2057_v43  ;;  %vm2063_vm13 = vweird.f32 %v2057_v43  ;;  %v2067_v38 = vand.u32 2147483647, %v2057_v43 }
0x2757   :  { %v2070_v46 = vor.u32 1.1754944e-38, %v2069_v45  ;;  %vm2068_vm15 = vcmp.eq.f32.partialorder %v2067_v38, 8.507059e+37  ;;  %v2289_v45 = vpop.f32.mrf.mxu2 }
0x275b   :  { %v3613_v36 = vpop.eup %3612 }
0x275c   :  { %v2059_v24 = vmul.f32 %v3613_v36, %v2057_v43  ;;  %vm2064_vm12 = vweird.f32 %v3613_v36 }
0x275d   :  { %vm2065_vm14 = vmor %vm2063_vm13, %vm2064_vm12 }
0x275e   :  { %v2060_v41 = vsub.f32 1.0, %v2059_v24 }
0x2760   :  { %v2061_v30 = vmul.f32 %v3613_v36, %v2060_v41 }
0x2762   :  { %v2062_v33 = vadd.f32 %v3613_v36, %v2061_v30  ;;  %v2242_v30 = vld [vmem:[#allocation14] sm:$0x3] }
0x2764   :  { %v2066_v40 = vsel %vm2065_vm14, %v3613_v36, %v2062_v33  ;;  %v4792_v33 = vperm.slane %v2242_v30, 0 }
0x2765   :  { %v2071_v57 = vsel %vm2068_vm15, %v2070_v46, %v2066_v40 }
0x2766   :  { %v2074_v28 = vmul.f32 %v2071_v57, %v4635_v32  ;;  %v2290_v38 = vadd.f32 %v2289_v45, %v4792_v33 }
0x27ab   :  { %v2077_v42 = vpop.permute.xlu2 %2076 }
0x27ac   :  { %v2079_v34 = vmul.f32 %v2077_v42, %v2071_v57 }
0x27ae   :  { %2081 = vrot.lane.b32.xlu0 %v2079_v34, %s3917_s6 }
0x2820   :  { %v2082_v47 = vpop.permute.xlu0 %2081 }
0x2821   :  { %v2084_v48 = vadd.f32 %v2082_v47, %v2074_v28 }
0x2823   :  { %3614 = vtanh.f32 %v2084_v48 }
0x2829   :  { %v3615_v49 = vpop.eup %3614 }
0x282a   :  { %2087 = vrot.lane.b32.xlu1 %v3615_v49, %s3916_s3 }
0x289c   :  { %v2088_v50 = vpop.permute.xlu1 %2087 }
0x289d   :  { %v2090_v51 = vmul.f32 %v2088_v50, %v2071_v57 }
0x289f   :  { %2092 = vrot.lane.b32.xlu2 %v2090_v51, %s3917_s6 }
0x28f9   :  { %v2093_v52 = vpop.permute.xlu2 %2092 }
0x28fa   :  { %2095 = vst.msk [vmem:[#allocation3 + $0x28] sm:$0xff] %vm1169_vm2, %v2093_v52  ;;  %3328 = vmatmul.msk.f32.vlgmr.msrb.gmra.mxu3 %vm1169_vm2, %v2093_v52 }
0x28fb   :  { %2766 = vmatpush.msrb.mxu3 %v4726_v63 }
0x28fd   :  { %2767 = vmatpush.msrb.mxu3 %v4728_v3 }
0x28ff   :  { %2768 = vmatpush.msrb.mxu3 %v4732_v6 }
0x2901   :  { %v2231_v53 = vld [vmem:[#allocation3 + $0x28] sm:$0xff]  ;;  %2769 = vmatpush.msrb.mxu3 %v4736_v10 }
0x2902   :  { %3337 = vmatmul.msk.f32.gmra.mxu2 %vm1169_vm2, %v2231_v53  ;;  %3345 = vmatmul.msk.f32.vlgmr.msra.gmra.mxu3 %vm1169_vm2, %v2231_v53 }
0x2903   :  { %2770 = vmatpush.msrb.mxu3 %v4743_v44 }
0x2905   :  { %2771 = vmatpush.msrb.mxu3 %v4745_v61 }
0x2907   :  { %2772 = vmatpush.msrb.mxu3 %v4749_v15 }
0x2909   :  { %2773 = vmatpush.msrb.mxu3 %v4753_v7 }
0x290b   :  { %2960 = vmatpush.msra.mxu3 %v4726_v63 }
0x290d   :  { %2961 = vmatpush.msra.mxu3 %v4728_v3 }
0x290f   :  { %2962 = vmatpush.msra.mxu3 %v4732_v6 }
0x2911   :  { %2963 = vmatpush.msra.mxu3 %v4736_v10 }
0x2913   :  { %2964 = vmatpush.msra.mxu3 %v4743_v44 }
0x2915   :  { %2965 = vmatpush.msra.mxu3 %v4745_v61 }
0x2917   :  { %2966 = vmatpush.msra.mxu3 %v4749_v15 }
0x2919   :  { %2967 = vmatpush.msra.mxu3 %v4753_v7 }
0x297d   :  { %v2115_v54 = vpop.f32.mrf.mxu3 }
0x297e   :  { %v2118_v56 = vadd.f32 %v2115_v54, %v4566_v23 }
0x2980   :  { %3616 = vtanh.f32 %v2118_v56  ;;  %v3329_v58 = vmul.f32 -1.442695, %v2118_v56 }
0x2982   :  { %3618 = vpow2.f32 %v3329_v58 }
0x2986   :  { %v3617_v12 = vpop.eup %3616 }
0x2987   :  { %2141 = vrot.lane.b32.xlu0 %v3617_v12, %s3916_s3 }
0x2988   :  { %v3619_v59 = vpop.eup %3618 }
0x2989   :  { %v2122_v25 = vadd.f32 1.0, %v3619_v59 }
0x298b   :  { %3620 = vrcp.f32 %v2122_v25  ;;  %v2134_v17 = vand.u32 2147483648, %v2122_v25  ;;  %vm2128_vm3 = vweird.f32 %v2122_v25  ;;  %v2132_v26 = vand.u32 2147483647, %v2122_v25 }
0x298d   :  { %v2135_v60 = vor.u32 1.1754944e-38, %v2134_v17  ;;  %vm2133_vm5 = vcmp.eq.f32.partialorder %v2132_v26, 8.507059e+37 }
0x2991   :  { %v3621_v62 = vpop.eup %3620 }
0x2992   :  { %v2124_v16 = vmul.f32 %v3621_v62, %v2122_v25  ;;  %vm2129_vm0 = vweird.f32 %v3621_v62 }
0x2993   :  { %vm2130_vm4 = vmor %vm2128_vm3, %vm2129_vm0 }
0x2994   :  { %v2125_v4 = vsub.f32 1.0, %v2124_v16 }
0x2996   :  { %v2126_v22 = vmul.f32 %v3621_v62, %v2125_v4 }
0x2998   :  { %v2127_v55 = vadd.f32 %v3621_v62, %v2126_v22 }
0x299a   :  { %v2131_v27 = vsel %vm2130_vm4, %v3621_v62, %v2127_v55 }
0x299b   :  { %v2136_v29 = vsel %vm2133_vm5, %v2135_v60, %v2131_v27 }
0x299c   :  { %v2139_v32 = vmul.f32 %v2136_v29, %v2084_v48  ;;  %v4799_v48 = vperm.slane %v2242_v30, 1 }
0x29f9   :  { %v2142_v13 = vpop.permute.xlu0 %2141 }
0x29fa   :  { %v2144_v31 = vmul.f32 %v2142_v13, %v2136_v29 }
0x29fc   :  { %2146 = vrot.lane.b32.xlu1 %v2144_v31, %s3917_s6 }
0x2a6e   :  { %v2147_v0 = vpop.permute.xlu1 %2146 }
0x2a6f   :  { %v4722_v1 = vadd.f32 %v2147_v0, %v2139_v32 }
0x2a71   :  { %3622 = vtanh.f32 %v4722_v1 }
0x2a77   :  { %v3623_v9 = vpop.eup %3622 }
0x2a78   :  { %2152 = vrot.lane.b32.xlu2 %v3623_v9, %s3916_s3 }
0x2ad2   :  { %v2153_v35 = vpop.permute.xlu2 %2152 }
0x2ad3   :  { %v2155_v37 = vmul.f32 %v2153_v35, %v2136_v29 }
0x2ad5   :  { %2157 = vrot.lane.b32.xlu0 %v2155_v37, %s3917_s6 }
0x2b47   :  { %v2158_v39 = vpop.permute.xlu0 %2157 }
0x2b48   :  { %2160 = vst.msk [vmem:[#allocation3 + $0x30] sm:$0xff] %vm1169_vm2, %v2158_v39  ;;  %3330 = vmatmul.msk.f32.vlgmr.msra.gmra.mxu1 %vm1169_vm2, %v2158_v39 }
0x2b49   :  { %2475 = vmatpush.msra.mxu1 %v4726_v63 }
0x2b4b   :  { %2476 = vmatpush.msra.mxu1 %v4728_v3 }
0x2b4d   :  { %2477 = vmatpush.msra.mxu1 %v4732_v6 }
0x2b4f   :  { %v2232_v43 = vld [vmem:[#allocation3 + $0x30] sm:$0xff]  ;;  %2478 = vmatpush.msra.mxu1 %v4736_v10 }
0x2b50   :  { %3338 = vmatmul.msk.f32.gmra.mxu2 %vm1169_vm2, %v2232_v43  ;;  %3346 = vmatmul.msk.f32.gmra.mxu3 %vm1169_vm2, %v2232_v43 }
0x2b51   :  { %2386 = vmatmul.f32.vlgmr.msrb.gmra.mxu1 %v3915_v21  ;;  %v2330_v21 = vpop.f32.mrf.mxu0 }
0x2b52   :  { %2479 = vmatpush.msra.mxu1 %v4743_v44  ;;  %v2331_v50 = vadd.f32 %v2330_v21, %v4799_v48 }
0x2b54   :  { %2480 = vmatpush.msra.mxu1 %v4745_v61 }
0x2b56   :  { %2481 = vmatpush.msra.mxu1 %v4749_v15 }
0x2b58   :  { %2482 = vmatpush.msra.mxu1 %v4753_v7 }
0x2b59   :  { %v4788_v36 = vpop.f32.mrf.mxu0 }
0x2b5a   :  { %2572 = vmatpush.msrb.mxu1 %v4726_v63 }
0x2b5c   :  { %2573 = vmatpush.msrb.mxu1 %v4728_v3 }
0x2b5e   :  { %2574 = vmatpush.msrb.mxu1 %v4732_v6 }
0x2b60   :  { %2575 = vmatpush.msrb.mxu1 %v4736_v10 }
0x2b61   :  { %v4790_v41 = vpop.f32.mrf.mxu0 }
0x2b62   :  { %2576 = vmatpush.msrb.mxu1 %v4743_v44 }
0x2b64   :  { %2577 = vmatpush.msrb.mxu1 %v4745_v61 }
0x2b66   :  { %2578 = vmatpush.msrb.mxu1 %v4749_v15 }
0x2b68   :  { %2579 = vmatpush.msrb.mxu1 %v4753_v7 }
0x2b69   :  { %v4795_v40 = vpop.f32.mrf.mxu0 }
0x2b71   :  { %v4797_v34 = vpop.f32.mrf.mxu0 }
0x2b79   :  { %v2407_v49 = vpop.f32.mrf.mxu0 }
0x2b7a   :  { %v2411_v52 = vadd.f32 %v2407_v49, %v2331_v50 }
0x2b7c   :  { %v3349_v55 = vmul.f32 -1.442695, %v2411_v52 }
0x2bc5   :  { %v2180_v24 = vpop.f32.mrf.mxu1 }
0x2bc6   :  { %v2183_v30 = vadd.f32 %v2180_v24, %v4566_v23  ;;  %v2292_v24 = vpop.f32.mrf.mxu2 }
0x2bc8   :  { %v3331_v23 = vmul.f32 -1.442695, %v2183_v30 }
0x2bce   :  { %v2387_v46 = vpop.f32.mrf.mxu1 }
0x2bcf   :  { %v2410_v42 = vadd.f32 %v2387_v46, %v2290_v38 }
0x2bd1   :  { %v3348_v57 = vmul.f32 -1.442695, %v2410_v42 }
0x2bd3   :  { %3624 = vpow2.f32 %v3348_v57  ;;  %v2293_v57 = vadd.f32 %v2292_v24, %v4792_v33 }
0x2bd9   :  { %v3625_v28 = vpop.eup %3624 }
0x2bda   :  { %v2415_v47 = vadd.f32 1.0, %v3625_v28 }
0x2bdc   :  { %3626 = vrcp.f32 %v2415_v47  ;;  %v2427_v56 = vand.u32 2147483648, %v2415_v47  ;;  %v2425_v58 = vand.u32 2147483647, %v2415_v47  ;;  %vm2421_vm7 = vweird.f32 %v2415_v47 }
0x2bdd   :  { %3628 = vtanh.f32 %v2411_v52 }
0x2bde   :  { %v2428_v25 = vor.u32 1.1754944e-38, %v2427_v56  ;;  %vm2426_vm9 = vcmp.eq.f32.partialorder %v2425_v58, 8.507059e+37  ;;  %3630 = vpow2.f32 %v3349_v55 }
0x2be2   :  { %v3627_v51 = vpop.eup %3626 }
0x2be3   :  { %v2417_v53 = vmul.f32 %v3627_v51, %v2415_v47  ;;  %vm2422_vm6 = vweird.f32 %v3627_v51  ;;  %v3629_v16 = vpop.eup %3628 }
0x2be4   :  { %vm2423_vm8 = vmor %vm2421_vm7, %vm2422_vm6  ;;  %v3631_v17 = vpop.eup %3630 }
0x2be5   :  { %v2418_v54 = vsub.f32 1.0, %v2417_v53  ;;  %v2435_v26 = vadd.f32 1.0, %v3631_v17 }
0x2be7   :  { %v2419_v12 = vmul.f32 %v3627_v51, %v2418_v54  ;;  %3632 = vrcp.f32 %v2435_v26  ;;  %v2447_v35 = vand.u32 2147483648, %v2435_v26  ;;  %vm2441_vm12 = vweird.f32 %v2435_v26 }
0x2be8   :  { %v2445_v37 = vand.u32 2147483647, %v2435_v26 }
0x2be9   :  { %v2420_v59 = vadd.f32 %v3627_v51, %v2419_v12  ;;  %v2448_v43 = vor.u32 1.1754944e-38, %v2447_v35  ;;  %v2334_v12 = vadd.f32 %v4788_v36, %v4799_v48 }
0x2bea   :  { %vm2446_vm14 = vcmp.eq.f32.partialorder %v2445_v37, 8.507059e+37 }
0x2beb   :  { %v2424_v62 = vsel %vm2423_vm8, %v3627_v51, %v2420_v59 }
0x2bec   :  { %v2429_v4 = vsel %vm2426_vm9, %v2428_v25, %v2424_v62 }
0x2bed   :  { %v2452_v22 = vmul.f32 %v3629_v16, %v2429_v4  ;;  %v3633_v27 = vpop.eup %3632  ;;  %v2451_v31 = vmul.f32 0.0, %v2429_v4 }
0x2bee   :  { %v2437_v60 = vmul.f32 %v3633_v27, %v2435_v26  ;;  %vm2442_vm11 = vweird.f32 %v3633_v27 }
0x2bef   :  { %2454 = vrot.lane.b32.xlu1 %v2452_v22, %s3916_s3  ;;  %vm2443_vm13 = vmor %vm2441_vm12, %vm2442_vm11 }
0x2bf0   :  { %v2438_v13 = vsub.f32 1.0, %v2437_v60 }
0x2bf2   :  { %v2439_v29 = vmul.f32 %v3633_v27, %v2438_v13 }
0x2bf4   :  { %v2440_v9 = vadd.f32 %v3633_v27, %v2439_v29 }
0x2bf6   :  { %v2444_v39 = vsel %vm2443_vm13, %v3633_v27, %v2440_v9 }
0x2bf7   :  { %v2449_v45 = vsel %vm2446_vm14, %v2448_v43, %v2444_v39 }
0x2c61   :  { %v2455_v32 = vpop.permute.xlu1 %2454 }
0x2c62   :  { %v4803_v0 = vadd.f32 %v2455_v32, %v2451_v31 }
0x2c64   :  { %3634 = vtanh.f32 %v4803_v0 }
0x2c65   :  { %3636 = vtanh.f32 %v2183_v30 }
0x2c66   :  { %3638 = vpow2.f32 %v3331_v23 }
0x2c6a   :  { %v3635_v21 = vpop.eup %3634 }
0x2c6b   :  { %v2459_v38 = vmul.f32 %v3635_v21, %v2449_v45  ;;  %v3637_v46 = vpop.eup %3636 }
0x2c6c   :  { %v3639_v49 = vpop.eup %3638 }
0x2c6d   :  { %2461 = vrot.lane.b32.xlu2 %v2459_v38, %s3916_s3  ;;  %v2187_v51 = vadd.f32 1.0, %v3639_v49 }
0x2c6f   :  { %v2199_v9 = vand.u32 2147483648, %v2187_v51  ;;  %vm2193_vm6 = vweird.f32 %v2187_v51  ;;  %v2197_v35 = vand.u32 2147483647, %v2187_v51 }
0x2c71   :  { %v2200_v39 = vor.u32 1.1754944e-38, %v2199_v9  ;;  %vm2198_vm8 = vcmp.eq.f32.partialorder %v2197_v35, 8.507059e+37 }
0x2c75   :  { %2206 = vrot.lane.b32.xlu2 %v3637_v46, %s3916_s3 }
0x2cc7   :  { %v2462_v42 = vpop.permute.xlu2 %2461 }
0x2cc8   :  { %2464 = vst.msk [vmem:[#allocation2] sm:$0xff] %vm302_vm10, %v2462_v42  ;;  %3350 = vmatmul.msk.f32.vlgmr.msra.gmra.mxu1 %vm302_vm10, %v2462_v42  ;;  %3351 = vmatmul.msk.f32.vlgmr.msra.gmra.mxu0 %vm302_vm10, %v2462_v42 }
0x2cc9   :  { %2669 = vmatpush.msra.mxu1 %v4726_v63  ;;  %2786 = vmatpush.msra.mxu0 %v4640_v2 }
0x2ccb   :  { %2670 = vmatpush.msra.mxu1 %v4728_v3  ;;  %2787 = vmatpush.msra.mxu0 %v4643_v5 }
0x2ccd   :  { %2671 = vmatpush.msra.mxu1 %v4732_v6  ;;  %2788 = vmatpush.msra.mxu0 %v4645_v8 }
0x2ccf   :  { %2672 = vmatpush.msra.mxu1 %v4736_v10  ;;  %2789 = vmatpush.msra.mxu0 %v4648_v11  ;;  %v2207_v43 = vpop.permute.xlu2 %2206 }
0x2cd1   :  { %2673 = vmatpush.msra.mxu1 %v4743_v44  ;;  %2790 = vmatpush.msra.mxu0 %v4652_v14 }
0x2cd3   :  { %2674 = vmatpush.msra.mxu1 %v4745_v61  ;;  %2791 = vmatpush.msra.mxu0 %v4654_v18 }
0x2cd5   :  { %2675 = vmatpush.msra.mxu1 %v4749_v15  ;;  %2792 = vmatpush.msra.mxu0 %v4657_v19 }
0x2cd7   :  { %2676 = vmatpush.msra.mxu1 %v4753_v7  ;;  %2793 = vmatpush.msra.mxu0 %v4660_v20 }
0x2d45   :  { %v2484_v28 = vpop.f32.mrf.mxu1  ;;  %v2504_v56 = vpop.f32.mrf.mxu0 }
0x2d46   :  { %v2507_v47 = vadd.f32 %v2484_v28, %v2293_v57  ;;  %v2508_v25 = vadd.f32 %v2504_v56, %v2334_v12 }
0x2d48   :  { %v3352_v50 = vmul.f32 -1.442695, %v2507_v47  ;;  %v3353_v45 = vmul.f32 -1.442695, %v2508_v25 }
0x2d4a   :  { %3640 = vpow2.f32 %v3352_v50 }
0x2d4b   :  { %3642 = vrcp.f32 %v2187_v51 }
0x2d50   :  { %v3641_v52 = vpop.eup %3640 }
0x2d51   :  { %v2512_v53 = vadd.f32 1.0, %v3641_v52  ;;  %v3643_v54 = vpop.eup %3642 }
0x2d52   :  { %v2189_v58 = vmul.f32 %v3643_v54, %v2187_v51  ;;  %vm2194_vm5 = vweird.f32 %v3643_v54 }
0x2d53   :  { %3644 = vrcp.f32 %v2512_v53  ;;  %v2524_v22 = vand.u32 2147483648, %v2512_v53  ;;  %v2522_v17 = vand.u32 2147483647, %v2512_v53  ;;  %vm2518_vm0 = vweird.f32 %v2512_v53  ;;  %vm2195_vm7 = vmor %vm2193_vm6, %vm2194_vm5 }
0x2d54   :  { %v2190_v16 = vsub.f32 1.0, %v2189_v58  ;;  %3646 = vtanh.f32 %v2508_v25 }
0x2d55   :  { %v2525_v60 = vor.u32 1.1754944e-38, %v2524_v22  ;;  %vm2523_vm4 = vcmp.eq.f32.partialorder %v2522_v17, 8.507059e+37  ;;  %3648 = vpow2.f32 %v3353_v45  ;;  %v2295_v17 = vpop.f32.mrf.mxu2 }
0x2d56   :  { %v2191_v26 = vmul.f32 %v3643_v54, %v2190_v16 }
0x2d58   :  { %v2192_v31 = vadd.f32 %v3643_v54, %v2191_v26  ;;  %v2296_v26 = vadd.f32 %v2295_v17, %v4792_v33 }
0x2d59   :  { %v3645_v59 = vpop.eup %3644 }
0x2d5a   :  { %v2514_v62 = vmul.f32 %v3645_v59, %v2512_v53  ;;  %vm2519_vm15 = vweird.f32 %v3645_v59  ;;  %v3647_v29 = vpop.eup %3646  ;;  %v2196_v37 = vsel %vm2195_vm7, %v3643_v54, %v2192_v31 }
0x2d5b   :  { %vm2520_vm3 = vmor %vm2518_vm0, %vm2519_vm15  ;;  %v2201_v21 = vsel %vm2198_vm8, %v2200_v39, %v2196_v37  ;;  %v3649_v38 = vpop.eup %3648 }
0x2d5c   :  { %v2515_v4 = vsub.f32 1.0, %v2514_v62  ;;  %v2209_v30 = vmul.f32 %v2207_v43, %v2201_v21  ;;  %v2532_v46 = vadd.f32 1.0, %v3649_v38  ;;  %v2204_v54 = vmul.f32 %v2201_v21, %v4722_v1 }
0x2d5e   :  { %v2516_v55 = vmul.f32 %v3645_v59, %v2515_v4  ;;  %3650 = vrcp.f32 %v2532_v46  ;;  %v2544_v51 = vand.u32 2147483648, %v2532_v46  ;;  %vm2538_vm11 = vweird.f32 %v2532_v46 }
0x2d5f   :  { %v2542_v52 = vand.u32 2147483647, %v2532_v46 }
0x2d60   :  { %v2517_v27 = vadd.f32 %v3645_v59, %v2516_v55  ;;  %v2545_v56 = vor.u32 1.1754944e-38, %v2544_v51 }
0x2d61   :  { %vm2543_vm13 = vcmp.eq.f32.partialorder %v2542_v52, 8.507059e+37 }
0x2d62   :  { %v2521_v13 = vsel %vm2520_vm3, %v3645_v59, %v2517_v27 }
0x2d63   :  { %v2526_v36 = vsel %vm2523_vm4, %v2525_v60, %v2521_v13 }
0x2d64   :  { %v2549_v32 = vmul.f32 %v3647_v29, %v2526_v36  ;;  %v3651_v42 = vpop.eup %3650  ;;  %v2548_v28 = vmul.f32 %v2526_v36, %v4803_v0 }
0x2d65   :  { %v2534_v23 = vmul.f32 %v3651_v42, %v2532_v46  ;;  %vm2539_vm9 = vweird.f32 %v3651_v42 }
0x2d66   :  { %2551 = vrot.lane.b32.xlu0 %v2549_v32, %s3916_s3  ;;  %vm2540_vm12 = vmor %vm2538_vm11, %vm2539_vm9  ;;  %v2337_v32 = vadd.f32 %v4790_v41, %v4799_v48 }
0x2d67   :  { %v2535_v24 = vsub.f32 1.0, %v2534_v23 }
0x2d69   :  { %v2536_v57 = vmul.f32 %v3651_v42, %v2535_v24 }
0x2d6b   :  { %v2537_v50 = vadd.f32 %v3651_v42, %v2536_v57 }
0x2d6d   :  { %v2541_v53 = vsel %vm2540_vm12, %v3651_v42, %v2537_v50 }
0x2d6e   :  { %2211 = vrot.lane.b32.xlu0 %v2209_v30, %s3917_s6  ;;  %v2546_v0 = vsel %vm2543_vm13, %v2545_v56, %v2541_v53 }
0x2dd8   :  { %v2552_v47 = vpop.permute.xlu0 %2551 }
0x2dd9   :  { %v4834_v49 = vadd.f32 %v2552_v47, %v2548_v28 }
0x2ddb   :  { %3652 = vtanh.f32 %v4834_v49 }
0x2de0   :  { %v2212_v12 = vpop.permute.xlu0 %2211 }
0x2de1   :  { %v3653_v58 = vpop.eup %3652  ;;  %v2214_v59 = vadd.f32 %v2212_v12, %v2204_v54 }
0x2de2   :  { %v2556_v25 = vmul.f32 %v3653_v58, %v2546_v0 }
0x2de3   :  { %3654 = vtanh.f32 %v2214_v59 }
0x2de4   :  { %2558 = vrot.lane.b32.xlu1 %v2556_v25, %s3916_s3 }
0x2de9   :  { %v3655_v62 = vpop.eup %3654 }
0x2dea   :  { %2217 = vrot.lane.b32.xlu2 %v3655_v62, %s3916_s3 }
0x2e44   :  { %v2218_v16 = vpop.permute.xlu2 %2217 }
0x2e45   :  { %v2220_v4 = vmul.f32 %v2218_v16, %v2201_v21 }
0x2e47   :  { %2222 = vrot.lane.b32.xlu0 %v2220_v4, %s3917_s6 }
0x2e56   :  { %v2559_v22 = vpop.permute.xlu1 %2558 }
0x2e57   :  { %2561 = vst.msk [vmem:[#allocation2 + $0x8] sm:$0xff] %vm302_vm10, %v2559_v22  ;;  %3354 = vmatmul.msk.f32.vlgmr.msrb.gmra.mxu1 %vm302_vm10, %v2559_v22  ;;  %3355 = vmatmul.msk.f32.vlgmr.msrb.gmra.mxu0 %vm302_vm10, %v2559_v22 }
0x2e58   :  { %2863 = vmatpush.msrb.mxu1 %v4726_v63  ;;  %2980 = vmatpush.msrb.mxu0 %v4640_v2 }
0x2e5a   :  { %2864 = vmatpush.msrb.mxu1 %v4728_v3  ;;  %2981 = vmatpush.msrb.mxu0 %v4643_v5 }
0x2e5c   :  { %2865 = vmatpush.msrb.mxu1 %v4732_v6  ;;  %2982 = vmatpush.msrb.mxu0 %v4645_v8 }
0x2e5e   :  { %2866 = vmatpush.msrb.mxu1 %v4736_v10  ;;  %2983 = vmatpush.msrb.mxu0 %v4648_v11 }
0x2e60   :  { %2867 = vmatpush.msrb.mxu1 %v4743_v44  ;;  %2984 = vmatpush.msrb.mxu0 %v4652_v14 }
0x2e62   :  { %2868 = vmatpush.msrb.mxu1 %v4745_v61  ;;  %2985 = vmatpush.msrb.mxu0 %v4654_v18 }
0x2e64   :  { %2869 = vmatpush.msrb.mxu1 %v4749_v15  ;;  %2986 = vmatpush.msrb.mxu0 %v4657_v19 }
0x2e66   :  { %2870 = vmatpush.msrb.mxu1 %v4753_v7  ;;  %2987 = vmatpush.msrb.mxu0 %v4660_v20 }
0x2eb9   :  { %v2223_v1 = vpop.permute.xlu0 %2222 }
0x2eba   :  { %2225 = vst.msk [vmem:[#allocation3 + $0x38] sm:$0xff] %vm1169_vm2, %v2223_v1 }
0x2ec1   :  { %v2233_v55 = vld [vmem:[#allocation3 + $0x38] sm:$0xff] }
0x2ec2   :  { %3339 = vmatmul.msk.f32.gmra.mxu2 %vm1169_vm2, %v2233_v55  ;;  %3347 = vmatmul.msk.f32.gmra.mxu3 %vm1169_vm2, %v2233_v55 }
0x2ed4   :  { %v2581_v27 = vpop.f32.mrf.mxu1  ;;  %v2601_v31 = vpop.f32.mrf.mxu0 }
0x2ed5   :  { %v2604_v60 = vadd.f32 %v2581_v27, %v2296_v26  ;;  %v2605_v35 = vadd.f32 %v2601_v31, %v2337_v32 }
0x2ed7   :  { %v3356_v13 = vmul.f32 -1.442695, %v2604_v60  ;;  %v3357_v41 = vmul.f32 -1.442695, %v2605_v35 }
0x2ed9   :  { %3656 = vpow2.f32 %v3356_v13 }
0x2edf   :  { %v3657_v29 = vpop.eup %3656 }
0x2ee0   :  { %v2609_v36 = vadd.f32 1.0, %v3657_v29 }
0x2ee2   :  { %3658 = vrcp.f32 %v2609_v36  ;;  %v2621_v43 = vand.u32 2147483648, %v2609_v36  ;;  %v2619_v30 = vand.u32 2147483647, %v2609_v36  ;;  %vm2615_vm14 = vweird.f32 %v2609_v36 }
0x2ee3   :  { %3660 = vtanh.f32 %v2605_v35 }
0x2ee4   :  { %v2622_v38 = vor.u32 1.1754944e-38, %v2621_v43  ;;  %vm2620_vm0 = vcmp.eq.f32.partialorder %v2619_v30, 8.507059e+37  ;;  %3662 = vpow2.f32 %v3357_v41 }
0x2ee8   :  { %v3659_v9 = vpop.eup %3658 }
0x2ee9   :  { %v2611_v37 = vmul.f32 %v3659_v9, %v2609_v36  ;;  %vm2616_vm2 = vweird.f32 %v3659_v9  ;;  %v3661_v42 = vpop.eup %3660 }
0x2eea   :  { %vm2617_vm15 = vmor %vm2615_vm14, %vm2616_vm2  ;;  %v3663_v57 = vpop.eup %3662 }
0x2eeb   :  { %v2612_v39 = vsub.f32 1.0, %v2611_v37  ;;  %v2629_v28 = vadd.f32 1.0, %v3663_v57 }
0x2eed   :  { %v2613_v21 = vmul.f32 %v3659_v9, %v2612_v39  ;;  %3664 = vrcp.f32 %v2629_v28  ;;  %v2641_v58 = vand.u32 2147483648, %v2629_v28  ;;  %vm2635_vm4 = vweird.f32 %v2629_v28 }
0x2eee   :  { %v2639_v59 = vand.u32 2147483647, %v2629_v28 }
0x2eef   :  { %v2614_v45 = vadd.f32 %v3659_v9, %v2613_v21  ;;  %v2642_v25 = vor.u32 1.1754944e-38, %v2641_v58 }
0x2ef0   :  { %vm2640_vm6 = vcmp.eq.f32.partialorder %v2639_v59, 8.507059e+37 }
0x2ef1   :  { %v2618_v46 = vsel %vm2617_vm15, %v3659_v9, %v2614_v45 }
0x2ef2   :  { %v2623_v23 = vsel %vm2620_vm0, %v2622_v38, %v2618_v46 }
0x2ef3   :  { %v2646_v24 = vmul.f32 %v3661_v42, %v2623_v23  ;;  %v3665_v47 = vpop.eup %3664  ;;  %v2645_v53 = vmul.f32 %v2623_v23, %v4834_v49 }
0x2ef4   :  { %v2631_v50 = vmul.f32 %v3665_v47, %v2629_v28  ;;  %vm2636_vm3 = vweird.f32 %v3665_v47 }
0x2ef5   :  { %2648 = vrot.lane.b32.xlu1 %v2646_v24, %s3916_s3  ;;  %vm2637_vm5 = vmor %vm2635_vm4, %vm2636_vm3 }
0x2ef6   :  { %v2632_v51 = vsub.f32 1.0, %v2631_v50 }
0x2ef8   :  { %v2633_v52 = vmul.f32 %v3665_v47, %v2632_v51 }
0x2efa   :  { %v2634_v12 = vadd.f32 %v3665_v47, %v2633_v52 }
0x2efc   :  { %v2638_v0 = vsel %vm2637_vm5, %v3665_v47, %v2634_v12  ;;  %v4908_v47 = vpop.f32.mrf.mxu3 }
0x2efd   :  { %v2643_v16 = vsel %vm2640_vm6, %v2642_v25, %v2638_v0  ;;  %v2343_v0 = vadd.f32 %v4797_v34, %v4799_v48 }
0x2f04   :  { %v4910_v50 = vpop.f32.mrf.mxu3 }
0x2f45   :  { %v4912_v51 = vpop.f32.mrf.mxu3 }
0x2f67   :  { %v2649_v54 = vpop.permute.xlu1 %2648 }
0x2f68   :  { %v4868_v56 = vadd.f32 %v2649_v54, %v2645_v53 }
0x2f6a   :  { %3666 = vtanh.f32 %v4868_v56 }
0x2f70   :  { %v3667_v62 = vpop.eup %3666 }
0x2f71   :  { %v2653_v4 = vmul.f32 %v3667_v62, %v2643_v16 }
0x2f73   :  { %2655 = vrot.lane.b32.xlu1 %v2653_v4, %s3916_s3 }
0x2fe5   :  { %v2656_v49 = vpop.permute.xlu1 %2655 }
0x2fe6   :  { %2658 = vst.msk [vmem:[#allocation2 + $0x10] sm:$0xff] %vm302_vm10, %v2656_v49  ;;  %3358 = vmatmul.msk.f32.vlgmr.msra.gmra.mxu1 %vm302_vm10, %v2656_v49  ;;  %3359 = vmatmul.msk.f32.vlgmr.msrb.gmra.mxu2 %vm302_vm10, %v2656_v49 }
0x2fe7   :  { %3057 = vmatpush.msra.mxu1 %v4726_v63  ;;  %3077 = vmatpush.msrb.mxu2 %v4640_v2  ;;  %v2298_v2 = vpop.f32.mrf.mxu2 }
0x2fe9   :  { %3058 = vmatpush.msra.mxu1 %v4728_v3  ;;  %3078 = vmatpush.msrb.mxu2 %v4643_v5 }
0x2feb   :  { %3059 = vmatpush.msra.mxu1 %v4732_v6  ;;  %3079 = vmatpush.msrb.mxu2 %v4645_v8 }
0x2fed   :  { %3060 = vmatpush.msra.mxu1 %v4736_v10  ;;  %3080 = vmatpush.msrb.mxu2 %v4648_v11  ;;  %v2299_v11 = vadd.f32 %v2298_v2, %v4792_v33 }
0x2fef   :  { %3061 = vmatpush.msra.mxu1 %v4743_v44  ;;  %3081 = vmatpush.msrb.mxu2 %v4652_v14  ;;  %v4891_v5 = vpop.f32.mrf.mxu2 }
0x2ff0   :  { %v2302_v52 = vadd.f32 %v4891_v5, %v4792_v33 }
0x2ff1   :  { %3062 = vmatpush.msra.mxu1 %v4745_v61  ;;  %3082 = vmatpush.msrb.mxu2 %v4654_v18 }
0x2ff3   :  { %3063 = vmatpush.msra.mxu1 %v4749_v15  ;;  %3083 = vmatpush.msrb.mxu2 %v4657_v19 }
0x2ff5   :  { %3064 = vmatpush.msra.mxu1 %v4753_v7  ;;  %3084 = vmatpush.msrb.mxu2 %v4660_v20  ;;  %v2340_v20 = vadd.f32 %v4795_v40, %v4799_v48 }
0x2ff7   :  { %v4893_v8 = vpop.f32.mrf.mxu2 }
0x2fff   :  { %v4896_v63 = vpop.f32.mrf.mxu2 }
0x3007   :  { %v4898_v6 = vpop.f32.mrf.mxu2 }
0x3063   :  { %v2678_v14 = vpop.f32.mrf.mxu1 }
0x3064   :  { %v2701_v3 = vadd.f32 %v2678_v14, %v2299_v11 }
0x3066   :  { %v3360_v18 = vmul.f32 -1.442695, %v2701_v3 }
0x3068   :  { %3668 = vpow2.f32 %v3360_v18 }
0x3069   :  { %v2698_v44 = vpop.f32.mrf.mxu2 }
0x306a   :  { %v2702_v15 = vadd.f32 %v2698_v44, %v2340_v20 }
0x306c   :  { %v3361_v40 = vmul.f32 -1.442695, %v2702_v15 }
0x306e   :  { %v3669_v19 = vpop.eup %3668 }
0x306f   :  { %v2706_v10 = vadd.f32 1.0, %v3669_v19 }
0x3071   :  { %3670 = vrcp.f32 %v2706_v10  ;;  %v2718_v1 = vand.u32 2147483648, %v2706_v10  ;;  %v2716_v17 = vand.u32 2147483647, %v2706_v10  ;;  %vm2712_vm8 = vweird.f32 %v2706_v10 }
0x3072   :  { %3672 = vtanh.f32 %v2702_v15 }
0x3073   :  { %v2719_v27 = vor.u32 1.1754944e-38, %v2718_v1  ;;  %vm2717_vm11 = vcmp.eq.f32.partialorder %v2716_v17, 8.507059e+37  ;;  %3674 = vpow2.f32 %v3361_v40 }
0x3077   :  { %v3671_v61 = vpop.eup %3670 }
0x3078   :  { %v2708_v7 = vmul.f32 %v3671_v61, %v2706_v10  ;;  %vm2713_vm7 = vweird.f32 %v3671_v61  ;;  %v3673_v13 = vpop.eup %3672 }
0x3079   :  { %vm2714_vm9 = vmor %vm2712_vm8, %vm2713_vm7  ;;  %v3675_v31 = vpop.eup %3674 }
0x307a   :  { %v2709_v22 = vsub.f32 1.0, %v2708_v7  ;;  %v2726_v32 = vadd.f32 1.0, %v3675_v31 }
0x307c   :  { %v2710_v55 = vmul.f32 %v3671_v61, %v2709_v22  ;;  %3676 = vrcp.f32 %v2726_v32  ;;  %v2738_v38 = vand.u32 2147483648, %v2726_v32  ;;  %vm2732_vm13 = vweird.f32 %v2726_v32 }
0x307d   :  { %v2736_v46 = vand.u32 2147483647, %v2726_v32 }
0x307e   :  { %v2711_v26 = vadd.f32 %v3671_v61, %v2710_v55  ;;  %v2739_v23 = vor.u32 1.1754944e-38, %v2738_v38 }
0x307f   :  { %vm2737_vm14 = vcmp.eq.f32.partialorder %v2736_v46, 8.507059e+37 }
0x3080   :  { %v2715_v60 = vsel %vm2714_vm9, %v3671_v61, %v2711_v26 }
0x3081   :  { %v2720_v29 = vsel %vm2717_vm11, %v2719_v27, %v2715_v60 }
0x3082   :  { %v2743_v36 = vmul.f32 %v3673_v13, %v2720_v29  ;;  %v3677_v9 = vpop.eup %3676  ;;  %v2742_v43 = vmul.f32 %v2720_v29, %v4868_v56 }
0x3083   :  { %v2728_v35 = vmul.f32 %v3677_v9, %v2726_v32  ;;  %vm2733_vm12 = vweird.f32 %v3677_v9 }
0x3084   :  { %2745 = vrot.lane.b32.xlu2 %v2743_v36, %s3916_s3  ;;  %vm2734_vm2 = vmor %vm2732_vm13, %vm2733_vm12 }
0x3085   :  { %v2729_v37 = vsub.f32 1.0, %v2728_v35 }
0x3087   :  { %v2730_v39 = vmul.f32 %v3677_v9, %v2729_v37 }
0x3089   :  { %v2731_v45 = vadd.f32 %v3677_v9, %v2730_v39 }
0x308b   :  { %v2735_v42 = vsel %vm2734_vm2, %v3677_v9, %v2731_v45  ;;  %v2305_v9 = vadd.f32 %v4893_v8, %v4792_v33  ;;  %v2346_v45 = vadd.f32 %v4908_v47, %v4799_v48 }
0x308c   :  { %v2740_v41 = vsel %vm2737_vm14, %v2739_v23, %v2735_v42 }
0x30de   :  { %v2746_v21 = vpop.permute.xlu2 %2745 }
0x30df   :  { %v2748_v30 = vadd.f32 %v2746_v21, %v2742_v43 }
0x30e1   :  { %3678 = vtanh.f32 %v2748_v30 }
0x30e7   :  { %v3679_v24 = vpop.eup %3678 }
0x30e8   :  { %v2750_v57 = vmul.f32 %v3679_v24, %v2740_v41 }
0x30ea   :  { %2752 = vrot.lane.b32.xlu0 %v2750_v57, %s3916_s3 }
0x315c   :  { %v2753_v28 = vpop.permute.xlu0 %2752 }
0x315d   :  { %2755 = vst.msk [vmem:[#allocation2 + $0x18] sm:$0xff] %vm302_vm10, %v2753_v28  ;;  %3362 = vmatmul.msk.f32.vlgmr.msrb.gmra.mxu3 %vm302_vm10, %v2753_v28  ;;  %3363 = vmatmul.msk.f32.vlgmr.msra.gmra.mxu0 %vm302_vm10, %v2753_v28 }
0x31da   :  { %v2795_v59 = vpop.f32.mrf.mxu0 }
0x31db   :  { %v2799_v62 = vadd.f32 %v2795_v59, %v2343_v0  ;;  %v3159_v59 = vld [vmem:[%s5046_s13 + $0x38] sm:$0xff]  ;;  %v3158_v0 = vld [vmem:[%s5046_s13 + $0x30] sm:$0xff] }
0x31dc   :  { %3196 = vmatpush.msrb.mxu3 %v3159_v59 }
0x31dd   :  { %v3365_v34 = vmul.f32 -1.442695, %v2799_v62 }
0x31de   :  { %3197 = vmatpush.msrb.mxu3 %v3158_v0 }
0x31e0   :  { %v2775_v53 = vpop.f32.mrf.mxu3 }
0x31e1   :  { %v2798_v54 = vadd.f32 %v2775_v53, %v2302_v52 }
0x31e3   :  { %v3364_v56 = vmul.f32 -1.442695, %v2798_v54 }
0x31e5   :  { %3680 = vpow2.f32 %v3364_v56 }
0x31eb   :  { %v3681_v12 = vpop.eup %3680 }
0x31ec   :  { %v2803_v58 = vadd.f32 1.0, %v3681_v12 }
0x31ee   :  { %3682 = vrcp.f32 %v2803_v58  ;;  %v2815_v49 = vand.u32 2147483648, %v2803_v58  ;;  %v2813_v5 = vand.u32 2147483647, %v2803_v58  ;;  %vm2809_vm0 = vweird.f32 %v2803_v58 }
0x31ef   :  { %3684 = vtanh.f32 %v2799_v62  ;;  %v3156_v62 = vld [vmem:[%s5046_s13 + $0x20] sm:$0xff] }
0x31f0   :  { %v2816_v14 = vor.u32 1.1754944e-38, %v2815_v49  ;;  %vm2814_vm4 = vcmp.eq.f32.partialorder %v2813_v5, 8.507059e+37  ;;  %3686 = vpow2.f32 %v3365_v34 }
0x31f4   :  { %v3683_v25 = vpop.eup %3682 }
0x31f5   :  { %v2805_v16 = vmul.f32 %v3683_v25, %v2803_v58  ;;  %vm2810_vm15 = vweird.f32 %v3683_v25  ;;  %v3685_v18 = vpop.eup %3684 }
0x31f6   :  { %vm2811_vm3 = vmor %vm2809_vm0, %vm2810_vm15  ;;  %v3687_v44 = vpop.eup %3686 }
0x31f7   :  { %v2806_v4 = vsub.f32 1.0, %v2805_v16  ;;  %v2823_v20 = vadd.f32 1.0, %v3687_v44 }
0x31f9   :  { %v2807_v2 = vmul.f32 %v3683_v25, %v2806_v4  ;;  %3688 = vrcp.f32 %v2823_v20  ;;  %v2835_v27 = vand.u32 2147483648, %v2823_v20  ;;  %vm2829_vm6 = vweird.f32 %v2823_v20 }
0x31fa   :  { %v2833_v60 = vand.u32 2147483647, %v2823_v20 }
0x31fb   :  { %v2808_v11 = vadd.f32 %v3683_v25, %v2807_v2  ;;  %v2836_v29 = vor.u32 1.1754944e-38, %v2835_v27  ;;  %v3146_v27 = vld [vmem:[#allocation2 + $0x10] sm:$0xff] }
0x31fc   :  { %vm2834_vm8 = vcmp.eq.f32.partialorder %v2833_v60, 8.507059e+37  ;;  %v3147_v60 = vld [vmem:[#allocation2 + $0x18] sm:$0xff] }
0x31fd   :  { %v2812_v3 = vsel %vm2811_vm3, %v3683_v25, %v2808_v11  ;;  %v3157_v25 = vld [vmem:[%s5046_s13 + $0x28] sm:$0xff] }
0x31fe   :  { %v2817_v19 = vsel %vm2814_vm4, %v2816_v14, %v2812_v3  ;;  %3198 = vmatpush.msrb.mxu3 %v3157_v25 }
0x31ff   :  { %v2840_v10 = vmul.f32 %v3685_v18, %v2817_v19  ;;  %v3689_v61 = vpop.eup %3688  ;;  %v2839_v1 = vmul.f32 %v2817_v19, %v2748_v30 }
0x3200   :  { %v2825_v15 = vmul.f32 %v3689_v61, %v2823_v20  ;;  %vm2830_vm5 = vweird.f32 %v3689_v61  ;;  %3199 = vmatpush.msrb.mxu3 %v3156_v62 }
0x3201   :  { %2842 = vrot.lane.b32.xlu1 %v2840_v10, %s3916_s3  ;;  %vm2831_vm7 = vmor %vm2829_vm6, %vm2830_vm5 }
0x3202   :  { %v2826_v7 = vsub.f32 1.0, %v2825_v15  ;;  %v3155_v15 = vld [vmem:[%s5046_s13 + $0x18] sm:$0xff] }
0x3203   :  { %3200 = vmatpush.msrb.mxu3 %v3155_v15 }
0x3204   :  { %v2827_v22 = vmul.f32 %v3689_v61, %v2826_v7  ;;  %v3154_v7 = vld [vmem:[%s5046_s13 + $0x10] sm:$0xff] }
0x3205   :  { %3201 = vmatpush.msrb.mxu3 %v3154_v7 }
0x3206   :  { %v2828_v26 = vadd.f32 %v3689_v61, %v2827_v22  ;;  %v3153_v22 = vld [vmem:[%s5046_s13 + $0x8] sm:$0xff] }
0x3207   :  { %3202 = vmatpush.msrb.mxu3 %v3153_v22 }
0x3208   :  { %v2832_v13 = vsel %vm2831_vm7, %v3689_v61, %v2828_v26  ;;  %v3145_v26 = vld [vmem:[#allocation2 + $0x8] sm:$0xff] }
0x3209   :  { %v2837_v40 = vsel %vm2834_vm8, %v2836_v29, %v2832_v13 }
0x3273   :  { %v2843_v55 = vpop.permute.xlu1 %2842 }
0x3274   :  { %v4919_v17 = vadd.f32 %v2843_v55, %v2839_v1  ;;  %v3152_v1 = vld [vmem:[%s5046_s13] sm:$0xff] }
0x3275   :  { %3203 = vmatpush.msrb.mxu3 %v3152_v1 }
0x3276   :  { %3690 = vtanh.f32 %v4919_v17 }
0x327c   :  { %v3691_v36 = vpop.eup %3690 }
0x327d   :  { %v2847_v31 = vmul.f32 %v3691_v36, %v2837_v40  ;;  %v2308_v36 = vadd.f32 %v4896_v63, %v4792_v33 }
0x327f   :  { %2849 = vrot.lane.b32.xlu2 %v2847_v31, %s3916_s3 }
0x32d9   :  { %v2850_v32 = vpop.permute.xlu2 %2849 }
0x32da   :  { %2852 = vst.msk [vmem:[#allocation2 + $0x20] sm:$0xff] %vm302_vm10, %v2850_v32  ;;  %3366 = vmatmul.msk.f32.vlgmr.msrb.gmra.mxu1 %vm302_vm10, %v2850_v32  ;;  %3367 = vmatmul.msk.f32.vlgmr.msra.gmra.mxu2 %vm302_vm10, %v2850_v32 }
0x32e1   :  { %v3148_v13 = vld [vmem:[#allocation2 + $0x20] sm:$0xff] }
0x3357   :  { %v2872_v35 = vpop.f32.mrf.mxu1 }
0x3358   :  { %v2895_v37 = vadd.f32 %v2872_v35, %v2305_v9  ;;  %v4974_v9 = vld [vmem:[%s5047_s14] ss:$0 sm:$0xff] }
0x335a   :  { %v3368_v39 = vmul.f32 -1.442695, %v2895_v37 }
0x335c   :  { %3692 = vpow2.f32 %v3368_v39 }
0x335d   :  { %v2892_v30 = vpop.f32.mrf.mxu2 }
0x335e   :  { %v2896_v46 = vadd.f32 %v2892_v30, %v2346_v45  ;;  %v2349_v45 = vadd.f32 %v4910_v50, %v4799_v48 }
0x3360   :  { %v3369_v47 = vmul.f32 -1.442695, %v2896_v46 }
0x3362   :  { %v3693_v43 = vpop.eup %3692 }
0x3363   :  { %v2900_v21 = vadd.f32 1.0, %v3693_v43 }
0x3365   :  { %3694 = vrcp.f32 %v2900_v21  ;;  %v2912_v24 = vand.u32 2147483648, %v2900_v21  ;;  %v2910_v8 = vand.u32 2147483647, %v2900_v21  ;;  %vm2906_vm11 = vweird.f32 %v2900_v21 }
0x3366   :  { %3696 = vtanh.f32 %v2896_v46 }
0x3367   :  { %v2913_v28 = vor.u32 1.1754944e-38, %v2912_v24  ;;  %vm2911_vm13 = vcmp.eq.f32.partialorder %v2910_v8, 8.507059e+37  ;;  %3698 = vpow2.f32 %v3369_v47 }
0x336b   :  { %v3695_v38 = vpop.eup %3694 }
0x336c   :  { %v2902_v42 = vmul.f32 %v3695_v38, %v2900_v21  ;;  %vm2907_vm9 = vweird.f32 %v3695_v38  ;;  %v3697_v53 = vpop.eup %3696 }
0x336d   :  { %vm2908_vm12 = vmor %vm2906_vm11, %vm2907_vm9  ;;  %v3699_v12 = vpop.eup %3698 }
0x336e   :  { %v2903_v23 = vsub.f32 1.0, %v2902_v42  ;;  %v2920_v58 = vadd.f32 1.0, %v3699_v12 }
0x3370   :  { %v2904_v41 = vmul.f32 %v3695_v38, %v2903_v23  ;;  %3700 = vrcp.f32 %v2920_v58  ;;  %v2932_v18 = vand.u32 2147483648, %v2920_v58  ;;  %vm2926_vm14 = vweird.f32 %v2920_v58 }
0x3371   :  { %v2930_v19 = vand.u32 2147483647, %v2920_v58 }
0x3372   :  { %v2905_v57 = vadd.f32 %v3695_v38, %v2904_v41  ;;  %v2933_v34 = vor.u32 1.1754944e-38, %v2932_v18 }
0x3373   :  { %vm2931_vm0 = vcmp.eq.f32.partialorder %v2930_v19, 8.507059e+37 }
0x3374   :  { %v2909_v52 = vsel %vm2908_vm12, %v3695_v38, %v2905_v57 }
0x3375   :  { %v2914_v54 = vsel %vm2911_vm13, %v2913_v28, %v2909_v52 }
0x3376   :  { %v2937_v56 = vmul.f32 %v3697_v53, %v2914_v54  ;;  %v3701_v16 = vpop.eup %3700  ;;  %v2936_v5 = vmul.f32 %v2914_v54, %v4919_v17  ;;  %v3144_v17 = vld [vmem:[#allocation2] sm:$0xff] }
0x3377   :  { %v2922_v4 = vmul.f32 %v3701_v16, %v2920_v58  ;;  %vm2927_vm2 = vweird.f32 %v3701_v16 }
0x3378   :  { %2939 = vrot.lane.b32.xlu0 %v2937_v56, %s3916_s3  ;;  %vm2928_vm15 = vmor %vm2926_vm14, %vm2927_vm2 }
0x3379   :  { %v2923_v49 = vsub.f32 1.0, %v2922_v4 }
0x337b   :  { %v2924_v2 = vmul.f32 %v3701_v16, %v2923_v49 }
0x337d   :  { %v2925_v3 = vadd.f32 %v3701_v16, %v2924_v2 }
0x337f   :  { %v2929_v10 = vsel %vm2928_vm15, %v3701_v16, %v2925_v3 }
0x3380   :  { %v2934_v20 = vsel %vm2931_vm0, %v2933_v34, %v2929_v10 }
0x33ea   :  { %v2940_v11 = vpop.permute.xlu0 %2939 }
0x33eb   :  { %v4944_v14 = vadd.f32 %v2940_v11, %v2936_v5 }
0x33ed   :  { %3702 = vtanh.f32 %v4944_v14 }
0x33f3   :  { %v3703_v44 = vpop.eup %3702 }
0x33f4   :  { %v2944_v61 = vmul.f32 %v3703_v44, %v2934_v20 }
0x33f6   :  { %2946 = vrot.lane.b32.xlu1 %v2944_v61, %s3916_s3 }
0x3468   :  { %v2947_v55 = vpop.permute.xlu1 %2946 }
0x3469   :  { %2949 = vst.msk [vmem:[#allocation2 + $0x28] sm:$0xff] %vm302_vm10, %v2947_v55  ;;  %3370 = vmatmul.msk.f32.vlgmr.msra.gmra.mxu3 %vm302_vm10, %v2947_v55  ;;  %3371 = vmatmul.msk.f32.vlgmr.msrb.gmra.mxu0 %vm302_vm10, %v2947_v55 }
0x3470   :  { %v3149_v29 = vld [vmem:[#allocation2 + $0x28] sm:$0xff] }
0x3471   :  { %3378 = vmatmul.msk.f32.vlgmr.msrb.gmra.mxu3 %vm302_vm10, %v3144_v17  ;;  %v2311_v17 = vadd.f32 %v4898_v6, %v4792_v33 }
0x3479   :  { %3379 = vmatmul.msk.f32.gmra.mxu3 %vm302_vm10, %v3145_v26 }
0x3481   :  { %3380 = vmatmul.msk.f32.gmra.mxu3 %vm302_vm10, %v3146_v27 }
0x3489   :  { %3381 = vmatmul.msk.f32.gmra.mxu3 %vm302_vm10, %v3147_v60 }
0x3491   :  { %3382 = vmatmul.msk.f32.gmra.mxu3 %vm302_vm10, %v3148_v13 }
0x3499   :  { %3383 = vmatmul.msk.f32.gmra.mxu3 %vm302_vm10, %v3149_v29 }
0x34e6   :  { %v2989_v21 = vpop.f32.mrf.mxu0 }
0x34e7   :  { %v2993_v46 = vadd.f32 %v2989_v21, %v2349_v45 }
0x34e9   :  { %v3373_v16 = vmul.f32 -1.442695, %v2993_v46 }
0x34ec   :  { %v2969_v40 = vpop.f32.mrf.mxu3 }
0x34ed   :  { %v2992_v31 = vadd.f32 %v2969_v40, %v2308_v36 }
0x34ef   :  { %v3372_v32 = vmul.f32 -1.442695, %v2992_v31 }
0x34f1   :  { %3704 = vpow2.f32 %v3372_v32  ;;  %v2352_v32 = vadd.f32 %v4912_v51, %v4799_v48 }
0x34f4   :  { %v3205_v35 = vpop.f32.mrf.mxu3 }
0x34f5   :  { %v3206_v37 = vadd.f32 %v4974_v9, %v3205_v35 }
0x34f7   :  { %v3705_v39 = vpop.eup %3704  ;;  %3229 = vst.msk [vmem:[%s5048_s15] sm:$0xff] %vm174_vm1, %v3206_v37 }
0x34f8   :  { %v2997_v43 = vadd.f32 1.0, %v3705_v39 }
0x34fa   :  { %3706 = vrcp.f32 %v2997_v43  ;;  %v3009_v41 = vand.u32 2147483648, %v2997_v43  ;;  %v3007_v28 = vand.u32 2147483647, %v2997_v43  ;;  %vm3003_vm4 = vweird.f32 %v2997_v43 }
0x34fb   :  { %3708 = vtanh.f32 %v2993_v46 }
0x34fc   :  { %v3208_v63 = vpop.f32.mrf.mxu3  ;;  %v3010_v52 = vor.u32 1.1754944e-38, %v3009_v41  ;;  %vm3008_vm6 = vcmp.eq.f32.partialorder %v3007_v28, 8.507059e+37  ;;  %3710 = vpow2.f32 %v3373_v16 }
0x34fd   :  { %v3209_v30 = vadd.f32 %v4974_v9, %v3208_v63 }
0x34ff   :  { %3230 = vst.msk [vmem:[%s5048_s15 + $0x8] sm:$0xff] %vm174_vm1, %v3209_v30 }
0x3500   :  { %v3707_v38 = vpop.eup %3706 }
0x3501   :  { %v2999_v42 = vmul.f32 %v3707_v38, %v2997_v43  ;;  %vm3004_vm3 = vweird.f32 %v3707_v38  ;;  %v3709_v54 = vpop.eup %3708 }
0x3502   :  { %vm3005_vm5 = vmor %vm3003_vm4, %vm3004_vm3  ;;  %v3711_v4 = vpop.eup %3710 }
0x3503   :  { %v3000_v23 = vsub.f32 1.0, %v2999_v42  ;;  %v3017_v49 = vadd.f32 1.0, %v3711_v4 }
0x3504   :  { %v3211_v24 = vpop.f32.mrf.mxu3 }
0x3505   :  { %v3212_v8 = vadd.f32 %v4974_v9, %v3211_v24  ;;  %v3001_v57 = vmul.f32 %v3707_v38, %v3000_v23  ;;  %3712 = vrcp.f32 %v3017_v49  ;;  %v3029_v44 = vand.u32 2147483648, %v3017_v49 }
0x3506   :  { %vm3023_vm8 = vweird.f32 %v3017_v49  ;;  %v3027_v20 = vand.u32 2147483647, %v3017_v49 }
0x3507   :  { %3231 = vst.msk [vmem:[%s5048_s15 + $0x10] sm:$0xff] %vm174_vm1, %v3212_v8  ;;  %v3002_v50 = vadd.f32 %v3707_v38, %v3001_v57  ;;  %v3030_v15 = vor.u32 1.1754944e-38, %v3029_v44 }
0x3508   :  { %vm3028_vm11 = vcmp.eq.f32.partialorder %v3027_v20, 8.507059e+37 }
0x3509   :  { %v3006_v53 = vsel %vm3005_vm5, %v3707_v38, %v3002_v50 }
0x350a   :  { %v3011_v56 = vsel %vm3008_vm6, %v3010_v52, %v3006_v53 }
0x350b   :  { %v3034_v47 = vmul.f32 %v3709_v54, %v3011_v56  ;;  %v3713_v2 = vpop.eup %3712  ;;  %v3033_v18 = vmul.f32 %v3011_v56, %v4944_v14 }
0x350c   :  { %v3214_v12 = vpop.f32.mrf.mxu3  ;;  %v3019_v5 = vmul.f32 %v3713_v2, %v3017_v49  ;;  %vm3024_vm7 = vweird.f32 %v3713_v2 }
0x350d   :  { %v3215_v58 = vadd.f32 %v4974_v9, %v3214_v12  ;;  %3036 = vrot.lane.b32.xlu2 %v3034_v47, %s3916_s3  ;;  %vm3025_vm9 = vmor %vm3023_vm8, %vm3024_vm7 }
0x350e   :  { %v3020_v11 = vsub.f32 1.0, %v3019_v5 }
0x350f   :  { %3232 = vst.msk [vmem:[%s5048_s15 + $0x18] sm:$0xff] %vm174_vm1, %v3215_v58 }
0x3510   :  { %v3021_v3 = vmul.f32 %v3713_v2, %v3020_v11 }
0x3512   :  { %v3022_v34 = vadd.f32 %v3713_v2, %v3021_v3 }
0x3514   :  { %v3217_v59 = vpop.f32.mrf.mxu3  ;;  %v3026_v61 = vsel %vm3025_vm9, %v3713_v2, %v3022_v34 }
0x3515   :  { %v3218_v0 = vadd.f32 %v4974_v9, %v3217_v59  ;;  %v3031_v22 = vsel %vm3028_vm11, %v3030_v15, %v3026_v61 }
0x3517   :  { %3233 = vst.msk [vmem:[%s5048_s15 + $0x20] sm:$0xff] %vm174_vm1, %v3218_v0 }
0x351c   :  { %v3220_v25 = vpop.f32.mrf.mxu3 }
0x351d   :  { %v3221_v62 = vadd.f32 %v4974_v9, %v3220_v25 }
0x351f   :  { %3234 = vst.msk [vmem:[%s5048_s15 + $0x28] sm:$0xff] %vm174_vm1, %v3221_v62 }
0x3567   :  { %v3037_v19 = vpop.permute.xlu2 %3036 }
0x3568   :  { %v3039_v10 = vadd.f32 %v3037_v19, %v3033_v18 }
0x356a   :  { %3714 = vtanh.f32 %v3039_v10 }
0x3570   :  { %v3715_v7 = vpop.eup %3714 }
0x3571   :  { %v3041_v1 = vmul.f32 %v3715_v7, %v3031_v22 }
0x3573   :  { %3043 = vrot.lane.b32.xlu0 %v3041_v1, %s3916_s3 }
0x35e5   :  { %v3044_v55 = vpop.permute.xlu0 %3043 }
0x35e6   :  { %3046 = vst.msk [vmem:[#allocation2 + $0x30] sm:$0xff] %vm302_vm10, %v3044_v55  ;;  %3374 = vmatmul.msk.f32.vlgmr.msra.gmra.mxu1 %vm302_vm10, %v3044_v55  ;;  %3375 = vmatmul.msk.f32.vlgmr.msrb.gmra.mxu2 %vm302_vm10, %v3044_v55 }
0x35ed   :  { %v3150_v14 = vld [vmem:[#allocation2 + $0x30] sm:$0xff] }
0x35ee   :  { %3384 = vmatmul.msk.f32.gmra.mxu3 %vm302_vm10, %v3150_v14 }
0x3663   :  { %v3066_v26 = vpop.f32.mrf.mxu1 }
0x3664   :  { %v3089_v27 = vadd.f32 %v3066_v26, %v2311_v17 }
0x3666   :  { %v3376_v60 = vmul.f32 -1.442695, %v3089_v27 }
0x3668   :  { %3716 = vpow2.f32 %v3376_v60 }
0x3669   :  { %v3086_v31 = vpop.f32.mrf.mxu2 }
0x366a   :  { %v3090_v6 = vadd.f32 %v3086_v31, %v2352_v32 }
0x366c   :  { %v3377_v48 = vmul.f32 -1.442695, %v3090_v6 }
0x366e   :  { %v3717_v13 = vpop.eup %3716 }
0x366f   :  { %v3094_v29 = vadd.f32 1.0, %v3717_v13 }
0x3671   :  { %3718 = vrcp.f32 %v3094_v29  ;;  %v3223_v36 = vpop.f32.mrf.mxu3  ;;  %v3106_v39 = vand.u32 2147483648, %v3094_v29  ;;  %v3104_v63 = vand.u32 2147483647, %v3094_v29  ;;  %vm3100_vm13 = vweird.f32 %v3094_v29 }
0x3672   :  { %v3224_v40 = vadd.f32 %v4974_v9, %v3223_v36  ;;  %3720 = vtanh.f32 %v3090_v6 }
0x3673   :  { %v3107_v30 = vor.u32 1.1754944e-38, %v3106_v39  ;;  %vm3105_vm14 = vcmp.eq.f32.partialorder %v3104_v63, 8.507059e+37  ;;  %3722 = vpow2.f32 %v3377_v48 }
0x3674   :  { %3235 = vst.msk [vmem:[%s5048_s15 + $0x30] sm:$0xff] %vm174_vm1, %v3224_v40 }
0x3677   :  { %v3719_v33 = vpop.eup %3718 }
0x3678   :  { %v3096_v35 = vmul.f32 %v3719_v33, %v3094_v29  ;;  %vm3101_vm12 = vweird.f32 %v3719_v33  ;;  %v3721_v38 = vpop.eup %3720 }
0x3679   :  { %vm3102_vm2 = vmor %vm3100_vm13, %vm3101_vm12  ;;  %v3723_v51 = vpop.eup %3722 }
0x367a   :  { %v3097_v37 = vsub.f32 1.0, %v3096_v35  ;;  %v3114_v23 = vadd.f32 1.0, %v3723_v51 }
0x367c   :  { %v3098_v43 = vmul.f32 %v3719_v33, %v3097_v37  ;;  %3724 = vrcp.f32 %v3114_v23  ;;  %v3126_v54 = vand.u32 2147483648, %v3114_v23  ;;  %vm3120_vm0 = vweird.f32 %v3114_v23 }
0x367d   :  { %v3124_v56 = vand.u32 2147483647, %v3114_v23 }
0x367e   :  { %v3099_v21 = vadd.f32 %v3719_v33, %v3098_v43  ;;  %v3127_v12 = vor.u32 1.1754944e-38, %v3126_v54 }
0x367f   :  { %vm3125_vm4 = vcmp.eq.f32.partialorder %v3124_v56, 8.507059e+37 }
0x3680   :  { %v3103_v45 = vsel %vm3102_vm2, %v3719_v33, %v3099_v21 }
0x3681   :  { %v3108_v46 = vsel %vm3105_vm14, %v3107_v30, %v3103_v45 }
0x3682   :  { %v3131_v42 = vmul.f32 %v3721_v38, %v3108_v46  ;;  %v3725_v24 = vpop.eup %3724  ;;  %v3130_v28 = vmul.f32 %v3108_v46, %v3039_v10 }
0x3683   :  { %v3116_v41 = vmul.f32 %v3725_v24, %v3114_v23  ;;  %vm3121_vm15 = vweird.f32 %v3725_v24 }
0x3684   :  { %3133 = vrot.lane.b32.xlu1 %v3131_v42, %s3916_s3  ;;  %vm3122_vm3 = vmor %vm3120_vm0, %vm3121_vm15 }
0x3685   :  { %v3117_v8 = vsub.f32 1.0, %v3116_v41 }
0x3687   :  { %v3118_v57 = vmul.f32 %v3725_v24, %v3117_v8 }
0x3689   :  { %v3119_v53 = vadd.f32 %v3725_v24, %v3118_v57 }
0x368b   :  { %v3123_v47 = vsel %vm3122_vm3, %v3725_v24, %v3119_v53 }
0x368c   :  { %v3128_v59 = vsel %vm3125_vm4, %v3127_v12, %v3123_v47 }
0x36f6   :  { %v3134_v50 = vpop.permute.xlu1 %3133 }
0x36f7   :  { %v3136_v52 = vadd.f32 %v3134_v50, %v3130_v28 }
0x36f9   :  { %3726 = vtanh.f32 %v3136_v52 }
0x36ff   :  { %v3727_v58 = vpop.eup %3726 }
0x3700   :  { %v3138_v0 = vmul.f32 %v3727_v58, %v3128_v59 }
0x3702   :  { %3140 = vrot.lane.b32.xlu2 %v3138_v0, %s3916_s3 }
0x375c   :  { %v3141_v25 = vpop.permute.xlu2 %3140 }
0x375d   :  { %3143 = vst.msk [vmem:[#allocation2 + $0x38] sm:$0xff] %vm302_vm10, %v3141_v25 }
0x3764   :  { %v3151_v62 = vld [vmem:[#allocation2 + $0x38] sm:$0xff] }
0x3765   :  { %3385 = vmatmul.msk.f32.gmra.mxu3 %vm302_vm10, %v3151_v62 }
0x37e8   :  { %v3226_v16 = vpop.f32.mrf.mxu3 }
0x37e9   :  { %v3227_v4 = vadd.f32 %v4974_v9, %v3226_v16 }
0x37eb   :  { %3236 = vst.msk [vmem:[%s5048_s15 + $0x38] sm:$0xff] %vm174_vm1, %v3227_v4 }
0x37ec   :  { %3241 = vsyncpa [#allocation5], 1 }
0x37ed   :  { %3242 = vsyncpa [#allocation7], 1 }
0x37ee   :  { %3243 = vsyncpa [#allocation10], 1 }
0x37ef   :  { %3244 = vsyncpa [#allocation13], 1 }

</bundles_post_ra>
